<compile_context>
chip_gen: v7x
topology: tpu7x:2x2x1
jax: 0.10.0
libtpu: 0.0.40
codegen_flags: <defaults>
</compile_context>

<pallas_src>
import math
import functools

import jax
import jax.numpy as jnp
from jax.experimental import pallas as pl
from jax.experimental.pallas import tpu as pltpu


# ---------------------------------------------------------------------------
# Fused kernel: one (batch, frame) block per grid step.
#   img:  (1, C, HW)      w: (Cout, Cin)     b: (Cout, 1)
#   out:  mask (1,K,HW), recon (1,C*K,HW), masked_recon (1,C*K,HW),
#         recon_loss / bg_loss / entropy partials (1,1,128) each.
# Decoder weight rows are laid out [mask_contri(K) | mask_rect(K) |
# recon channel-major (C*K) | recon_bg(C)].
# ---------------------------------------------------------------------------
def _fused_ocwm_kernel(img_ref, w_ref, b_ref,
                       mask_ref, recon_ref, mrec_ref,
                       rloss_ref, bgloss_ref, ent_ref,
                       *, K, C, std, bg_std):
    img = img_ref[0]                     # (C, HW)
    w = w_ref[...]                       # (Cout, Cin)
    bias = b_ref[...]                    # (Cout, 1)

    Cin = img.shape[0]
    CK = C * K

    # 1x1-conv decoder as VPU broadcast-FMAs (Cin is tiny; MXU would be ~2% busy).
    def pointwise(row_lo, row_hi):
        w_rows = w[row_lo:row_hi]                      # (R, Cin)
        b_rows = bias[row_lo:row_hi]                   # (R, 1)
        out = b_rows + w_rows[:, 0:1] * img[0:1, :]
        for c in range(1, Cin):
            out = out + w_rows[:, c:c + 1] * img[c:c + 1, :]
        return out                                     # (R, HW)

    mc_lin = pointwise(0, K)                           # mask_contri logits
    mr = pointwise(K, 2 * K)                           # mask_rectified
    rc_lin = pointwise(2 * K, 2 * K + CK)              # recon logits, channel-major
    bg_lin = pointwise(2 * K + CK, 2 * K + CK + C)     # recon_bg logits

    mask_contri = jax.nn.sigmoid(mc_lin)               # (K, HW)
    recon = jax.nn.sigmoid(rc_lin)                     # (C*K, HW), row c*K+k
    recon_bg = jax.nn.sigmoid(bg_lin)                  # (C, HW)

    # ---- get_normed_masks -------------------------------------------------
    mx = jnp.max(mr, axis=0, keepdims=True)
    e = jnp.exp(mr - mx)
    denom = jnp.sum(e, axis=0, keepdims=True)
    share = e / denom                                  # softmax over objects
    log_share = (mr - mx) - jnp.log(denom)             # log-softmax: 1 log instead of K*HW
    joint = jnp.tanh(jnp.sum(mask_contri, axis=0, keepdims=True))   # (1, HW)
    mask = share * joint                               # (K, HW)
    ent = -jnp.sum(jnp.sum(share * log_share, axis=0, keepdims=True) * joint)
    mask_bg = 1.0 - joint + 1e-5                       # == exp(log_s1)

    mask_ref[0] = mask
    recon_ref[0] = recon

    # ---- get_recon_loss / get_recon_loss_bg / masked_recon ---------------
    c_fg = -0.5 * math.log(2.0 * math.pi) - math.log(std)
    c_bg = -0.5 * math.log(2.0 * math.pi) - math.log(bg_std)
    inv_std = 1.0 / std
    inv_bg_std = 1.0 / bg_std

    w_fg = mask + 1e-5                                 # (K, HW)
    w_bg = mask_bg + 1e-5                              # (1, HW)

    rloss = jnp.float32(0.0)
    bgloss = jnp.float32(0.0)
    for c in range(C):                                 # static loop, C = 3
        img_c = img[c:c + 1, :]                        # (1, HW)
        r_c = recon[c * K:(c + 1) * K, :]              # (K, HW)

        lp_fg = -0.5 * ((r_c - img_c) * inv_std) ** 2 + c_fg
        s_fg = jnp.sum(w_fg * jnp.exp(lp_fg), axis=0, keepdims=True)   # (1, HW)

        lp_bg = -0.5 * ((recon_bg[c:c + 1, :] - img_c) * inv_bg_std) ** 2 + c_bg
        e_bg = w_bg * jnp.exp(lp_bg)                   # (1, HW), computed once

        rloss = rloss - jnp.sum(jnp.log(s_fg + e_bg + 1e-5))
        bgloss = bgloss - jnp.sum(jnp.log(e_bg + 1e-5))

        mrec_ref[0, c * K:(c + 1) * K, :] = r_c * mask

    # Lane-dense scalar partials (scalar broadcast over 128 lanes).
    rloss_ref[0] = jnp.full((1, 128), rloss, dtype=jnp.float32)
    bgloss_ref[0] = jnp.full((1, 128), bgloss, dtype=jnp.float32)
    ent_ref[0] = jnp.full((1, 128), ent, dtype=jnp.float32)


def _ocwm_fused_call(x, w_cm, b_cm, *, K, C, HW, std, bg_std):
    N = x.shape[0]
    Cout, Cin = w_cm.shape
    CK = C * K
    kernel = functools.partial(_fused_ocwm_kernel, K=K, C=C,
                               std=float(std), bg_std=float(bg_std))
    return pl.pallas_call(
        kernel,
        out_shape=(
            jax.ShapeDtypeStruct((N, K, HW), jnp.float32),     # mask
            jax.ShapeDtypeStruct((N, CK, HW), jnp.float32),    # recon (channel-major)
            jax.ShapeDtypeStruct((N, CK, HW), jnp.float32),    # masked_recon
            jax.ShapeDtypeStruct((N, 1, 128), jnp.float32),    # recon-loss partials
            jax.ShapeDtypeStruct((N, 1, 128), jnp.float32),    # bg-loss partials
            jax.ShapeDtypeStruct((N, 1, 128), jnp.float32),    # entropy partials
        ),
        grid=(N,),
        in_specs=[
            pl.BlockSpec((1, C, HW), lambda i: (i, 0, 0)),
            pl.BlockSpec((Cout, Cin), lambda i: (0, 0)),
            pl.BlockSpec((Cout, 1), lambda i: (0, 0)),
        ],
        out_specs=(
            pl.BlockSpec((1, K, HW), lambda i: (i, 0, 0)),
            pl.BlockSpec((1, CK, HW), lambda i: (i, 0, 0)),
            pl.BlockSpec((1, CK, HW), lambda i: (i, 0, 0)),
            pl.BlockSpec((1, 1, 128), lambda i: (i, 0, 0)),
            pl.BlockSpec((1, 1, 128), lambda i: (i, 0, 0)),
            pl.BlockSpec((1, 1, 128), lambda i: (i, 0, 0)),
        ),
        compiler_params=pltpu.CompilerParams(
            dimension_semantics=("parallel",)),
    )(x, w_cm, b_cm)


def _channel_major_perm(K, C, Cout):
    # Reorder the recon block of the decoder rows from (k, c) k-major to
    # (c, k) channel-major so the kernel's flat (C*K, HW) layout needs no
    # in-kernel transpose / sublane padding.
    kk = jnp.arange(K)
    cc = jnp.arange(C)
    rec_src = (2 * K + kk[None, :] * C + cc[:, None]).reshape(C * K)
    return jnp.concatenate([jnp.arange(2 * K), rec_src,
                            jnp.arange(2 * K + C * K, Cout)])


# ---------------------------------------------------------------------------
# OCWM.forward — one fused pallas_call over all (batch, frame) pairs.
# ---------------------------------------------------------------------------
@functools.partial(jax.jit, static_argnames=("K", "std", "bg_std", "ew"))
def ocwm_forward(video, w_dec, b_dec, *, K=16, std=0.2, bg_std=0.3, ew=1.0):
    B, L, C, H, W = video.shape
    HW = H * W
    N = B * L
    Cout = w_dec.shape[0]

    perm = _channel_major_perm(K, C, Cout)
    w_cm = w_dec[perm].astype(jnp.float32)
    b_cm = b_dec[perm].astype(jnp.float32)
    x = video.reshape(N, C, HW).astype(jnp.float32)

    mask, recon_cm, mrec_cm, rloss_p, bgloss_p, ent_p = _ocwm_fused_call(
        x, w_cm, b_cm, K=K, C=C, HW=HW, std=std, bg_std=bg_std)

    rloss = rloss_p[:, 0, 0].reshape(B, L)
    bgloss = bgloss_p[:, 0, 0].reshape(B, L)
    ent = ent_p[:, 0, 0].reshape(B, L)

    recon_loss_all = jnp.sum(rloss)
    ent_loss_all = jnp.sum(ent) * ew
    # torch overwrites bg_recon_loss every frame -> only the last frame's
    # (batch-summed) value is reported.
    bg_recon_loss = jnp.sum(bgloss[:, -1])
    # TODO(synk): KL / prior terms (kl_where/what/pres, prior_bg) come from the
    # undefined sub-networks — kept at zero.
    prior_loss_all = jnp.float32(0.0)

    # logger (recon / mask / masked_recon per frame), back in (B, K, C, H, W).
    recon_log = recon_cm.reshape(B, L, C, K, H, W).transpose(0, 1, 3, 2, 4, 5)
    mrec_log = mrec_cm.reshape(B, L, C, K, H, W).transpose(0, 1, 3, 2, 4, 5)
    mask_log = mask.reshape(B, L, K, 1, H, W)
    logger = [dict(recon=recon_log[:, i], mask=mask_log[:, i],
                   masked_recon=mrec_log[:, i]) for i in range(L)]

    Lf = float(L)
    loss_log = {
        "recon_loss": recon_loss_all / Lf,
        "prior_loss": prior_loss_all / Lf,
        "mask_entropy_loss": ent_loss_all / Lf,
        "bg_loss": bg_recon_loss / Lf,
        "loss": (recon_loss_all + prior_loss_all + ent_loss_all) / Lf,
    }
    return loss_log, logger


# ---------------------------------------------------------------------------
# Pure-JAX reference (torch-equivalent math, no Pallas) for correctness.
# ---------------------------------------------------------------------------
def _ref_forward(video, params, *, K, std, bg_std, ew):
    B, L, C, H, W = video.shape
    HW = H * W
    w_dec, b_dec = params
    recon_loss_all = 0.0
    ent_loss_all = 0.0
    bgloss = 0.0
    for i in range(L):
        img = video[:, i].reshape(B, C, HW)
        feats = jnp.einsum("oc,bch->boh", w_dec, img,
                           precision=jax.lax.Precision.HIGHEST) + b_dec[None]
        mc = jax.nn.sigmoid(feats[:, :K])
        mr = feats[:, K:2 * K]
        recon = jax.nn.sigmoid(feats[:, 2 * K:2 * K + 3 * K]).reshape(B, K, C, HW)
        rbg = jax.nn.sigmoid(feats[:, 2 * K + 3 * K:2 * K + 3 * K + C])

        share = jax.nn.softmax(mr, axis=1)
        joint = jnp.tanh(jnp.sum(mc, axis=1, keepdims=True))
        mask = share * joint
        log_s1 = jnp.log(1.0 - joint + 1e-5)
        ent = jnp.sum(-jnp.sum(share * jnp.log(share + 1e-5), axis=1, keepdims=True) * joint)
        mbg = jnp.exp(log_s1)

        c_fg = -0.5 * math.log(2.0 * math.pi) - math.log(std)
        c_bg = -0.5 * math.log(2.0 * math.pi) - math.log(bg_std)
        lp_fg = -0.5 * ((img[:, None] - recon) / std) ** 2 + c_fg
        lp_bg = -0.5 * ((img - rbg) / bg_std) ** 2 + c_bg
        log_mx_fg = jnp.log(mask + 1e-5)[:, :, None, :] + lp_fg
        log_mx_bg = jnp.log(mbg + 1e-5) + lp_bg
        s = jnp.sum(jnp.exp(log_mx_fg), axis=1) + jnp.exp(log_mx_bg)
        rloss = jnp.sum(-jnp.log(s + 1e-5))
        bgloss = jnp.sum(-jnp.log(jnp.exp(log_mx_bg) + 1e-5))

        recon_loss_all += rloss
        ent_loss_all += ent
    ent_loss_all = ent_loss_all * ew
    Lf = float(L)
    return {
        "recon_loss": recon_loss_all / Lf,
        "mask_entropy_loss": ent_loss_all / Lf,
        "bg_loss": bgloss / Lf,
        "loss": recon_loss_all / Lf + ent_loss_all / Lf,
    }


if __name__ == "__main__":
    # Small shapes consistent with the module (K=16 objects per frame, RGB).
    B, L, C, H, W, K = 2, 3, 3, 32, 32, 16
    STD, BG_STD, EW = 0.2, 0.3, 1.0

    key = jax.random.PRNGKey(0)
    k_vid, k_w, k_b = jax.random.split(key, 3)
    video = jax.random.uniform(k_vid, (B, L, C, H, W), dtype=jnp.float32)

    Cout = 2 * K + 3 * K + C
    w_dec = 0.1 * jax.random.normal(k_w, (Cout, C), dtype=jnp.float32)
    b_dec = 0.1 * jax.random.normal(k_b, (Cout, 1), dtype=jnp.float32)

    loss_log, _logger = ocwm_forward(video, w_dec, b_dec,
                                     K=K, std=STD, bg_std=BG_STD, ew=EW)
    loss_log = jax.block_until_ready(loss_log)

    ref = _ref_forward(video, (w_dec, b_dec), K=K, std=STD, bg_std=BG_STD, ew=EW)
    for name in ("recon_loss", "mask_entropy_loss", "bg_loss", "loss"):
        got = loss_log[name]
        want = ref[name]
        assert jnp.isfinite(got), f"{name} not finite"
        assert jnp.allclose(got, want, rtol=5e-3, atol=5e-2), (
            f"{name}: kernel={got} ref={want}")

    print("KERNEL_OK")
</pallas_src>

<mosaic_0001>
module attributes {stable_mosaic.version = 11 : i64} {
  func.func @_fused_ocwm_kernel(%arg0: i32, %arg1: memref<1x3x1024xf32, #tpu.memory_space<vmem>>, %arg2: memref<83x3xf32, #tpu.memory_space<vmem>>, %arg3: memref<83x1xf32, #tpu.memory_space<vmem>>, %arg4: memref<1x16x1024xf32, #tpu.memory_space<vmem>>, %arg5: memref<1x48x1024xf32, #tpu.memory_space<vmem>>, %arg6: memref<1x48x1024xf32, #tpu.memory_space<vmem>>, %arg7: memref<1x1x128xf32, #tpu.memory_space<vmem>>, %arg8: memref<1x1x128xf32, #tpu.memory_space<vmem>>, %arg9: memref<1x1x128xf32, #tpu.memory_space<vmem>>) attributes {dimension_semantics = [#tpu.dimension_semantics<parallel>], iteration_bounds = array<i64: 6>, scalar_prefetch = 0 : i64, scratch_operands = 0 : i64, tpu.core_type = #tpu.core_type<tc>, window_params = [{transform_indices = @transform_0, window_bounds = array<i64: 1, 3, 1024>}, {pipeline_mode = #tpu.pipeline_mode<synchronous>, transform_indices = @transform_1, window_bounds = array<i64: 83, 3>}, {pipeline_mode = #tpu.pipeline_mode<synchronous>, transform_indices = @transform_2, window_bounds = array<i64: 83, 1>}, {transform_indices = @transform_3, window_bounds = array<i64: 1, 16, 1024>}, {transform_indices = @transform_4, window_bounds = array<i64: 1, 48, 1024>}, {transform_indices = @transform_5, window_bounds = array<i64: 1, 48, 1024>}, {transform_indices = @transform_6, window_bounds = array<i64: 1, 1, 128>}, {transform_indices = @transform_7, window_bounds = array<i64: 1, 1, 128>}, {transform_indices = @transform_8, window_bounds = array<i64: 1, 1, 128>}]} {
    %c0 = arith.constant 0 : index
    %c0_0 = arith.constant 0 : index
    %c0_1 = arith.constant 0 : index
    %0 = vector.load %arg1[%c0, %c0_0, %c0_1] : memref<1x3x1024xf32, #tpu.memory_space<vmem>>, vector<1x3x1024xf32>
    %1 = vector.shape_cast %0 : vector<1x3x1024xf32> to vector<3x1024xf32>
    %c0_2 = arith.constant 0 : index
    %c0_3 = arith.constant 0 : index
    %2 = vector.load %arg2[%c0_2, %c0_3] : memref<83x3xf32, #tpu.memory_space<vmem>>, vector<83x3xf32>
    %c0_4 = arith.constant 0 : index
    %c0_5 = arith.constant 0 : index
    %3 = vector.load %arg3[%c0_4, %c0_5] : memref<83x1xf32, #tpu.memory_space<vmem>>, vector<83x1xf32>
    %4 = vector.extract_strided_slice %2 {offsets = [0, 0], sizes = [16, 3], strides = [1, 1]} : vector<83x3xf32> to vector<16x3xf32>
    %5 = vector.extract_strided_slice %3 {offsets = [0, 0], sizes = [16, 1], strides = [1, 1]} : vector<83x1xf32> to vector<16x1xf32>
    %6 = vector.extract_strided_slice %4 {offsets = [0, 0], sizes = [16, 1], strides = [1, 1]} : vector<16x3xf32> to vector<16x1xf32>
    %7 = vector.extract_strided_slice %1 {offsets = [0, 0], sizes = [1, 1024], strides = [1, 1]} : vector<3x1024xf32> to vector<1x1024xf32>
    %8 = vector.broadcast %6 : vector<16x1xf32> to vector<16x1024xf32>
    %9 = vector.broadcast %7 : vector<1x1024xf32> to vector<16x1024xf32>
    %10 = arith.mulf %8, %9 : vector<16x1024xf32>
    %11 = vector.broadcast %5 : vector<16x1xf32> to vector<16x1024xf32>
    %12 = arith.addf %11, %10 : vector<16x1024xf32>
    %13 = vector.extract_strided_slice %4 {offsets = [0, 1], sizes = [16, 1], strides = [1, 1]} : vector<16x3xf32> to vector<16x1xf32>
    %14 = vector.extract_strided_slice %1 {offsets = [1, 0], sizes = [1, 1024], strides = [1, 1]} : vector<3x1024xf32> to vector<1x1024xf32>
    %15 = vector.broadcast %13 : vector<16x1xf32> to vector<16x1024xf32>
    %16 = vector.broadcast %14 : vector<1x1024xf32> to vector<16x1024xf32>
    %17 = arith.mulf %15, %16 : vector<16x1024xf32>
    %18 = arith.addf %12, %17 : vector<16x1024xf32>
    %19 = vector.extract_strided_slice %4 {offsets = [0, 2], sizes = [16, 1], strides = [1, 1]} : vector<16x3xf32> to vector<16x1xf32>
    %20 = vector.extract_strided_slice %1 {offsets = [2, 0], sizes = [1, 1024], strides = [1, 1]} : vector<3x1024xf32> to vector<1x1024xf32>
    %21 = vector.broadcast %19 : vector<16x1xf32> to vector<16x1024xf32>
    %22 = vector.broadcast %20 : vector<1x1024xf32> to vector<16x1024xf32>
    %23 = arith.mulf %21, %22 : vector<16x1024xf32>
    %24 = arith.addf %18, %23 : vector<16x1024xf32>
    %25 = vector.extract_strided_slice %2 {offsets = [16, 0], sizes = [16, 3], strides = [1, 1]} : vector<83x3xf32> to vector<16x3xf32>
    %26 = vector.extract_strided_slice %3 {offsets = [16, 0], sizes = [16, 1], strides = [1, 1]} : vector<83x1xf32> to vector<16x1xf32>
    %27 = vector.extract_strided_slice %25 {offsets = [0, 0], sizes = [16, 1], strides = [1, 1]} : vector<16x3xf32> to vector<16x1xf32>
    %28 = vector.extract_strided_slice %1 {offsets = [0, 0], sizes = [1, 1024], strides = [1, 1]} : vector<3x1024xf32> to vector<1x1024xf32>
    %29 = vector.broadcast %27 : vector<16x1xf32> to vector<16x1024xf32>
    %30 = vector.broadcast %28 : vector<1x1024xf32> to vector<16x1024xf32>
    %31 = arith.mulf %29, %30 : vector<16x1024xf32>
    %32 = vector.broadcast %26 : vector<16x1xf32> to vector<16x1024xf32>
    %33 = arith.addf %32, %31 : vector<16x1024xf32>
    %34 = vector.extract_strided_slice %25 {offsets = [0, 1], sizes = [16, 1], strides = [1, 1]} : vector<16x3xf32> to vector<16x1xf32>
    %35 = vector.extract_strided_slice %1 {offsets = [1, 0], sizes = [1, 1024], strides = [1, 1]} : vector<3x1024xf32> to vector<1x1024xf32>
    %36 = vector.broadcast %34 : vector<16x1xf32> to vector<16x1024xf32>
    %37 = vector.broadcast %35 : vector<1x1024xf32> to vector<16x1024xf32>
    %38 = arith.mulf %36, %37 : vector<16x1024xf32>
    %39 = arith.addf %33, %38 : vector<16x1024xf32>
    %40 = vector.extract_strided_slice %25 {offsets = [0, 2], sizes = [16, 1], strides = [1, 1]} : vector<16x3xf32> to vector<16x1xf32>
    %41 = vector.extract_strided_slice %1 {offsets = [2, 0], sizes = [1, 1024], strides = [1, 1]} : vector<3x1024xf32> to vector<1x1024xf32>
    %42 = vector.broadcast %40 : vector<16x1xf32> to vector<16x1024xf32>
    %43 = vector.broadcast %41 : vector<1x1024xf32> to vector<16x1024xf32>
    %44 = arith.mulf %42, %43 : vector<16x1024xf32>
    %45 = arith.addf %39, %44 : vector<16x1024xf32>
    %46 = vector.extract_strided_slice %2 {offsets = [32, 0], sizes = [48, 3], strides = [1, 1]} : vector<83x3xf32> to vector<48x3xf32>
    %47 = vector.extract_strided_slice %3 {offsets = [32, 0], sizes = [48, 1], strides = [1, 1]} : vector<83x1xf32> to vector<48x1xf32>
    %48 = vector.extract_strided_slice %46 {offsets = [0, 0], sizes = [48, 1], strides = [1, 1]} : vector<48x3xf32> to vector<48x1xf32>
    %49 = vector.extract_strided_slice %1 {offsets = [0, 0], sizes = [1, 1024], strides = [1, 1]} : vector<3x1024xf32> to vector<1x1024xf32>
    %50 = vector.broadcast %48 : vector<48x1xf32> to vector<48x1024xf32>
    %51 = vector.broadcast %49 : vector<1x1024xf32> to vector<48x1024xf32>
    %52 = arith.mulf %50, %51 : vector<48x1024xf32>
    %53 = vector.broadcast %47 : vector<48x1xf32> to vector<48x1024xf32>
    %54 = arith.addf %53, %52 : vector<48x1024xf32>
    %55 = vector.extract_strided_slice %46 {offsets = [0, 1], sizes = [48, 1], strides = [1, 1]} : vector<48x3xf32> to vector<48x1xf32>
    %56 = vector.extract_strided_slice %1 {offsets = [1, 0], sizes = [1, 1024], strides = [1, 1]} : vector<3x1024xf32> to vector<1x1024xf32>
    %57 = vector.broadcast %55 : vector<48x1xf32> to vector<48x1024xf32>
    %58 = vector.broadcast %56 : vector<1x1024xf32> to vector<48x1024xf32>
    %59 = arith.mulf %57, %58 : vector<48x1024xf32>
    %60 = arith.addf %54, %59 : vector<48x1024xf32>
    %61 = vector.extract_strided_slice %46 {offsets = [0, 2], sizes = [48, 1], strides = [1, 1]} : vector<48x3xf32> to vector<48x1xf32>
    %62 = vector.extract_strided_slice %1 {offsets = [2, 0], sizes = [1, 1024], strides = [1, 1]} : vector<3x1024xf32> to vector<1x1024xf32>
    %63 = vector.broadcast %61 : vector<48x1xf32> to vector<48x1024xf32>
    %64 = vector.broadcast %62 : vector<1x1024xf32> to vector<48x1024xf32>
    %65 = arith.mulf %63, %64 : vector<48x1024xf32>
    %66 = arith.addf %60, %65 : vector<48x1024xf32>
    %67 = vector.extract_strided_slice %2 {offsets = [80, 0], sizes = [3, 3], strides = [1, 1]} : vector<83x3xf32> to vector<3x3xf32>
    %68 = vector.extract_strided_slice %3 {offsets = [80, 0], sizes = [3, 1], strides = [1, 1]} : vector<83x1xf32> to vector<3x1xf32>
    %69 = vector.extract_strided_slice %67 {offsets = [0, 0], sizes = [3, 1], strides = [1, 1]} : vector<3x3xf32> to vector<3x1xf32>
    %70 = vector.extract_strided_slice %1 {offsets = [0, 0], sizes = [1, 1024], strides = [1, 1]} : vector<3x1024xf32> to vector<1x1024xf32>
    %71 = vector.broadcast %69 : vector<3x1xf32> to vector<3x1024xf32>
    %72 = vector.broadcast %70 : vector<1x1024xf32> to vector<3x1024xf32>
    %73 = arith.mulf %71, %72 : vector<3x1024xf32>
    %74 = vector.broadcast %68 : vector<3x1xf32> to vector<3x1024xf32>
    %75 = arith.addf %74, %73 : vector<3x1024xf32>
    %76 = vector.extract_strided_slice %67 {offsets = [0, 1], sizes = [3, 1], strides = [1, 1]} : vector<3x3xf32> to vector<3x1xf32>
    %77 = vector.extract_strided_slice %1 {offsets = [1, 0], sizes = [1, 1024], strides = [1, 1]} : vector<3x1024xf32> to vector<1x1024xf32>
    %78 = vector.broadcast %76 : vector<3x1xf32> to vector<3x1024xf32>
    %79 = vector.broadcast %77 : vector<1x1024xf32> to vector<3x1024xf32>
    %80 = arith.mulf %78, %79 : vector<3x1024xf32>
    %81 = arith.addf %75, %80 : vector<3x1024xf32>
    %82 = vector.extract_strided_slice %67 {offsets = [0, 2], sizes = [3, 1], strides = [1, 1]} : vector<3x3xf32> to vector<3x1xf32>
    %83 = vector.extract_strided_slice %1 {offsets = [2, 0], sizes = [1, 1024], strides = [1, 1]} : vector<3x1024xf32> to vector<1x1024xf32>
    %84 = vector.broadcast %82 : vector<3x1xf32> to vector<3x1024xf32>
    %85 = vector.broadcast %83 : vector<1x1024xf32> to vector<3x1024xf32>
    %86 = arith.mulf %84, %85 : vector<3x1024xf32>
    %87 = arith.addf %81, %86 : vector<3x1024xf32>
    %88 = arith.negf %24 : vector<16x1024xf32>
    %89 = math.exp %88 : vector<16x1024xf32>
    %cst = arith.constant 1.000000e+00 : f32
    %90 = vector.broadcast %cst : f32 to vector<16x1024xf32>
    %91 = arith.addf %90, %89 : vector<16x1024xf32>
    %92 = arith.divf %90, %91 : vector<16x1024xf32>
    %93 = arith.negf %66 : vector<48x1024xf32>
    %94 = math.exp %93 : vector<48x1024xf32>
    %cst_6 = arith.constant 1.000000e+00 : f32
    %95 = vector.broadcast %cst_6 : f32 to vector<48x1024xf32>
    %96 = arith.addf %95, %94 : vector<48x1024xf32>
    %97 = arith.divf %95, %96 : vector<48x1024xf32>
    %98 = arith.negf %87 : vector<3x1024xf32>
    %99 = math.exp %98 : vector<3x1024xf32>
    %cst_7 = arith.constant 1.000000e+00 : f32
    %100 = vector.broadcast %cst_7 : f32 to vector<3x1024xf32>
    %101 = arith.addf %100, %99 : vector<3x1024xf32>
    %102 = arith.divf %100, %101 : vector<3x1024xf32>
    %cst_8 = arith.constant dense<0xFF800000> : vector<1024xf32>
    %103 = vector.multi_reduction <maximumf>, %45, %cst_8 [0] : vector<16x1024xf32> to vector<1024xf32>
    %104 = vector.shape_cast %103 : vector<1024xf32> to vector<1x1024xf32>
    %105 = vector.broadcast %104 : vector<1x1024xf32> to vector<16x1024xf32>
    %106 = arith.subf %45, %105 : vector<16x1024xf32>
    %107 = math.exp %106 : vector<16x1024xf32>
    %cst_9 = arith.constant dense<0.000000e+00> : vector<1024xf32>
    %108 = vector.multi_reduction <add>, %107, %cst_9 [0] : vector<16x1024xf32> to vector<1024xf32>
    %109 = vector.shape_cast %108 : vector<1024xf32> to vector<1x1024xf32>
    %110 = vector.broadcast %109 : vector<1x1024xf32> to vector<16x1024xf32>
    %111 = arith.divf %107, %110 : vector<16x1024xf32>
    %112 = vector.broadcast %104 : vector<1x1024xf32> to vector<16x1024xf32>
    %113 = arith.subf %45, %112 : vector<16x1024xf32>
    %114 = math.log %109 : vector<1x1024xf32>
    %115 = vector.broadcast %114 : vector<1x1024xf32> to vector<16x1024xf32>
    %116 = arith.subf %113, %115 : vector<16x1024xf32>
    %cst_10 = arith.constant dense<0.000000e+00> : vector<1024xf32>
    %117 = vector.multi_reduction <add>, %92, %cst_10 [0] : vector<16x1024xf32> to vector<1024xf32>
    %118 = vector.shape_cast %117 : vector<1024xf32> to vector<1x1024xf32>
    %119 = math.tanh %118 : vector<1x1024xf32>
    %120 = vector.broadcast %119 : vector<1x1024xf32> to vector<16x1024xf32>
    %121 = arith.mulf %111, %120 : vector<16x1024xf32>
    %122 = arith.mulf %111, %116 : vector<16x1024xf32>
    %cst_11 = arith.constant dense<0.000000e+00> : vector<1024xf32>
    %123 = vector.multi_reduction <add>, %122, %cst_11 [0] : vector<16x1024xf32> to vector<1024xf32>
    %124 = vector.shape_cast %123 : vector<1024xf32> to vector<1x1024xf32>
    %125 = arith.mulf %124, %119 : vector<1x1024xf32>
    %126 = vector.shape_cast %125 : vector<1x1024xf32> to vector<1x1x1024xf32>
    %cst_12 = arith.constant dense<0.000000e+00> : vector<1xf32>
    %127 = vector.multi_reduction <add>, %126, %cst_12 [1, 2] : vector<1x1x1024xf32> to vector<1xf32>
    %128 = vector.shape_cast %127 : vector<1xf32> to vector<1x1x1xf32>
    %129 = vector.extract %128[0, 0, 0] : f32 from vector<1x1x1xf32>
    %cst_13 = arith.constant 0.000000e+00 : f32
    %130 = arith.subf %cst_13, %129 : f32
    %cst_14 = arith.constant 1.000000e+00 : f32
    %131 = vector.broadcast %cst_14 : f32 to vector<1x1024xf32>
    %132 = arith.subf %131, %119 : vector<1x1024xf32>
    %cst_15 = arith.constant 9.99999974E-6 : f32
    %133 = vector.broadcast %cst_15 : f32 to vector<1x1024xf32>
    %134 = arith.addf %132, %133 : vector<1x1024xf32>
    %c0_16 = arith.constant 0 : index
    %c0_17 = arith.constant 0 : index
    %c0_18 = arith.constant 0 : index
    %135 = vector.load %arg4[%c0_16, %c0_17, %c0_18] : memref<1x16x1024xf32, #tpu.memory_space<vmem>>, vector<1x16x1024xf32>
    %136 = vector.shape_cast %135 : vector<1x16x1024xf32> to vector<16x1024xf32>
    %137 = vector.shape_cast %121 : vector<16x1024xf32> to vector<1x16x1024xf32>
    tpu.vector_store %arg4[%c0_16, %c0_17, %c0_18], %137 {strides = array<i32>} : memref<1x16x1024xf32, #tpu.memory_space<vmem>>, vector<1x16x1024xf32>,
    %c0_19 = arith.constant 0 : index
    %c0_20 = arith.constant 0 : index
    %c0_21 = arith.constant 0 : index
    %138 = vector.load %arg5[%c0_19, %c0_20, %c0_21] : memref<1x48x1024xf32, #tpu.memory_space<vmem>>, vector<1x48x1024xf32>
    %139 = vector.shape_cast %138 : vector<1x48x1024xf32> to vector<48x1024xf32>
    %140 = vector.shape_cast %97 : vector<48x1024xf32> to vector<1x48x1024xf32>
    tpu.vector_store %arg5[%c0_19, %c0_20, %c0_21], %140 {strides = array<i32>} : memref<1x48x1024xf32, #tpu.memory_space<vmem>>, vector<1x48x1024xf32>,
    %cst_22 = arith.constant 9.99999974E-6 : f32
    %141 = vector.broadcast %cst_22 : f32 to vector<16x1024xf32>
    %142 = arith.addf %121, %141 : vector<16x1024xf32>
    %cst_23 = arith.constant 9.99999974E-6 : f32
    %143 = vector.broadcast %cst_23 : f32 to vector<1x1024xf32>
    %144 = arith.addf %134, %143 : vector<1x1024xf32>
    %145 = vector.extract_strided_slice %1 {offsets = [0, 0], sizes = [1, 1024], strides = [1, 1]} : vector<3x1024xf32> to vector<1x1024xf32>
    %146 = vector.extract_strided_slice %97 {offsets = [0, 0], sizes = [16, 1024], strides = [1, 1]} : vector<48x1024xf32> to vector<16x1024xf32>
    %147 = vector.broadcast %145 : vector<1x1024xf32> to vector<16x1024xf32>
    %148 = arith.subf %146, %147 : vector<16x1024xf32>
    %cst_24 = arith.constant 5.000000e+00 : f32
    %149 = vector.broadcast %cst_24 : f32 to vector<16x1024xf32>
    %150 = arith.mulf %148, %149 : vector<16x1024xf32>
    %151 = arith.mulf %150, %150 : vector<16x1024xf32>
    %cst_25 = arith.constant -5.000000e-01 : f32
    %152 = vector.broadcast %cst_25 : f32 to vector<16x1024xf32>
    %153 = arith.mulf %152, %151 : vector<16x1024xf32>
    %cst_26 = arith.constant 0.690499365 : f32
    %154 = vector.broadcast %cst_26 : f32 to vector<16x1024xf32>
    %155 = arith.addf %153, %154 : vector<16x1024xf32>
    %156 = math.exp %155 : vector<16x1024xf32>
    %157 = arith.mulf %142, %156 : vector<16x1024xf32>
    %cst_27 = arith.constant dense<0.000000e+00> : vector<1024xf32>
    %158 = vector.multi_reduction <add>, %157, %cst_27 [0] : vector<16x1024xf32> to vector<1024xf32>
    %159 = vector.shape_cast %158 : vector<1024xf32> to vector<1x1024xf32>
    %160 = vector.extract_strided_slice %102 {offsets = [0, 0], sizes = [1, 1024], strides = [1, 1]} : vector<3x1024xf32> to vector<1x1024xf32>
    %161 = arith.subf %160, %145 : vector<1x1024xf32>
    %cst_28 = arith.constant 3.33333325 : f32
    %162 = vector.broadcast %cst_28 : f32 to vector<1x1024xf32>
    %163 = arith.mulf %161, %162 : vector<1x1024xf32>
    %164 = arith.mulf %163, %163 : vector<1x1024xf32>
    %cst_29 = arith.constant -5.000000e-01 : f32
    %165 = vector.broadcast %cst_29 : f32 to vector<1x1024xf32>
    %166 = arith.mulf %165, %164 : vector<1x1024xf32>
    %cst_30 = arith.constant 0.285034269 : f32
    %167 = vector.broadcast %cst_30 : f32 to vector<1x1024xf32>
    %168 = arith.addf %166, %167 : vector<1x1024xf32>
    %169 = math.exp %168 : vector<1x1024xf32>
    %170 = arith.mulf %144, %169 : vector<1x1024xf32>
    %171 = arith.addf %159, %170 : vector<1x1024xf32>
    %cst_31 = arith.constant 9.99999974E-6 : f32
    %172 = vector.broadcast %cst_31 : f32 to vector<1x1024xf32>
    %173 = arith.addf %171, %172 : vector<1x1024xf32>
    %174 = math.log %173 : vector<1x1024xf32>
    %175 = vector.shape_cast %174 : vector<1x1024xf32> to vector<1x1x1024xf32>
    %cst_32 = arith.constant dense<0.000000e+00> : vector<1xf32>
    %176 = vector.multi_reduction <add>, %175, %cst_32 [1, 2] : vector<1x1x1024xf32> to vector<1xf32>
    %177 = vector.shape_cast %176 : vector<1xf32> to vector<1x1x1xf32>
    %178 = vector.extract %177[0, 0, 0] : f32 from vector<1x1x1xf32>
    %cst_33 = arith.constant 0.000000e+00 : f32
    %179 = arith.subf %cst_33, %178 : f32
    %cst_34 = arith.constant 9.99999974E-6 : f32
    %180 = vector.broadcast %cst_34 : f32 to vector<1x1024xf32>
    %181 = arith.addf %170, %180 : vector<1x1024xf32>
    %182 = math.log %181 : vector<1x1024xf32>
    %183 = vector.shape_cast %182 : vector<1x1024xf32> to vector<1x1x1024xf32>
    %cst_35 = arith.constant dense<0.000000e+00> : vector<1xf32>
    %184 = vector.multi_reduction <add>, %183, %cst_35 [1, 2] : vector<1x1x1024xf32> to vector<1xf32>
    %185 = vector.shape_cast %184 : vector<1xf32> to vector<1x1x1xf32>
    %186 = vector.extract %185[0, 0, 0] : f32 from vector<1x1x1xf32>
    %cst_36 = arith.constant 0.000000e+00 : f32
    %187 = arith.subf %cst_36, %186 : f32
    %188 = arith.mulf %146, %121 : vector<16x1024xf32>
    %c0_37 = arith.constant 0 : index
    %c0_38 = arith.constant 0 : index
    %c0_39 = arith.constant 0 : index
    %189 = vector.load %arg6[%c0_37, %c0_38, %c0_39] : memref<1x48x1024xf32, #tpu.memory_space<vmem>>, vector<1x16x1024xf32>
    %190 = vector.shape_cast %189 : vector<1x16x1024xf32> to vector<16x1024xf32>
    %191 = vector.shape_cast %188 : vector<16x1024xf32> to vector<1x16x1024xf32>
    tpu.vector_store %arg6[%c0_37, %c0_38, %c0_39], %191 {strides = array<i32>} : memref<1x48x1024xf32, #tpu.memory_space<vmem>>, vector<1x16x1024xf32>,
    %192 = vector.extract_strided_slice %1 {offsets = [1, 0], sizes = [1, 1024], strides = [1, 1]} : vector<3x1024xf32> to vector<1x1024xf32>
    %193 = vector.extract_strided_slice %97 {offsets = [16, 0], sizes = [16, 1024], strides = [1, 1]} : vector<48x1024xf32> to vector<16x1024xf32>
    %194 = vector.broadcast %192 : vector<1x1024xf32> to vector<16x1024xf32>
    %195 = arith.subf %193, %194 : vector<16x1024xf32>
    %cst_40 = arith.constant 5.000000e+00 : f32
    %196 = vector.broadcast %cst_40 : f32 to vector<16x1024xf32>
    %197 = arith.mulf %195, %196 : vector<16x1024xf32>
    %198 = arith.mulf %197, %197 : vector<16x1024xf32>
    %cst_41 = arith.constant -5.000000e-01 : f32
    %199 = vector.broadcast %cst_41 : f32 to vector<16x1024xf32>
    %200 = arith.mulf %199, %198 : vector<16x1024xf32>
    %cst_42 = arith.constant 0.690499365 : f32
    %201 = vector.broadcast %cst_42 : f32 to vector<16x1024xf32>
    %202 = arith.addf %200, %201 : vector<16x1024xf32>
    %203 = math.exp %202 : vector<16x1024xf32>
    %204 = arith.mulf %142, %203 : vector<16x1024xf32>
    %cst_43 = arith.constant dense<0.000000e+00> : vector<1024xf32>
    %205 = vector.multi_reduction <add>, %204, %cst_43 [0] : vector<16x1024xf32> to vector<1024xf32>
    %206 = vector.shape_cast %205 : vector<1024xf32> to vector<1x1024xf32>
    %207 = vector.extract_strided_slice %102 {offsets = [1, 0], sizes = [1, 1024], strides = [1, 1]} : vector<3x1024xf32> to vector<1x1024xf32>
    %208 = arith.subf %207, %192 : vector<1x1024xf32>
    %cst_44 = arith.constant 3.33333325 : f32
    %209 = vector.broadcast %cst_44 : f32 to vector<1x1024xf32>
    %210 = arith.mulf %208, %209 : vector<1x1024xf32>
    %211 = arith.mulf %210, %210 : vector<1x1024xf32>
    %cst_45 = arith.constant -5.000000e-01 : f32
    %212 = vector.broadcast %cst_45 : f32 to vector<1x1024xf32>
    %213 = arith.mulf %212, %211 : vector<1x1024xf32>
    %cst_46 = arith.constant 0.285034269 : f32
    %214 = vector.broadcast %cst_46 : f32 to vector<1x1024xf32>
    %215 = arith.addf %213, %214 : vector<1x1024xf32>
    %216 = math.exp %215 : vector<1x1024xf32>
    %217 = arith.mulf %144, %216 : vector<1x1024xf32>
    %218 = arith.addf %206, %217 : vector<1x1024xf32>
    %cst_47 = arith.constant 9.99999974E-6 : f32
    %219 = vector.broadcast %cst_47 : f32 to vector<1x1024xf32>
    %220 = arith.addf %218, %219 : vector<1x1024xf32>
    %221 = math.log %220 : vector<1x1024xf32>
    %222 = vector.shape_cast %221 : vector<1x1024xf32> to vector<1x1x1024xf32>
    %cst_48 = arith.constant dense<0.000000e+00> : vector<1xf32>
    %223 = vector.multi_reduction <add>, %222, %cst_48 [1, 2] : vector<1x1x1024xf32> to vector<1xf32>
    %224 = vector.shape_cast %223 : vector<1xf32> to vector<1x1x1xf32>
    %225 = vector.extract %224[0, 0, 0] : f32 from vector<1x1x1xf32>
    %226 = arith.subf %179, %225 : f32
    %cst_49 = arith.constant 9.99999974E-6 : f32
    %227 = vector.broadcast %cst_49 : f32 to vector<1x1024xf32>
    %228 = arith.addf %217, %227 : vector<1x1024xf32>
    %229 = math.log %228 : vector<1x1024xf32>
    %230 = vector.shape_cast %229 : vector<1x1024xf32> to vector<1x1x1024xf32>
    %cst_50 = arith.constant dense<0.000000e+00> : vector<1xf32>
    %231 = vector.multi_reduction <add>, %230, %cst_50 [1, 2] : vector<1x1x1024xf32> to vector<1xf32>
    %232 = vector.shape_cast %231 : vector<1xf32> to vector<1x1x1xf32>
    %233 = vector.extract %232[0, 0, 0] : f32 from vector<1x1x1xf32>
    %234 = arith.subf %187, %233 : f32
    %235 = arith.mulf %193, %121 : vector<16x1024xf32>
    %c0_51 = arith.constant 0 : index
    %c16 = arith.constant 16 : index
    %c0_52 = arith.constant 0 : index
    %236 = vector.load %arg6[%c0_51, %c16, %c0_52] : memref<1x48x1024xf32, #tpu.memory_space<vmem>>, vector<1x16x1024xf32>
    %237 = vector.shape_cast %236 : vector<1x16x1024xf32> to vector<16x1024xf32>
    %238 = vector.shape_cast %235 : vector<16x1024xf32> to vector<1x16x1024xf32>
    tpu.vector_store %arg6[%c0_51, %c16, %c0_52], %238 {strides = array<i32>} : memref<1x48x1024xf32, #tpu.memory_space<vmem>>, vector<1x16x1024xf32>,
    %239 = vector.extract_strided_slice %1 {offsets = [2, 0], sizes = [1, 1024], strides = [1, 1]} : vector<3x1024xf32> to vector<1x1024xf32>
    %240 = vector.extract_strided_slice %97 {offsets = [32, 0], sizes = [16, 1024], strides = [1, 1]} : vector<48x1024xf32> to vector<16x1024xf32>
    %241 = vector.broadcast %239 : vector<1x1024xf32> to vector<16x1024xf32>
    %242 = arith.subf %240, %241 : vector<16x1024xf32>
    %cst_53 = arith.constant 5.000000e+00 : f32
    %243 = vector.broadcast %cst_53 : f32 to vector<16x1024xf32>
    %244 = arith.mulf %242, %243 : vector<16x1024xf32>
    %245 = arith.mulf %244, %244 : vector<16x1024xf32>
    %cst_54 = arith.constant -5.000000e-01 : f32
    %246 = vector.broadcast %cst_54 : f32 to vector<16x1024xf32>
    %247 = arith.mulf %246, %245 : vector<16x1024xf32>
    %cst_55 = arith.constant 0.690499365 : f32
    %248 = vector.broadcast %cst_55 : f32 to vector<16x1024xf32>
    %249 = arith.addf %247, %248 : vector<16x1024xf32>
    %250 = math.exp %249 : vector<16x1024xf32>
    %251 = arith.mulf %142, %250 : vector<16x1024xf32>
    %cst_56 = arith.constant dense<0.000000e+00> : vector<1024xf32>
    %252 = vector.multi_reduction <add>, %251, %cst_56 [0] : vector<16x1024xf32> to vector<1024xf32>
    %253 = vector.shape_cast %252 : vector<1024xf32> to vector<1x1024xf32>
    %254 = vector.extract_strided_slice %102 {offsets = [2, 0], sizes = [1, 1024], strides = [1, 1]} : vector<3x1024xf32> to vector<1x1024xf32>
    %255 = arith.subf %254, %239 : vector<1x1024xf32>
    %cst_57 = arith.constant 3.33333325 : f32
    %256 = vector.broadcast %cst_57 : f32 to vector<1x1024xf32>
    %257 = arith.mulf %255, %256 : vector<1x1024xf32>
    %258 = arith.mulf %257, %257 : vector<1x1024xf32>
    %cst_58 = arith.constant -5.000000e-01 : f32
    %259 = vector.broadcast %cst_58 : f32 to vector<1x1024xf32>
    %260 = arith.mulf %259, %258 : vector<1x1024xf32>
    %cst_59 = arith.constant 0.285034269 : f32
    %261 = vector.broadcast %cst_59 : f32 to vector<1x1024xf32>
    %262 = arith.addf %260, %261 : vector<1x1024xf32>
    %263 = math.exp %262 : vector<1x1024xf32>
    %264 = arith.mulf %144, %263 : vector<1x1024xf32>
    %265 = arith.addf %253, %264 : vector<1x1024xf32>
    %cst_60 = arith.constant 9.99999974E-6 : f32
    %266 = vector.broadcast %cst_60 : f32 to vector<1x1024xf32>
    %267 = arith.addf %265, %266 : vector<1x1024xf32>
    %268 = math.log %267 : vector<1x1024xf32>
    %269 = vector.shape_cast %268 : vector<1x1024xf32> to vector<1x1x1024xf32>
    %cst_61 = arith.constant dense<0.000000e+00> : vector<1xf32>
    %270 = vector.multi_reduction <add>, %269, %cst_61 [1, 2] : vector<1x1x1024xf32> to vector<1xf32>
    %271 = vector.shape_cast %270 : vector<1xf32> to vector<1x1x1xf32>
    %272 = vector.extract %271[0, 0, 0] : f32 from vector<1x1x1xf32>
    %273 = arith.subf %226, %272 : f32
    %cst_62 = arith.constant 9.99999974E-6 : f32
    %274 = vector.broadcast %cst_62 : f32 to vector<1x1024xf32>
    %275 = arith.addf %264, %274 : vector<1x1024xf32>
    %276 = math.log %275 : vector<1x1024xf32>
    %277 = vector.shape_cast %276 : vector<1x1024xf32> to vector<1x1x1024xf32>
    %cst_63 = arith.constant dense<0.000000e+00> : vector<1xf32>
    %278 = vector.multi_reduction <add>, %277, %cst_63 [1, 2] : vector<1x1x1024xf32> to vector<1xf32>
    %279 = vector.shape_cast %278 : vector<1xf32> to vector<1x1x1xf32>
    %280 = vector.extract %279[0, 0, 0] : f32 from vector<1x1x1xf32>
    %281 = arith.subf %234, %280 : f32
    %282 = arith.mulf %240, %121 : vector<16x1024xf32>
    %c0_64 = arith.constant 0 : index
    %c32 = arith.constant 32 : index
    %c0_65 = arith.constant 0 : index
    %283 = vector.load %arg6[%c0_64, %c32, %c0_65] : memref<1x48x1024xf32, #tpu.memory_space<vmem>>, vector<1x16x1024xf32>
    %284 = vector.shape_cast %283 : vector<1x16x1024xf32> to vector<16x1024xf32>
    %285 = vector.shape_cast %282 : vector<16x1024xf32> to vector<1x16x1024xf32>
    tpu.vector_store %arg6[%c0_64, %c32, %c0_65], %285 {strides = array<i32>} : memref<1x48x1024xf32, #tpu.memory_space<vmem>>, vector<1x16x1024xf32>,
    %286 = vector.broadcast %273 : f32 to vector<1x128xf32>
    %c0_66 = arith.constant 0 : index
    %c0_67 = arith.constant 0 : index
    %c0_68 = arith.constant 0 : index
    %287 = vector.load %arg7[%c0_66, %c0_67, %c0_68] : memref<1x1x128xf32, #tpu.memory_space<vmem>>, vector<1x1x128xf32>
    %288 = vector.shape_cast %287 : vector<1x1x128xf32> to vector<1x128xf32>
    %289 = vector.shape_cast %286 : vector<1x128xf32> to vector<1x1x128xf32>
    tpu.vector_store %arg7[%c0_66, %c0_67, %c0_68], %289 {strides = array<i32>} : memref<1x1x128xf32, #tpu.memory_space<vmem>>, vector<1x1x128xf32>,
    %290 = vector.broadcast %281 : f32 to vector<1x128xf32>
    %c0_69 = arith.constant 0 : index
    %c0_70 = arith.constant 0 : index
    %c0_71 = arith.constant 0 : index
    %291 = vector.load %arg8[%c0_69, %c0_70, %c0_71] : memref<1x1x128xf32, #tpu.memory_space<vmem>>, vector<1x1x128xf32>
    %292 = vector.shape_cast %291 : vector<1x1x128xf32> to vector<1x128xf32>
    %293 = vector.shape_cast %290 : vector<1x128xf32> to vector<1x1x128xf32>
    tpu.vector_store %arg8[%c0_69, %c0_70, %c0_71], %293 {strides = array<i32>} : memref<1x1x128xf32, #tpu.memory_space<vmem>>, vector<1x1x128xf32>,
    %294 = vector.broadcast %130 : f32 to vector<1x128xf32>
    %c0_72 = arith.constant 0 : index
    %c0_73 = arith.constant 0 : index
    %c0_74 = arith.constant 0 : index
    %295 = vector.load %arg9[%c0_72, %c0_73, %c0_74] : memref<1x1x128xf32, #tpu.memory_space<vmem>>, vector<1x1x128xf32>
    %296 = vector.shape_cast %295 : vector<1x1x128xf32> to vector<1x128xf32>
    %297 = vector.shape_cast %294 : vector<1x128xf32> to vector<1x1x128xf32>
    tpu.vector_store %arg9[%c0_72, %c0_73, %c0_74], %297 {strides = array<i32>} : memref<1x1x128xf32, #tpu.memory_space<vmem>>, vector<1x1x128xf32>,
    return
  }
  func.func @transform_0(%arg0: i32) -> (i32, i32, i32) {
    %c0_i32 = arith.constant 0 : i32
    %c0_i32_0 = arith.constant 0 : i32
    %c0_i32_1 = arith.constant 0 : i32
    return %arg0, %c0_i32, %c0_i32_0 : i32, i32, i32
  }
  func.func @transform_1(%arg0: i32) -> (i32, i32) {
    %c0_i32 = arith.constant 0 : i32
    %c0_i32_0 = arith.constant 0 : i32
    %c0_i32_1 = arith.constant 0 : i32
    return %c0_i32, %c0_i32_0 : i32, i32
  }
  func.func @transform_2(%arg0: i32) -> (i32, i32) {
    %c0_i32 = arith.constant 0 : i32
    %c0_i32_0 = arith.constant 0 : i32
    %c0_i32_1 = arith.constant 0 : i32
    return %c0_i32, %c0_i32_0 : i32, i32
  }
  func.func @transform_3(%arg0: i32) -> (i32, i32, i32) {
    %c0_i32 = arith.constant 0 : i32
    %c0_i32_0 = arith.constant 0 : i32
    %c0_i32_1 = arith.constant 0 : i32
    return %arg0, %c0_i32, %c0_i32_0 : i32, i32, i32
  }
  func.func @transform_4(%arg0: i32) -> (i32, i32, i32) {
    %c0_i32 = arith.constant 0 : i32
    %c0_i32_0 = arith.constant 0 : i32
    %c0_i32_1 = arith.constant 0 : i32
    return %arg0, %c0_i32, %c0_i32_0 : i32, i32, i32
  }
  func.func @transform_5(%arg0: i32) -> (i32, i32, i32) {
    %c0_i32 = arith.constant 0 : i32
    %c0_i32_0 = arith.constant 0 : i32
    %c0_i32_1 = arith.constant 0 : i32
    return %arg0, %c0_i32, %c0_i32_0 : i32, i32, i32
  }
  func.func @transform_6(%arg0: i32) -> (i32, i32, i32) {
    %c0_i32 = arith.constant 0 : i32
    %c0_i32_0 = arith.constant 0 : i32
    %c0_i32_1 = arith.constant 0 : i32
    return %arg0, %c0_i32, %c0_i32_0 : i32, i32, i32
  }
  func.func @transform_7(%arg0: i32) -> (i32, i32, i32) {
    %c0_i32 = arith.constant 0 : i32
    %c0_i32_0 = arith.constant 0 : i32
    %c0_i32_1 = arith.constant 0 : i32
    return %arg0, %c0_i32, %c0_i32_0 : i32, i32, i32
  }
  func.func @transform_8(%arg0: i32) -> (i32, i32, i32) {
    %c0_i32 = arith.constant 0 : i32
    %c0_i32_0 = arith.constant 0 : i32
    %c0_i32_1 = arith.constant 0 : i32
    return %arg0, %c0_i32, %c0_i32_0 : i32, i32, i32
  }
}

</mosaic_0001>

<bundles_post_ra>
// kernel: ocwm_forward.1
= control target key start
LH: loop header
LB: loop body
LE: loop exit
PB: predicated region body
PF: predicated region fallthrough
CT: control target
= control target key end

     0   :  { %s4584_s27 = smov 0   ;;  %s6940_s0 = inlined_call_operand.vmem [shape: f32[6,3,1024], index: 0, kind: input, shape index: {}]   ;;  %s6941_s1 = inlined_call_operand.vmem [shape: f32[83,3], index: 1, kind: input, shape index: {}]   ;;  %s6942_s2 = inlined_call_operand.vmem [shape: f32[83,1], index: 2, kind: input, shape index: {}]   ;;  %s6943_s3 = inlined_call_operand.vmem [shape: f32[6,16,1024], index: 3, kind: output, shape index: {0}]   ;;  %s6944_s4 = inlined_call_operand.vmem [shape: f32[6,48,1024], index: 4, kind: output, shape index: {1}]   ;;  %s6945_s5 = inlined_call_operand.vmem [shape: f32[6,48,1024], index: 5, kind: output, shape index: {2}]   ;;  %s6946_s6 = inlined_call_operand.vmem [shape: f32[6,1,128], index: 6, kind: output, shape index: {3}]   ;;  %s6947_s7 = inlined_call_operand.vmem [shape: f32[6,1,128], index: 7, kind: output, shape index: {4}]   ;;  %s6948_s8 = inlined_call_operand.vmem [shape: f32[6,1,128], index: 8, kind: output, shape index: {5}]  }
   0x1 LB: > { %s3721_s28 = sadd.s32 4294967295, %s4534_s27   ;;  %p3725_p0 = scmp.ge.s32.totalorder %s4534_s27, 1  ;;  %s4534_s27 = sphi %s4584_s27, %s19_s27  }
   0x2   : > { %p273_p1 = scmp.lt.s32.totalorder %s4534_s27, 7 }
   0x4   : > { %p274_p2 = pnand %p3725_p0, %p273_p1 }
   0x6   : > { %277 = sbr.rel (%p274_p2) target bundleno = 989 (0x3dd), region = 32 }
   0xd   : > { %v372_v0 = vld [vmem:[%s6942_s2 + $0x10] sm:$0xff]  ;;  %v362_v1 = vld [vmem:[%s6941_s1 + $0x18] sm:$0xff]  ;;  %v4536_v2 = vmov 2   ;;  %v4537_v3 = vmov 0   ;;  %v4538_v6 = vmov 1   ;;  %v370_v7 = vld [vmem:[%s6942_s2] sm:$0xff]  ;;  %v395_v25 = vlaneseq }
   0xe   : > { %3837 = vset.pattern.permute.xlu0 %v4536_v2  ;;  %3834 = vset.pattern.permute.xlu1 %v4537_v3  ;;  %v373_v4 = vld [vmem:[%s6942_s2 + $0x18] sm:$0xff]  ;;  %v361_v5 = vld [vmem:[%s6941_s1 + $0x10] sm:$0xff]  ;;  %v363_v8 = vld [vmem:[%s6941_s1 + $0x20] sm:$0xff]  ;;  %p326_p3 = scmp.lt.s32.totalorder %s3721_s28, 5  ;;  %vm2135_vm0 = vcmask 1040384  }
   0xf   : > { %761 = vperm.xlu1 %3834, %v372_v0   ;;  %830 = vperm.xlu0 %3837, %v362_v1   ;;  %v359_v9 = vld [vmem:[%s6941_s1] sm:$0xff]  ;;  %v366_v10 = vld [vmem:[%s6941_s1 + $0x38] sm:$0xff]  ;;  %v360_v11 = vld [vmem:[%s6941_s1 + $0x8] sm:$0xff]  ;;  %v396_v26 = vshrl.u32 %v395_v25, 7 }
  0x10   : > { %v368_v12 = vld [vmem:[%s6941_s1 + $0x48] sm:$0xff]  ;;  %v377_v15 = vld [vmem:[%s6942_s2 + $0x38] sm:$0xff]  ;;  %v378_v16 = vld [vmem:[%s6942_s2 + $0x40] sm:$0xff]  ;;  %s7544_s28 = smov (!%p326_p3, %s3721_s28), 5 }
  0x11   : > { %v371_v13 = vld [vmem:[%s6942_s2 + $0x8] sm:$0xff]  ;;  %v365_v18 = vld [vmem:[%s6941_s1 + $0x30] sm:$0xff]  ;;  %v367_v19 = vld [vmem:[%s6941_s1 + $0x40] sm:$0xff]  ;;  %s3806_s11 = sshll.u32 %s7544_s28, 5  ;;  %v631_v27 = vsub.s32 2, %v396_v26  ;;  %v635_v28 = vsub.s32 6, %v396_v26  ;;  %s354_s9 = scalar_lea.vmem %s6948_s8, %s7544_s28 }
  0x12   : > { %v375_v14 = vld [vmem:[%s6942_s2 + $0x28] sm:$0xff]  ;;  %v374_v20 = vld [vmem:[%s6942_s2 + $0x20] sm:$0xff]  ;;  %v376_v21 = vld [vmem:[%s6942_s2 + $0x30] sm:$0xff]  ;;  %s330_s14 = scalar_lea.vmem %s6940_s0, %s3806_s11  ;;  %v397_v40 = vsub.s32 0, %v396_v26  ;;  %v401_v42 = vsub.s32 4, %v396_v26  ;;  %v519_v43 = vsub.s32 1, %v396_v26  ;;  %s348_s20 = scalar_lea.vmem %s6946_s6, %s7544_s28 }
  0x13   : > { %766 = vperm.xlu1 %3834, %v373_v4   ;;  %3838 = vset.pattern.permute.xlu0 %v4537_v3  ;;  %v364_v17 = vld [vmem:[%s6941_s1 + $0x28] sm:$0xff]  ;;  %v380_v22 = vld [vmem:[%s6942_s2 + $0x50] sm:$0x7]  ;;  %v355_v29 = vld [vmem:[%s330_s14] sm:$0x77]  ;;  %v523_v47 = vsub.s32 5, %v396_v26  ;;  %s351_s29 = scalar_lea.vmem %s6947_s7, %s7544_s28 }
  0x14   : > { %735 = vperm.xlu0 %3838, %v361_v5   ;;  %v379_v23 = vld [vmem:[%s6942_s2 + $0x48] sm:$0xff]  ;;  %v369_v24 = vld [vmem:[%s6941_s1 + $0x50] sm:$0x7]  ;;  %v358_v32 = vld [vmem:[%s330_s14 + $0x18] sm:$0x77]  ;;  %v4688_v33 = vrot.slane %v355_v29, %v631_v27  ;;  %v4690_v34 = vrot.slane %v355_v29, %v635_v28  ;;  %v4728_v53 = vrot.slane %v355_v29, %v397_v40  ;;  %v4730_v54 = vrot.slane %v355_v29, %v401_v42  ;;  %s3808_s15 = smul.u32 384, %s7544_s28 }
  0x15   : > { %v356_v30 = vld [vmem:[%s330_s14 + $0x8] sm:$0x77]  ;;  %v357_v31 = vld [vmem:[%s330_s14 + $0x10] sm:$0x77]  ;;  %v4700_v39 = vrot.slane %v358_v32, %v631_v27  ;;  %v4702_v41 = vrot.slane %v358_v32, %v635_v28  ;;  %v4740_v59 = vrot.slane %v358_v32, %v397_v40  ;;  %v4742_v60 = vrot.slane %v358_v32, %v401_v42  ;;  %s3807_s19 = sshll.u32 %s7544_s28, 7 }
  0x16   : > { %7116 = vst [vmem:[#allocation2_spill] sm:$0xff] %v4688_v33  ;;  %7117 = vst [vmem:[#allocation3_spill] sm:$0xff] %v4690_v34  ;;  %v4692_v35 = vrot.slane %v356_v30, %v631_v27  ;;  %v4694_v36 = vrot.slane %v356_v30, %v635_v28  ;;  %v4696_v37 = vrot.slane %v357_v31, %v631_v27  ;;  %s5547_s18 = scalar_lea.vmem %s6944_s4, %s3808_s15  ;;  %s5931_s22 = scalar_lea.vmem %s6943_s3, %s3807_s19 }
  0x17   : > { %3835 = vset.pattern.permute.xlu1 %v4538_v6  ;;  %v4698_v38 = vrot.slane %v357_v31, %v635_v28  ;;  %7122 = vst [vmem:[#allocation8_spill] sm:$0xff] %v4700_v39  ;;  %7123 = vst [vmem:[#allocation9_spill] sm:$0xff] %v4702_v41  ;;  %v4705_v44 = vrot.slane %v4688_v33, %v631_v27  ;;  %v4708_v45 = vrot.slane %v4690_v34, %v631_v27  ;;  %s5959_s25 = scalar_lea.vmem %s6945_s5, %s3808_s15 }
  0x18   : > { %790 = vperm.xlu1 %3835, %v362_v1   ;;  %740 = vperm.xlu0 %3838, %v362_v1   ;;  %7118 = vst [vmem:[#allocation4_spill] sm:$0xff] %v4692_v35  ;;  %7119 = vst [vmem:[#allocation5_spill] sm:$0xff] %v4694_v36  ;;  %v4711_v46 = vrot.slane %v4692_v35, %v631_v27  ;;  %v4714_v48 = vrot.slane %v4694_v36, %v631_v27 }
  0x19   : > { %7120 = vst [vmem:[#allocation6_spill] sm:$0xff] %v4696_v37  ;;  %7121 = vst [vmem:[#allocation7_spill] sm:$0xff] %v4698_v38  ;;  %v4717_v49 = vrot.slane %v4696_v37, %v631_v27  ;;  %v4720_v50 = vrot.slane %v4698_v38, %v631_v27  ;;  %v4723_v51 = vrot.slane %v4700_v39, %v631_v27 }
  0x1a   : > { %7124 = vst [vmem:[#allocation10_spill] sm:$0xff] %v4705_v44  ;;  %7125 = vst [vmem:[#allocation11_spill] sm:$0xff] %v4708_v45  ;;  %v4726_v52 = vrot.slane %v4702_v41, %v631_v27  ;;  %v4732_v55 = vrot.slane %v356_v30, %v397_v40  ;;  %v4734_v56 = vrot.slane %v356_v30, %v401_v42 }
  0x1b   : > { %7126 = vst [vmem:[#allocation12_spill] sm:$0xff] %v4711_v46  ;;  %7127 = vst [vmem:[#allocation13_spill] sm:$0xff] %v4714_v48  ;;  %v4736_v57 = vrot.slane %v357_v31, %v397_v40  ;;  %v4738_v58 = vrot.slane %v357_v31, %v401_v42  ;;  %v4744_v61 = vrot.slane %v355_v29, %v519_v43 }
  0x1c   : > { %3836 = vset.pattern.permute.xlu1 %v4536_v2  ;;  %485 = vperm.xlu0 %3838, %v370_v7   ;;  %7128 = vst [vmem:[#allocation14_spill] sm:$0xff] %v4717_v49  ;;  %7129 = vst [vmem:[#allocation15_spill] sm:$0xff] %v4720_v50  ;;  %v4746_v62 = vrot.slane %v355_v29, %v523_v47  ;;  %v4748_v63 = vrot.slane %v356_v30, %v519_v43 }
  0x1d   : > { %826 = vperm.xlu1 %3836, %v361_v5   ;;  %7130 = vst [vmem:[#allocation16_spill] sm:$0xff] %v4723_v51  ;;  %7131 = vst [vmem:[#allocation17_spill] sm:$0xff] %v4726_v52  ;;  %v4750_v0 = vrot.slane %v356_v30, %v523_v47  ;;  %v4752_v1 = vrot.slane %v357_v31, %v519_v43  ;;  %v4762_v7 = vrot.slane %v4730_v54, %v397_v40 }
  0x1e   : > { %7132 = vst [vmem:[#allocation18_spill] sm:$0xff] %v4728_v53  ;;  %7133 = vst [vmem:[#allocation19_spill] sm:$0xff] %v4730_v54 }
  0x1f   : > { %7134 = vst [vmem:[#allocation20_spill] sm:$0xff] %v4732_v55  ;;  %7135 = vst [vmem:[#allocation21_spill] sm:$0xff] %v4734_v56 }
  0x20   : > { %867 = vperm.xlu0 %3838, %v363_v8   ;;  %7136 = vst [vmem:[#allocation22_spill] sm:$0xff] %v4736_v57  ;;  %7137 = vst [vmem:[#allocation23_spill] sm:$0xff] %v4738_v58 }
  0x21   : > { %3839 = vset.pattern.permute.xlu1 %v4537_v3  ;;  %7138 = vst [vmem:[#allocation24_spill] sm:$0xff] %v4740_v59  ;;  %7139 = vst [vmem:[#allocation25_spill] sm:$0xff] %v4742_v60 }
  0x22   : > { %383 = vperm.xlu1 %3839, %v359_v9   ;;  %7140 = vst [vmem:[#allocation26_spill] sm:$0xff] %v4744_v61  ;;  %7141 = vst [vmem:[#allocation27_spill] sm:$0xff] %v4746_v62 }
  0x23   : > { %7142 = vst [vmem:[#allocation28_spill] sm:$0xff] %v4748_v63  ;;  %7143 = vst [vmem:[#allocation29_spill] sm:$0xff] %v4750_v0 }
  0x24   : > { %882 = vperm.xlu0 %3838, %v366_v10   ;;  %7144 = vst [vmem:[#allocation30_spill] sm:$0xff] %v4752_v1  ;;  %7148 = vst [vmem:[#allocation34_spill] sm:$0xff] %v4762_v7 }
  0x26   : > { %388 = vperm.xlu1 %3839, %v360_v11  }
  0x28   : > { %892 = vperm.xlu0 %3838, %v368_v12  }
  0x2a   : > { %490 = vperm.xlu1 %3839, %v371_v13   ;;  %v4779_v13 = vrot.slane %v4740_v59, %v397_v40 }
  0x2c   : > { %950 = vperm.xlu0 %3838, %v375_v14   ;;  %7154 = vst [vmem:[#allocation40_spill] sm:$0xff] %v4779_v13  ;;  %v4782_v14 = vrot.slane %v4742_v60, %v397_v40 }
  0x2e   : > { %3840 = vset.pattern.permute.xlu1 %v4538_v6  ;;  %7155 = vst [vmem:[#allocation41_spill] sm:$0xff] %v4782_v14 }
  0x2f   : > { %510 = vperm.xlu1 %3840, %v359_v9  }
  0x30   : > { %960 = vperm.xlu0 %3838, %v377_v15   ;;  %v4785_v15 = vrot.slane %v4744_v61, %v519_v43 }
  0x32   : > { %7156 = vst [vmem:[#allocation42_spill] sm:$0xff] %v4785_v15 }
  0x33   : > { %3841 = vset.pattern.permute.xlu1 %v4536_v2 }
  0x34   : > { %965 = vperm.xlu0 %3838, %v378_v16   ;;  %622 = vperm.xlu1 %3841, %v359_v9   ;;  %v4767_v9 = vrot.slane %v358_v32, %v523_v47  ;;  %v4788_v16 = vrot.slane %v4746_v62, %v519_v43 }
  0x36   : > { %7150 = vst [vmem:[#allocation36_spill] sm:$0xff] %v4767_v9  ;;  %7157 = vst [vmem:[#allocation43_spill] sm:$0xff] %v4788_v16  ;;  %v4815_v26 = vrot.slane %v4767_v9, %v519_v43 }
  0x38   : > { %3844 = vset.pattern.permute.xlu0 %v4538_v6  ;;  %626 = vperm.xlu1 %3841, %v360_v11   ;;  %7163 = vst [vmem:[#allocation49_spill] sm:$0xff] %v4815_v26 }
  0x39   : > { %786 = vperm.xlu0 %3844, %v361_v5  }
  0x3c   : > { %3842 = vset.pattern.permute.xlu1 %v4537_v3 }
  0x3d   : > { %514 = vperm.xlu0 %3844, %v360_v11   ;;  %872 = vperm.xlu1 %3842, %v364_v17   ;;  %v4773_v11 = vrot.slane %v4736_v57, %v397_v40 }
  0x3f   : > { %7152 = vst [vmem:[#allocation38_spill] sm:$0xff] %v4773_v11 }
  0x41   : > { %1026 = vperm.xlu0 %3844, %v364_v17   ;;  %877 = vperm.xlu1 %3842, %v365_v18  }
  0x45   : > { %887 = vperm.xlu1 %3842, %v367_v19   ;;  %1042 = vperm.xlu0 %3844, %v368_v12  }
  0x49   : > { %945 = vperm.xlu1 %3842, %v374_v20   ;;  %3848 = vset.pattern.permute.xlu0 %v4536_v2 }
  0x4a   : > { %1150 = vperm.xlu0 %3848, %v365_v18  }
  0x4d   : > { %955 = vperm.xlu1 %3842, %v376_v21  }
  0x4e   : > { %1162 = vperm.xlu0 %3848, %v368_v12   ;;  %v4776_v12 = vrot.slane %v4738_v58, %v397_v40 }
  0x50   : > { %7153 = vst [vmem:[#allocation39_spill] sm:$0xff] %v4776_v12 }
  0x51   : > { %3843 = vset.pattern.permute.xlu1 %v4538_v6 }
  0x52   : > { %1022 = vperm.xlu1 %3843, %v363_v8   ;;  %3850 = vset.pattern.permute.xlu0 %v4537_v3 }
  0x53   : > { %1276 = vperm.xlu0 %3850, %v380_v22  }
  0x56   : > { %1030 = vperm.xlu1 %3843, %v365_v18   ;;  %v4794_v18 = vrot.slane %v4750_v0, %v519_v43 }
  0x57   : > { %3853 = vset.pattern.permute.xlu0 %v4536_v2 }
  0x58   : > { %7159 = vst [vmem:[#allocation45_spill] sm:$0xff] %v4794_v18 }
  0x5a   : > { %1034 = vperm.xlu1 %3843, %v366_v10  }
  0x5e   : > { %3845 = vset.pattern.permute.xlu1 %v4537_v3 }
  0x5f   : > { %970 = vperm.xlu1 %3845, %v379_v23  }
  0x63   : > { %3846 = vset.pattern.permute.xlu1 %v4538_v6 }
  0x64   : > { %1038 = vperm.xlu1 %3846, %v367_v19  }
  0x68   : > { %3847 = vset.pattern.permute.xlu1 %v4536_v2 }
  0x69   : > { %1142 = vperm.xlu1 %3847, %v363_v8   ;;  %v4765_v8 = vrot.slane %v4732_v55, %v397_v40 }
  0x6b   : > { %7149 = vst [vmem:[#allocation35_spill] sm:$0xff] %v4765_v8 }
  0x6d   : > { %1146 = vperm.xlu1 %3847, %v364_v17   ;;  %v4791_v17 = vrot.slane %v4748_v63, %v519_v43 }
  0x6f   : > { %7158 = vst [vmem:[#allocation44_spill] sm:$0xff] %v4791_v17 }
  0x71   : > { %1154 = vperm.xlu1 %3847, %v366_v10   ;;  %v4770_v10 = vrot.slane %v4734_v56, %v397_v40 }
  0x73   : > { %7151 = vst [vmem:[#allocation37_spill] sm:$0xff] %v4770_v10 }
  0x75   : > { %1158 = vperm.xlu1 %3847, %v367_v19   ;;  %v4797_v19 = vrot.slane %v4752_v1, %v519_v43 }
  0x77   : > { %7160 = vst [vmem:[#allocation46_spill] sm:$0xff] %v4797_v19 }
  0x79   : > { %3849 = vset.pattern.permute.xlu1 %v4537_v3  ;;  %v4756_v3 = vrot.slane %v358_v32, %v519_v43 }
  0x7a   : > { %1263 = vperm.xlu1 %3849, %v369_v24  }
  0x7b   : > { %7146 = vst [vmem:[#allocation32_spill] sm:$0xff] %v4756_v3  ;;  %v4803_v21 = vrot.slane %v4756_v3, %v519_v43 }
  0x7d   : > { %7162 = vst [vmem:[#allocation48_spill] sm:$0xff] %v4803_v21 }
  0x7e   : > { %3851 = vset.pattern.permute.xlu1 %v4538_v6  ;;  %v4759_v6 = vrot.slane %v4728_v53, %v397_v40 }
  0x7f   : > { %1288 = vperm.xlu1 %3851, %v369_v24  }
  0x80   : > { %7147 = vst [vmem:[#allocation33_spill] sm:$0xff] %v4759_v6 }
  0x83   : > { %3852 = vset.pattern.permute.xlu1 %v4536_v2  ;;  %v4754_v2 = vrot.slane %v357_v31, %v523_v47 }
  0x84   : > { %1308 = vperm.xlu1 %3852, %v369_v24  }
  0x85   : > { %7145 = vst [vmem:[#allocation31_spill] sm:$0xff] %v4754_v2  ;;  %v4800_v20 = vrot.slane %v4754_v2, %v519_v43 }
  0x87   : > { %7161 = vst [vmem:[#allocation47_spill] sm:$0xff] %v4800_v20 }
  0x8e   : > { %v762_v4 = vpop.permute.xlu1 %761  ;;  %v831_v5 = vpop.permute.xlu0 %830 }
  0x8f   : > { %v4806_v22 = vmul.f32 %v831_v5, %v4705_v44  ;;  %v4809_v23 = vmul.f32 %v831_v5, %v4708_v45  ;;  %v4812_v24 = vmul.f32 %v831_v5, %v4711_v46  ;;  %v844_v27 = vmul.f32 %v831_v5, %v4714_v48 }
  0x90   : > { %v845_v28 = vmul.f32 %v831_v5, %v4717_v49  ;;  %v4820_v29 = vmul.f32 %v831_v5, %v4720_v50  ;;  %v4823_v30 = vmul.f32 %v831_v5, %v4723_v51 }
  0x92   : > { %v767_v25 = vpop.permute.xlu1 %766  ;;  %7164 = vst [vmem:[#allocation50_spill] sm:$0xff] %v4820_v29  ;;  %7165 = vst [vmem:[#allocation51_spill] sm:$0xff] %v4823_v30 }
  0x93   : > { %v736_v31 = vpop.permute.xlu0 %735 }
  0x94   : > { %v743_v32 = vmul.f32 %v736_v31, %v4759_v6  ;;  %v744_v40 = vmul.f32 %v736_v31, %v4762_v7  ;;  %v745_v42 = vmul.f32 %v736_v31, %v4765_v8  ;;  %v746_v43 = vmul.f32 %v736_v31, %v4770_v10 }
  0x95   : > { %v747_v47 = vmul.f32 %v736_v31, %v4773_v11  ;;  %v748_v41 = vmul.f32 %v736_v31, %v4776_v12  ;;  %v749_v39 = vmul.f32 %v736_v31, %v4779_v13  ;;  %v750_v38 = vmul.f32 %v736_v31, %v4782_v14 }
  0x96   : > { %v4833_v37 = vadd.f32 %v762_v4, %v743_v32  ;;  %v4835_v36 = vadd.f32 %v762_v4, %v744_v40  ;;  %v4837_v35 = vadd.f32 %v762_v4, %v745_v42  ;;  %v4839_v34 = vadd.f32 %v762_v4, %v746_v43 }
  0x97   : > { %v4841_v33 = vadd.f32 %v762_v4, %v747_v47  ;;  %v4843_v9 = vadd.f32 %v762_v4, %v748_v41  ;;  %v4845_v3 = vadd.f32 %v762_v4, %v749_v39  ;;  %v4847_v60 = vadd.f32 %v762_v4, %v750_v38  ;;  %v791_v2 = vpop.permute.xlu1 %790  ;;  %v741_v59 = vpop.permute.xlu0 %740 }
  0x98   : > { %7166 = vst [vmem:[#allocation52_spill] sm:$0xff] %v4835_v36  ;;  %7167 = vst [vmem:[#allocation53_spill] sm:$0xff] %v4837_v35  ;;  %v4850_v31 = vmul.f32 %v831_v5, %v4726_v52  ;;  %v801_v32 = vmul.f32 %v791_v2, %v4785_v15  ;;  %v802_v40 = vmul.f32 %v791_v2, %v4788_v16 }
  0x99   : > { %7168 = vst [vmem:[#allocation54_spill] sm:$0xff] %v4839_v34  ;;  %7169 = vst [vmem:[#allocation55_spill] sm:$0xff] %v4841_v33  ;;  %v803_v42 = vmul.f32 %v791_v2, %v4791_v17  ;;  %v804_v43 = vmul.f32 %v791_v2, %v4794_v18  ;;  %v805_v41 = vmul.f32 %v791_v2, %v4797_v19 }
  0x9a   : > { %7170 = vst [vmem:[#allocation56_spill] sm:$0xff] %v4843_v9  ;;  %7171 = vst [vmem:[#allocation57_spill] sm:$0xff] %v4845_v3  ;;  %v806_v39 = vmul.f32 %v791_v2, %v4800_v20  ;;  %v807_v38 = vmul.f32 %v791_v2, %v4803_v21  ;;  %v751_v4 = vmul.f32 %v741_v59, %v4759_v6 }
  0x9b   : > { %7172 = vst [vmem:[#allocation58_spill] sm:$0xff] %v4847_v60  ;;  %7173 = vst [vmem:[#allocation59_spill] sm:$0xff] %v4850_v31  ;;  %v752_v47 = vmul.f32 %v741_v59, %v4762_v7  ;;  %v753_v5 = vmul.f32 %v741_v59, %v4765_v8  ;;  %v754_v58 = vmul.f32 %v741_v59, %v4770_v10  ;;  %v486_v63 = vpop.permute.xlu0 %485 }
  0x9c   : > { %v755_v1 = vmul.f32 %v741_v59, %v4773_v11  ;;  %v756_v57 = vmul.f32 %v741_v59, %v4776_v12  ;;  %v757_v0 = vmul.f32 %v741_v59, %v4779_v13  ;;  %v758_v56 = vmul.f32 %v741_v59, %v4782_v14  ;;  %v827_v53 = vpop.permute.xlu1 %826 }
  0x9d   : > { %v777_v55 = vadd.f32 %v767_v25, %v751_v4  ;;  %v778_v62 = vadd.f32 %v767_v25, %v752_v47  ;;  %v779_v54 = vadd.f32 %v767_v25, %v753_v5  ;;  %v780_v61 = vadd.f32 %v767_v25, %v754_v58 }
  0x9e   : > { %v781_v31 = vadd.f32 %v767_v25, %v755_v1  ;;  %v782_v30 = vadd.f32 %v767_v25, %v756_v57  ;;  %v783_v29 = vadd.f32 %v767_v25, %v757_v0  ;;  %v4867_v60 = vadd.f32 %v767_v25, %v758_v56 }
  0x9f   : > { %v817_v3 = vadd.f32 %v801_v32, %v777_v55  ;;  %v818_v9 = vadd.f32 %v802_v40, %v778_v62  ;;  %v819_v33 = vadd.f32 %v803_v42, %v779_v54  ;;  %v820_v34 = vadd.f32 %v804_v43, %v780_v61  ;;  %v868_v47 = vpop.permute.xlu0 %867 }
  0xa0   : > { %7174 = vst [vmem:[#allocation60_spill] sm:$0xff] %v4867_v60  ;;  %v4870_v35 = vmul.f32 %v791_v2, %v4815_v26  ;;  %v821_v36 = vadd.f32 %v805_v41, %v781_v31  ;;  %v4872_v59 = vadd.f32 %v806_v39, %v782_v30  ;;  %v4874_v4 = vadd.f32 %v807_v38, %v783_v29 }
  0xa1   : > { %v4877_v58 = vadd.f32 %v4806_v22, %v817_v3  ;;  %v4880_v57 = vadd.f32 %v4809_v23, %v818_v9  ;;  %v4883_v55 = vadd.f32 %v4812_v24, %v819_v33  ;;  %v4885_v54 = vadd.f32 %v844_v27, %v820_v34  ;;  %v384_v1 = vpop.permute.xlu1 %383 }
  0xa2   : > { %7175 = vst [vmem:[#allocation61_spill] sm:$0xff] %v4870_v35  ;;  %7176 = vst [vmem:[#allocation62_spill] sm:$0xff] %v4872_v59  ;;  %v4887_v56 = vadd.f32 %v845_v28, %v821_v36  ;;  %v4890_v61 = vmul.f32 %v827_v53, %v4705_v44  ;;  %v4893_v62 = vmul.f32 %v827_v53, %v4708_v45 }
  0xa3   : > { %7177 = vst [vmem:[#allocation63_spill] sm:$0xff] %v4874_v4  ;;  %7178 = vst [vmem:[#allocation64_spill] sm:$0xff] %v4877_v58  ;;  %v4896_v0 = vmul.f32 %v827_v53, %v4711_v46  ;;  %v4899_v2 = vmul.f32 %v827_v53, %v4714_v48  ;;  %v4902_v33 = vmul.f32 %v827_v53, %v4717_v49  ;;  %v883_v24 = vpop.permute.xlu0 %882 }
  0xa4   : > { %7179 = vst [vmem:[#allocation65_spill] sm:$0xff] %v4880_v57  ;;  %7180 = vst [vmem:[#allocation66_spill] sm:$0xff] %v4883_v55  ;;  %v4905_v34 = vmul.f32 %v827_v53, %v4720_v50  ;;  %v4908_v36 = vmul.f32 %v827_v53, %v4723_v51  ;;  %v4911_v3 = vmul.f32 %v827_v53, %v4726_v52 }
  0xa5   : > { %7181 = vst [vmem:[#allocation67_spill] sm:$0xff] %v4885_v54  ;;  %7182 = vst [vmem:[#allocation68_spill] sm:$0xff] %v4887_v56  ;;  %v4914_v9 = vmul.f32 %v868_v47, %v4759_v6  ;;  %v4917_v22 = vmul.f32 %v868_v47, %v4762_v7  ;;  %v4920_v23 = vmul.f32 %v868_v47, %v4765_v8  ;;  %v389_v40 = vpop.permute.xlu1 %388 }
  0xa6   : > { %7183 = vst [vmem:[#allocation69_spill] sm:$0xff] %v4905_v34  ;;  %7184 = vst [vmem:[#allocation70_spill] sm:$0xff] %v4908_v36  ;;  %v4923_v25 = vmul.f32 %v868_v47, %v4770_v10  ;;  %v4926_v27 = vmul.f32 %v868_v47, %v4773_v11  ;;  %v4929_v28 = vmul.f32 %v868_v47, %v4776_v12 }
  0xa7   : > { %7185 = vst [vmem:[#allocation71_spill] sm:$0xff] %v4911_v3  ;;  %7186 = vst [vmem:[#allocation72_spill] sm:$0xff] %v4914_v9  ;;  %v4932_v53 = vmul.f32 %v868_v47, %v4779_v13  ;;  %v467_v29 = vmul.f32 %v4759_v6, %v384_v1  ;;  %v468_v30 = vmul.f32 %v4762_v7, %v384_v1  ;;  %v4942_v3 = vpop.permute.xlu0 %892 }
  0xa8   : > { %7187 = vst [vmem:[#allocation73_spill] sm:$0xff] %v4917_v22  ;;  %7188 = vst [vmem:[#allocation74_spill] sm:$0xff] %v4920_v23  ;;  %v469_v31 = vmul.f32 %v4765_v8, %v384_v1  ;;  %v470_v32 = vmul.f32 %v4770_v10, %v384_v1  ;;  %v471_v42 = vmul.f32 %v4773_v11, %v384_v1 }
  0xa9   : > { %7189 = vst [vmem:[#allocation75_spill] sm:$0xff] %v4923_v25  ;;  %7190 = vst [vmem:[#allocation76_spill] sm:$0xff] %v4926_v27  ;;  %v472_v43 = vmul.f32 %v4776_v12, %v384_v1  ;;  %v473_v41 = vmul.f32 %v4779_v13, %v384_v1  ;;  %v474_v39 = vmul.f32 %v4782_v14, %v384_v1  ;;  %v491_v1 = vpop.permute.xlu1 %490 }
  0xaa   : > { %7191 = vst [vmem:[#allocation77_spill] sm:$0xff] %v4929_v28  ;;  %7192 = vst [vmem:[#allocation78_spill] sm:$0xff] %v4932_v53  ;;  %v493_v38 = vadd.f32 %v486_v63, %v467_v29  ;;  %v494_v5 = vadd.f32 %v486_v63, %v468_v30  ;;  %v495_v4 = vadd.f32 %v486_v63, %v469_v31 }
  0xab   : > { %v496_v59 = vadd.f32 %v486_v63, %v470_v32  ;;  %v497_v36 = vadd.f32 %v486_v63, %v471_v42  ;;  %v498_v35 = vadd.f32 %v486_v63, %v472_v43  ;;  %v499_v60 = vadd.f32 %v486_v63, %v473_v41  ;;  %v4958_v41 = vpop.permute.xlu0 %950 }
  0xac   : > { %v500_v53 = vadd.f32 %v486_v63, %v474_v39  ;;  %v4945_v28 = vmul.f32 %v868_v47, %v4782_v14  ;;  %v919_v27 = vmul.f32 %v883_v24, %v4759_v6  ;;  %v920_v25 = vmul.f32 %v883_v24, %v4762_v7  ;;  %7194 = vst [vmem:[#allocation80_spill] sm:$0xff] %v4958_v41 }
  0xad   : > { %v921_v23 = vmul.f32 %v883_v24, %v4765_v8  ;;  %v922_v29 = vmul.f32 %v883_v24, %v4770_v10  ;;  %v923_v30 = vmul.f32 %v883_v24, %v4773_v11  ;;  %v924_v31 = vmul.f32 %v883_v24, %v4776_v12 }
  0xae   : > { %7193 = vst [vmem:[#allocation79_spill] sm:$0xff] %v4945_v28  ;;  %v925_v32 = vmul.f32 %v883_v24, %v4779_v13  ;;  %v926_v63 = vmul.f32 %v883_v24, %v4782_v14  ;;  %v475_v47 = vmul.f32 %v4759_v6, %v389_v40  ;;  %v476_v42 = vmul.f32 %v4762_v7, %v389_v40 }
  0xaf   : > { %v477_v43 = vmul.f32 %v4765_v8, %v389_v40  ;;  %v478_v39 = vmul.f32 %v4770_v10, %v389_v40  ;;  %v479_v28 = vmul.f32 %v4773_v11, %v389_v40  ;;  %v480_v22 = vmul.f32 %v4776_v12, %v389_v40 }
  0xb0   : > { %v481_v9 = vmul.f32 %v4779_v13, %v389_v40  ;;  %v482_v56 = vmul.f32 %v4782_v14, %v389_v40  ;;  %v4967_v24 = vmul.f32 %v4942_v3, %v4759_v6  ;;  %v4971_v54 = vmul.f32 %v4942_v3, %v4762_v7 }
  0xb1   : > { %v4975_v41 = vmul.f32 %v4942_v3, %v4765_v8  ;;  %v4979_v55 = vmul.f32 %v4942_v3, %v4770_v10  ;;  %v4983_v57 = vmul.f32 %v4942_v3, %v4773_v11  ;;  %v4987_v40 = vmul.f32 %v4942_v3, %v4776_v12  ;;  %v961_v12 = vpop.permute.xlu0 %960 }
  0xb2   : > { %7195 = vst [vmem:[#allocation81_spill] sm:$0xff] %v4967_v24  ;;  %7196 = vst [vmem:[#allocation82_spill] sm:$0xff] %v4971_v54  ;;  %v4991_v24 = vmul.f32 %v4942_v3, %v4779_v13  ;;  %v511_v54 = vpop.permute.xlu1 %510  ;;  %v4993_v7 = vadd.f32 %v491_v1, %v475_v47  ;;  %v4997_v8 = vadd.f32 %v491_v1, %v477_v43 }
  0xb3   : > { %7197 = vst [vmem:[#allocation83_spill] sm:$0xff] %v4975_v41  ;;  %7198 = vst [vmem:[#allocation84_spill] sm:$0xff] %v4979_v55  ;;  %v4995_v41 = vadd.f32 %v491_v1, %v476_v42  ;;  %v4999_v55 = vadd.f32 %v491_v1, %v478_v39  ;;  %v5001_v10 = vadd.f32 %v491_v1, %v479_v28 }
  0xb4   : > { %7199 = vst [vmem:[#allocation85_spill] sm:$0xff] %v4983_v57  ;;  %7200 = vst [vmem:[#allocation86_spill] sm:$0xff] %v4987_v40  ;;  %v5003_v57 = vadd.f32 %v491_v1, %v480_v22  ;;  %v5005_v11 = vadd.f32 %v491_v1, %v481_v9  ;;  %v5007_v40 = vadd.f32 %v491_v1, %v482_v56 }
  0xb5   : > { %7201 = vst [vmem:[#allocation87_spill] sm:$0xff] %v4991_v24  ;;  %7202 = vst [vmem:[#allocation88_spill] sm:$0xff] %v4993_v7  ;;  %v589_v24 = vmul.f32 %v4785_v15, %v511_v54  ;;  %v590_v47 = vmul.f32 %v4788_v16, %v511_v54  ;;  %v591_v42 = vmul.f32 %v4791_v17, %v511_v54 }
  0xb6   : > { %7203 = vst [vmem:[#allocation89_spill] sm:$0xff] %v4995_v41  ;;  %7204 = vst [vmem:[#allocation90_spill] sm:$0xff] %v4997_v8  ;;  %v592_v43 = vmul.f32 %v4794_v18, %v511_v54  ;;  %v593_v39 = vmul.f32 %v4797_v19, %v511_v54  ;;  %v594_v28 = vmul.f32 %v4800_v20, %v511_v54 }
  0xb7   : > { %7205 = vst [vmem:[#allocation91_spill] sm:$0xff] %v4999_v55  ;;  %7206 = vst [vmem:[#allocation92_spill] sm:$0xff] %v5001_v10  ;;  %v595_v22 = vmul.f32 %v4803_v21, %v511_v54  ;;  %v596_v9 = vmul.f32 %v4815_v26, %v511_v54  ;;  %v605_v13 = vadd.f32 %v589_v24, %v493_v38 }
  0xb8   : > { %7207 = vst [vmem:[#allocation93_spill] sm:$0xff] %v5003_v57  ;;  %7208 = vst [vmem:[#allocation94_spill] sm:$0xff] %v5005_v11  ;;  %v606_v56 = vadd.f32 %v590_v47, %v494_v5  ;;  %v607_v1 = vadd.f32 %v591_v42, %v495_v4  ;;  %v608_v6 = vadd.f32 %v592_v43, %v496_v59  ;;  %v5033_v4 = vpop.permute.xlu0 %965 }
  0xb9   : > { %7209 = vst [vmem:[#allocation95_spill] sm:$0xff] %v5007_v40  ;;  %v623_v40 = vpop.permute.xlu1 %622  ;;  %v609_v11 = vadd.f32 %v593_v39, %v497_v36  ;;  %v610_v57 = vadd.f32 %v594_v28, %v498_v35  ;;  %v611_v10 = vadd.f32 %v595_v22, %v499_v60  ;;  %v612_v55 = vadd.f32 %v596_v9, %v500_v53 }
  0xba   : > { %v5017_v8 = vadd.f32 %v961_v12, %v919_v27  ;;  %v5019_v41 = vadd.f32 %v961_v12, %v920_v25  ;;  %v5021_v7 = vadd.f32 %v961_v12, %v921_v23  ;;  %v5023_v58 = vadd.f32 %v961_v12, %v922_v29 }
  0xbb   : > { %v5025_v34 = vadd.f32 %v961_v12, %v923_v30  ;;  %v5027_v54 = vadd.f32 %v961_v12, %v924_v31  ;;  %v5029_v38 = vadd.f32 %v961_v12, %v925_v32  ;;  %v5031_v59 = vadd.f32 %v961_v12, %v926_v63 }
  0xbc   : > { %7210 = vst [vmem:[#allocation96_spill] sm:$0xff] %v5017_v8  ;;  %7211 = vst [vmem:[#allocation97_spill] sm:$0xff] %v5019_v41  ;;  %v701_v35 = vmul.f32 %v4705_v44, %v623_v40  ;;  %v702_v60 = vmul.f32 %v4708_v45, %v623_v40  ;;  %v703_v36 = vmul.f32 %v4711_v46, %v623_v40 }
  0xbd   : > { %7212 = vst [vmem:[#allocation98_spill] sm:$0xff] %v5021_v7  ;;  %7213 = vst [vmem:[#allocation99_spill] sm:$0xff] %v5023_v58  ;;  %v704_v23 = vmul.f32 %v4714_v48, %v623_v40  ;;  %v705_v25 = vmul.f32 %v4717_v49, %v623_v40  ;;  %v706_v27 = vmul.f32 %v4720_v50, %v623_v40  ;;  %v627_v32 = vpop.permute.xlu1 %626 }
  0xbe   : > { %7214 = vst [vmem:[#allocation100_spill] sm:$0xff] %v5025_v34  ;;  %7215 = vst [vmem:[#allocation101_spill] sm:$0xff] %v5027_v54  ;;  %v707_v53 = vmul.f32 %v4723_v51, %v623_v40  ;;  %v708_v5 = vmul.f32 %v4726_v52, %v623_v40  ;;  %v717_v12 = vadd.f32 %v701_v35, %v605_v13  ;;  %v787_v40 = vpop.permute.xlu0 %786 }
  0xbf   : > { %7216 = vst [vmem:[#allocation102_spill] sm:$0xff] %v5029_v38  ;;  %7217 = vst [vmem:[#allocation103_spill] sm:$0xff] %v5031_v59  ;;  %v718_v29 = vadd.f32 %v702_v60, %v606_v56  ;;  %v719_v30 = vadd.f32 %v703_v36, %v607_v1  ;;  %v720_v31 = vadd.f32 %v704_v23, %v608_v6 }
  0xc0   : > { %v721_v63 = vadd.f32 %v705_v25, %v609_v11  ;;  %v722_v24 = vadd.f32 %v706_v27, %v610_v57  ;;  %v723_v47 = vadd.f32 %v707_v53, %v611_v10  ;;  %v724_v42 = vadd.f32 %v708_v5, %v612_v55 }
  0xc1   : > { %v5045_v43 = vmul.f32 %v4942_v3, %v4782_v14  ;;  %v3732_v39 = vmul.f32 -1.442695, %v717_v12  ;;  %v3733_v28 = vmul.f32 -1.442695, %v718_v29  ;;  %v3734_v22 = vmul.f32 -1.442695, %v719_v30 }
  0xc2   : > { %v3735_v9 = vmul.f32 -1.442695, %v720_v31  ;;  %v3736_v59 = vmul.f32 -1.442695, %v721_v63  ;;  %v3737_v38 = vmul.f32 -1.442695, %v722_v24  ;;  %v5048_v13 = vmul.f32 %v4705_v44, %v627_v32 }
  0xc3   : > { %7218 = vst [vmem:[#allocation104_spill] sm:$0xff] %v5045_v43  ;;  %3854 = vpow2.f32 %v3732_v39  ;;  %v3738_v6 = vmul.f32 -1.442695, %v723_v47  ;;  %v3739_v11 = vmul.f32 -1.442695, %v724_v42  ;;  %v5051_v10 = vmul.f32 %v4708_v45, %v627_v32  ;;  %v7219_v29 = vld [vmem:[#allocation52_spill] sm:$0xff]  ;;  %v5081_v39 = vpop.permute.xlu0 %514 }
  0xc4   : > { %3856 = vpow2.f32 %v3733_v28  ;;  %v5054_v57 = vmul.f32 %v4711_v46, %v627_v32  ;;  %v5057_v55 = vmul.f32 %v4714_v48, %v627_v32  ;;  %v5060_v3 = vmul.f32 %v4717_v49, %v627_v32  ;;  %v7220_v31 = vld [vmem:[#allocation53_spill] sm:$0xff]  ;;  %v7221_v24 = vld [vmem:[#allocation54_spill] sm:$0xff]  ;;  %v7222_v42 = vld [vmem:[#allocation55_spill] sm:$0xff] }
  0xc5   : > { %3858 = vpow2.f32 %v3734_v22  ;;  %v5063_v56 = vmul.f32 %v4720_v50, %v627_v32  ;;  %v5066_v1 = vmul.f32 %v4723_v51, %v627_v32  ;;  %v793_v35 = vmul.f32 %v787_v40, %v4785_v15  ;;  %v7223_v28 = vld [vmem:[#allocation56_spill] sm:$0xff] }
  0xc6   : > { %3860 = vpow2.f32 %v3735_v9  ;;  %v794_v60 = vmul.f32 %v787_v40, %v4788_v16  ;;  %v795_v36 = vmul.f32 %v787_v40, %v4791_v17  ;;  %v796_v23 = vmul.f32 %v787_v40, %v4794_v18  ;;  %v7224_v9 = vld [vmem:[#allocation57_spill] sm:$0xff] }
  0xc7   : > { %3862 = vpow2.f32 %v3736_v59  ;;  %v797_v25 = vmul.f32 %v787_v40, %v4797_v19  ;;  %v798_v27 = vmul.f32 %v787_v40, %v4800_v20  ;;  %v799_v53 = vmul.f32 %v787_v40, %v4803_v21 }
  0xc8   : > { %3864 = vpow2.f32 %v3737_v38  ;;  %v800_v5 = vmul.f32 %v787_v40, %v4815_v26  ;;  %v809_v12 = vadd.f32 %v793_v35, %v4833_v37  ;;  %v810_v30 = vadd.f32 %v794_v60, %v7219_v29  ;;  %v7226_v40 = vld [vmem:[#allocation58_spill] sm:$0xff] }
  0xc9   : > { %3866 = vpow2.f32 %v3738_v6  ;;  %v811_v63 = vadd.f32 %v795_v36, %v7220_v31  ;;  %v812_v47 = vadd.f32 %v796_v23, %v7221_v24  ;;  %v813_v59 = vadd.f32 %v797_v25, %v7222_v42  ;;  %v7229_v23 = vld [vmem:[#allocation69_spill] sm:$0xff]  ;;  %v7235_v31 = vld [vmem:[#allocation68_spill] sm:$0xff] }
  0xca   : > { %3868 = vpow2.f32 %v3739_v11  ;;  %v814_v22 = vadd.f32 %v798_v27, %v7223_v28  ;;  %v5085_v38 = vadd.f32 %v799_v53, %v7224_v9  ;;  %v5088_v43 = vadd.f32 %v800_v5, %v7226_v40  ;;  %v7231_v27 = vld [vmem:[#allocation64_spill] sm:$0xff]  ;;  %v7232_v53 = vld [vmem:[#allocation65_spill] sm:$0xff]  ;;  %v7233_v5 = vld [vmem:[#allocation66_spill] sm:$0xff] }
  0xcb   : > { %v5091_v37 = vadd.f32 %v4890_v61, %v809_v12  ;;  %v5094_v6 = vadd.f32 %v4893_v62, %v810_v30  ;;  %v5097_v35 = vadd.f32 %v4896_v0, %v811_v63  ;;  %v5100_v60 = vadd.f32 %v4899_v2, %v812_v47  ;;  %v7234_v12 = vld [vmem:[#allocation67_spill] sm:$0xff] }
  0xcc   : > { %7225 = vst [vmem:[#allocation52_spill] sm:$0xff] %v5085_v38  ;;  %7227 = vst [vmem:[#allocation53_spill] sm:$0xff] %v5088_v43  ;;  %v5103_v11 = vmul.f32 %v4726_v52, %v627_v32  ;;  %v5106_v36 = vadd.f32 %v4902_v33, %v813_v59  ;;  %v5109_v25 = vadd.f32 %v7229_v23, %v814_v22 }
  0xcd   : > { %v5113_v61 = vmul.f32 %v4785_v15, %v5081_v39  ;;  %v3855_v62 = vpop.eup %3854  ;;  %v1759_v0 = vmax.f32 %v5091_v37, %v7231_v27  ;;  %v1766_v2 = vmax.f32 %v5094_v6, %v7232_v53  ;;  %v1773_v32 = vmax.f32 %v5097_v35, %v7233_v5 }
  0xce   : > { %7228 = vst [vmem:[#allocation54_spill] sm:$0xff] %v5106_v36  ;;  %7230 = vst [vmem:[#allocation55_spill] sm:$0xff] %v5109_v25  ;;  %v1780_v33 = vmax.f32 %v5100_v60, %v7234_v12  ;;  %v3857_v29 = vpop.eup %3856  ;;  %v1375_v30 = vadd.f32 1.0, %v3855_v62  ;;  %v1787_v63 = vmax.f32 %v5106_v36, %v7235_v31  ;;  %v598_v24 = vmul.f32 %v4788_v16, %v5081_v39 }
  0xcf   : > { %v5129_v47 = vmul.f32 %v4791_v17, %v5081_v39  ;;  %v3859_v42 = vpop.eup %3858  ;;  %v1376_v59 = vadd.f32 1.0, %v3857_v29  ;;  %v1760_v28 = vrot.slane %v1759_v0, 4  ;;  %v1767_v22 = vrot.slane %v1766_v2, 4 }
  0xd0   : > { %v1774_v9 = vrot.slane %v1773_v32, 4  ;;  %v3861_v40 = vpop.eup %3860  ;;  %v1377_v23 = vadd.f32 1.0, %v3859_v42  ;;  %3870 = vrcp.f32 %v1375_v30  ;;  %v1781_v25 = vrot.slane %v1780_v33, 4 }
  0xd1   : > { %v1788_v62 = vrot.slane %v1787_v63, 4  ;;  %v3863_v12 = vpop.eup %3862  ;;  %v1378_v5 = vadd.f32 1.0, %v3861_v40  ;;  %3872 = vrcp.f32 %v1376_v59  ;;  %v1761_v31 = vmax.f32 %v1759_v0, %v1760_v28  ;;  %v7240_v28 = vld [vmem:[#allocation89_spill] sm:$0xff] }
  0xd2   : > { %v1768_v36 = vmax.f32 %v1766_v2, %v1767_v22  ;;  %v3865_v43 = vpop.eup %3864  ;;  %v1379_v38 = vadd.f32 1.0, %v3863_v12  ;;  %3874 = vrcp.f32 %v1377_v23  ;;  %v1775_v54 = vmax.f32 %v1773_v32, %v1774_v9 }
  0xd3   : > { %v1782_v34 = vmax.f32 %v1780_v33, %v1781_v25  ;;  %v3867_v58 = vpop.eup %3866  ;;  %v1380_v29 = vadd.f32 1.0, %v3865_v43  ;;  %3876 = vrcp.f32 %v1378_v5  ;;  %v1762_v7 = vrot.slane %v1761_v31, 2 }
  0xd4   : > { %v1769_v41 = vrot.slane %v1768_v36, 2  ;;  %v3869_v8 = vpop.eup %3868  ;;  %v1381_v42 = vadd.f32 1.0, %v3867_v58  ;;  %3878 = vrcp.f32 %v1379_v38  ;;  %v1776_v30 = vrot.slane %v1775_v54, 2 }
  0xd5   : > { %v1783_v52 = vrot.slane %v1782_v34, 2  ;;  %v1382_v51 = vadd.f32 1.0, %v3869_v8  ;;  %3880 = vrcp.f32 %v1380_v29  ;;  %v1763_v59 = vmax.f32 %v1761_v31, %v1762_v7  ;;  %v7239_v31 = vld [vmem:[#allocation88_spill] sm:$0xff] }
  0xd6   : > { %v1770_v0 = vmax.f32 %v1768_v36, %v1769_v41  ;;  %3882 = vrcp.f32 %v1381_v42  ;;  %v1777_v2 = vmax.f32 %v1775_v54, %v1776_v30  ;;  %v600_v25 = vmul.f32 %v4794_v18, %v5081_v39  ;;  %v7248_v42 = vld [vmem:[#allocation91_spill] sm:$0xff] }
  0xd7   : > { %v1784_v12 = vmax.f32 %v1782_v34, %v1783_v52  ;;  %3884 = vrcp.f32 %v1382_v51  ;;  %v1764_v43 = vrot.slane %v1763_v59, 1  ;;  %v5133_v32 = vmax.f32 %v1787_v63, %v1788_v62 }
  0xd8   : > { %v1771_v5 = vrot.slane %v1770_v0, 1  ;;  %v1778_v33 = vrot.slane %v1777_v2, 1  ;;  %v601_v38 = vmul.f32 %v4797_v19, %v5081_v39  ;;  %v602_v7 = vmul.f32 %v4800_v20, %v5081_v39 }
  0xd9   : > { %7236 = vst [vmem:[#allocation56_spill] sm:$0xff] %v5133_v32  ;;  %v1785_v58 = vrot.slane %v1784_v12, 1  ;;  %v1765_v8 = vmax.f32 %v1763_v59, %v1764_v43  ;;  %v603_v52 = vmul.f32 %v4803_v21, %v5081_v39  ;;  %v604_v51 = vmul.f32 %v4815_v26, %v5081_v39 }
  0xda   : > { %v1772_v41 = vmax.f32 %v1770_v0, %v1771_v5  ;;  %v5143_v34 = vpop.eup %3870  ;;  %v5145_v54 = vmax.f32 %v1777_v2, %v1778_v33  ;;  %v613_v63 = vadd.f32 %v5113_v61, %v7239_v31  ;;  %v614_v22 = vadd.f32 %v598_v24, %v7240_v28  ;;  %v7249_v2 = vld [vmem:[#allocation92_spill] sm:$0xff]  ;;  %v7252_v31 = vld [vmem:[#allocation95_spill] sm:$0xff] }
  0xdb   : > { %v5147_v36 = vmax.f32 %v1784_v12, %v1785_v58  ;;  %v5152_v9 = vpop.eup %3872  ;;  %v5155_v40 = vsub.f32 %v5091_v37, %v1765_v8  ;;  %v5161_v39 = vsub.f32 %v7231_v27, %v1765_v8  ;;  %v7247_v37 = vld [vmem:[#allocation90_spill] sm:$0xff]  ;;  %v616_v30 = vadd.f32 %v600_v25, %v7248_v42  ;;  %v7250_v25 = vld [vmem:[#allocation93_spill] sm:$0xff] }
  0xdc   : > { %7237 = vst [vmem:[#allocation57_spill] sm:$0xff] %v5145_v54  ;;  %v5158_v23 = vsub.f32 %v5094_v6, %v1772_v41  ;;  %v5164_v62 = vsub.f32 %v7232_v53, %v1772_v41  ;;  %v5166_v29 = vpop.eup %3874  ;;  %v5170_v61 = vsub.f32 %v5097_v35, %v5145_v54  ;;  %v615_v6 = vadd.f32 %v5129_v47, %v7247_v37  ;;  %v7251_v8 = vld [vmem:[#allocation94_spill] sm:$0xff] }
  0xdd   : > { %7238 = vst [vmem:[#allocation58_spill] sm:$0xff] %v5147_v36  ;;  %7241 = vst [vmem:[#allocation69_spill] sm:$0xff] %v5155_v40  ;;  %v5174_v24 = vsub.f32 %v5100_v60, %v5147_v36  ;;  %v5179_v27 = vpop.eup %3876  ;;  %v1831_v59 = vmul.f32 1.442695, %v5155_v40  ;;  %v617_v35 = vadd.f32 %v601_v38, %v7249_v2  ;;  %v1847_v47 = vmul.f32 1.442695, %v5161_v39 }
  0xde   : > { %7242 = vst [vmem:[#allocation64_spill] sm:$0xff] %v5158_v23  ;;  %7243 = vst [vmem:[#allocation65_spill] sm:$0xff] %v5161_v39  ;;  %v1833_v0 = vmul.f32 1.442695, %v5158_v23  ;;  %v5185_v12 = vpop.eup %3878  ;;  %v1835_v60 = vmul.f32 1.442695, %v5170_v61  ;;  %v618_v5 = vadd.f32 %v602_v7, %v7250_v25  ;;  %v619_v41 = vadd.f32 %v603_v52, %v7251_v8  ;;  %v873_v8 = vpop.permute.xlu1 %872 }
  0xdf   : > { %7244 = vst [vmem:[#allocation88_spill] sm:$0xff] %v5164_v62  ;;  %7245 = vst [vmem:[#allocation89_spill] sm:$0xff] %v5170_v61  ;;  %v5189_v43 = vmul.f32 1.442695, %v5174_v24  ;;  %v5193_v33 = vpop.eup %3880  ;;  %v1849_v58 = vmul.f32 1.442695, %v5164_v62  ;;  %v620_v28 = vadd.f32 %v604_v51, %v7252_v31  ;;  %v725_v38 = vadd.f32 %v5048_v13, %v613_v63 }
  0xe0   : > { %7246 = vst [vmem:[#allocation105_spill] sm:$0xff] %v5174_v24  ;;  %v5199_v37 = vpop.eup %3882  ;;  %3886 = vpow2.f32 %v1831_v59  ;;  %v726_v42 = vadd.f32 %v5051_v10, %v614_v22  ;;  %v727_v2 = vadd.f32 %v5054_v57, %v615_v6  ;;  %v728_v53 = vadd.f32 %v5057_v55, %v616_v30 }
  0xe1   : > { %v5204_v7 = vpop.eup %3884  ;;  %3888 = vpow2.f32 %v1833_v0  ;;  %v729_v25 = vadd.f32 %v5060_v3, %v617_v35  ;;  %v730_v52 = vadd.f32 %v5063_v56, %v618_v5  ;;  %v731_v51 = vadd.f32 %v5066_v1, %v619_v41  ;;  %v7253_v3 = vld [vmem:[#allocation33_spill] sm:$0xff]  ;;  %v7254_v56 = vld [vmem:[#allocation34_spill] sm:$0xff]  ;;  %v7255_v1 = vld [vmem:[#allocation35_spill] sm:$0xff] }
  0xe2   : > { %3890 = vpow2.f32 %v1835_v60  ;;  %v732_v13 = vadd.f32 %v5103_v11, %v620_v28  ;;  %v3740_v63 = vmul.f32 -1.442695, %v725_v38  ;;  %v3741_v59 = vmul.f32 -1.442695, %v726_v42  ;;  %v7256_v11 = vld [vmem:[#allocation37_spill] sm:$0xff]  ;;  %v7257_v41 = vld [vmem:[#allocation38_spill] sm:$0xff] }
  0xe3   : > { %3892 = vpow2.f32 %v1847_v47  ;;  %v3742_v10 = vmul.f32 -1.442695, %v727_v2  ;;  %v3743_v57 = vmul.f32 -1.442695, %v728_v53  ;;  %v3744_v22 = vmul.f32 -1.442695, %v729_v25  ;;  %v1027_v25 = vpop.permute.xlu0 %1026 }
  0xe4   : > { %3894 = vpow2.f32 %v1849_v58  ;;  %v3745_v55 = vmul.f32 -1.442695, %v730_v52  ;;  %v3746_v6 = vmul.f32 -1.442695, %v731_v51  ;;  %v3747_v30 = vmul.f32 -1.442695, %v732_v13 }
  0xe5   : > { %3896 = vpow2.f32 %v3740_v63  ;;  %v903_v0 = vmul.f32 %v873_v8, %v7253_v3  ;;  %v904_v35 = vmul.f32 %v873_v8, %v7254_v56  ;;  %v905_v60 = vmul.f32 %v873_v8, %v7255_v1  ;;  %v7258_v47 = vld [vmem:[#allocation39_spill] sm:$0xff]  ;;  %v7259_v53 = vld [vmem:[#allocation40_spill] sm:$0xff] }
  0xe6   : > { %3898 = vpow2.f32 %v3741_v59  ;;  %v906_v5 = vmul.f32 %v873_v8, %v7256_v11  ;;  %v907_v31 = vmul.f32 %v873_v8, %v7257_v41  ;;  %v908_v28 = vmul.f32 %v873_v8, %v7258_v47  ;;  %v7260_v42 = vld [vmem:[#allocation80_spill] sm:$0xff] }
  0xe7   : > { %3900 = vpow2.f32 %v3742_v10  ;;  %v909_v58 = vmul.f32 %v873_v8, %v7259_v53  ;;  %v910_v38 = vmul.f32 %v873_v8, %v4782_v14  ;;  %v981_v2 = vadd.f32 %v7260_v42, %v903_v0 }
  0xe8   : > { %3902 = vpow2.f32 %v3743_v57  ;;  %v982_v52 = vadd.f32 %v7260_v42, %v904_v35  ;;  %v983_v51 = vadd.f32 %v7260_v42, %v905_v60  ;;  %v984_v13 = vadd.f32 %v7260_v42, %v906_v5 }
  0xe9   : > { %3904 = vpow2.f32 %v3744_v22  ;;  %v985_v63 = vadd.f32 %v7260_v42, %v907_v31  ;;  %v986_v59 = vadd.f32 %v7260_v42, %v908_v28  ;;  %v987_v10 = vadd.f32 %v7260_v42, %v909_v58  ;;  %v5235_v31 = vpop.permute.xlu1 %877 }
  0xea   : > { %v5225_v24 = vpop.eup %3886  ;;  %3906 = vpow2.f32 %v3745_v55  ;;  %v988_v8 = vadd.f32 %v7260_v42, %v910_v38  ;;  %v1053_v57 = vmul.f32 %v1027_v25, %v4785_v15  ;;  %v1054_v0 = vmul.f32 %v1027_v25, %v4788_v16 }
  0xeb   : > { %7261 = vst [vmem:[#allocation90_spill] sm:$0xff] %v5225_v24  ;;  %v5230_v35 = vpop.eup %3888  ;;  %3908 = vpow2.f32 %v3746_v6  ;;  %v1055_v22 = vmul.f32 %v1027_v25, %v4791_v17  ;;  %v1056_v60 = vmul.f32 %v1027_v25, %v4794_v18  ;;  %v1057_v5 = vmul.f32 %v1027_v25, %v4797_v19 }
  0xec   : > { %7262 = vst [vmem:[#allocation91_spill] sm:$0xff] %v5230_v35  ;;  %v5237_v28 = vpop.eup %3890  ;;  %3910 = vpow2.f32 %v3747_v30  ;;  %v1058_v55 = vmul.f32 %v1027_v25, %v4800_v20  ;;  %v1059_v58 = vmul.f32 %v1027_v25, %v4803_v21  ;;  %v1060_v38 = vmul.f32 %v1027_v25, %v4815_v26 }
  0xed   : > { %7263 = vst [vmem:[#allocation92_spill] sm:$0xff] %v5237_v28  ;;  %v5242_v42 = vpop.eup %3892  ;;  %3912 = vpow2.f32 %v5189_v43  ;;  %v5245_v6 = vadd.f32 %v1053_v57, %v981_v2  ;;  %v5247_v61 = vadd.f32 %v1054_v0, %v982_v52  ;;  %v5249_v62 = vadd.f32 %v1055_v22, %v983_v51 }
  0xee   : > { %7264 = vst [vmem:[#allocation93_spill] sm:$0xff] %v5242_v42  ;;  %v5251_v39 = vpop.eup %3894  ;;  %v1863_v30 = vadd.f32 %v5242_v42, %v5225_v24  ;;  %v5255_v28 = vadd.f32 %v1056_v60, %v984_v13  ;;  %v5257_v36 = vadd.f32 %v1058_v55, %v986_v59  ;;  %v5259_v25 = vadd.f32 %v1059_v58, %v987_v10 }
  0xef   : > { %7265 = vst [vmem:[#allocation94_spill] sm:$0xff] %v5245_v6  ;;  %7266 = vst [vmem:[#allocation95_spill] sm:$0xff] %v5247_v61  ;;  %v3897_v54 = vpop.eup %3896  ;;  %v1870_v43 = vadd.f32 %v5251_v39, %v5230_v35  ;;  %v5263_v2 = vadd.f32 %v1057_v5, %v985_v63  ;;  %v5265_v52 = vadd.f32 %v1060_v38, %v988_v8 }
  0xf0   : > { %7267 = vst [vmem:[#allocation80_spill] sm:$0xff] %v5249_v62  ;;  %7268 = vst [vmem:[#allocation106_spill] sm:$0xff] %v5251_v39  ;;  %v5269_v51 = vmul.f32 %v5235_v31, %v7253_v3  ;;  %v3899_v57 = vpop.eup %3898  ;;  %v1864_v0 = vrot.slane %v1863_v30, 4  ;;  %v1383_v13 = vadd.f32 1.0, %v3897_v54  ;;  %v5273_v59 = vmul.f32 %v5235_v31, %v7254_v56  ;;  %v888_v54 = vpop.permute.xlu1 %887 }
  0xf1   : > { %7269 = vst [vmem:[#allocation107_spill] sm:$0xff] %v5255_v28  ;;  %7270 = vst [vmem:[#allocation108_spill] sm:$0xff] %v5257_v36  ;;  %v5277_v10 = vmul.f32 %v5235_v31, %v7255_v1  ;;  %v3901_v22 = vpop.eup %3900  ;;  %v1871_v63 = vrot.slane %v1870_v43, 4  ;;  %v1384_v60 = vadd.f32 1.0, %v3899_v57  ;;  %v5281_v8 = vmul.f32 %v5235_v31, %v7256_v11 }
  0xf2   : > { %7271 = vst [vmem:[#allocation109_spill] sm:$0xff] %v5259_v25  ;;  %7272 = vst [vmem:[#allocation110_spill] sm:$0xff] %v5263_v2  ;;  %v5285_v5 = vmul.f32 %v5235_v31, %v7257_v41  ;;  %v3903_v55 = vpop.eup %3902  ;;  %v1865_v58 = vadd.f32 %v1864_v0, %v1863_v30  ;;  %v1385_v38 = vadd.f32 1.0, %v3901_v22  ;;  %3914 = vrcp.f32 %v1383_v13 }
  0xf3   : > { %7273 = vst [vmem:[#allocation111_spill] sm:$0xff] %v5265_v52  ;;  %v5289_v39 = vmul.f32 %v5235_v31, %v7258_v47  ;;  %v3905_v42 = vpop.eup %3904  ;;  %v1872_v35 = vadd.f32 %v1871_v63, %v1870_v43  ;;  %v1386_v57 = vadd.f32 1.0, %v3903_v55  ;;  %3916 = vrcp.f32 %v1384_v60 }
  0xf4   : > { %v5293_v24 = vmul.f32 %v5235_v31, %v7259_v53  ;;  %v3907_v32 = vpop.eup %3906  ;;  %v1866_v52 = vrot.slane %v1865_v58, 2  ;;  %v1387_v25 = vadd.f32 1.0, %v3905_v42  ;;  %3918 = vrcp.f32 %v1385_v38 }
  0xf5   : > { %v927_v30 = vmul.f32 %v888_v54, %v7253_v3  ;;  %v3909_v0 = vpop.eup %3908  ;;  %v1873_v13 = vrot.slane %v1872_v35, 2  ;;  %v1388_v22 = vadd.f32 1.0, %v3907_v32  ;;  %3920 = vrcp.f32 %v1386_v57 }
  0xf6   : > { %v928_v36 = vmul.f32 %v888_v54, %v7254_v56  ;;  %v3911_v2 = vpop.eup %3910  ;;  %v1867_v43 = vadd.f32 %v1866_v52, %v1865_v58  ;;  %v1389_v63 = vadd.f32 1.0, %v3909_v0  ;;  %3922 = vrcp.f32 %v1387_v25  ;;  %v946_v58 = vpop.permute.xlu1 %945 }
  0xf7   : > { %v929_v60 = vmul.f32 %v888_v54, %v7255_v1  ;;  %v5298_v55 = vpop.eup %3912  ;;  %v1874_v28 = vadd.f32 %v1873_v13, %v1872_v35  ;;  %v1390_v62 = vadd.f32 1.0, %v3911_v2  ;;  %3924 = vrcp.f32 %v1388_v22 }
  0xf8   : > { %7274 = vst [vmem:[#allocation112_spill] sm:$0xff] %v5298_v55  ;;  %v930_v42 = vmul.f32 %v888_v54, %v7256_v11  ;;  %v1868_v38 = vrot.slane %v1867_v43, 1  ;;  %3926 = vrcp.f32 %v1389_v63  ;;  %v931_v32 = vmul.f32 %v888_v54, %v7257_v41  ;;  %v7289_v11 = vld [vmem:[#allocation78_spill] sm:$0xff] }
  0xf9   : > { %v932_v57 = vmul.f32 %v888_v54, %v7258_v47  ;;  %v1875_v56 = vrot.slane %v1874_v28, 1  ;;  %3928 = vrcp.f32 %v1390_v62  ;;  %v933_v52 = vmul.f32 %v888_v54, %v7259_v53  ;;  %v7286_v53 = vld [vmem:[#allocation75_spill] sm:$0xff] }
  0xfa   : > { %v934_v25 = vmul.f32 %v888_v54, %v4782_v14  ;;  %v1869_v0 = vadd.f32 %v1868_v38, %v1867_v43  ;;  %v5306_v35 = vadd.f32 %v5033_v4, %v927_v30  ;;  %v5309_v2 = vadd.f32 %v5033_v4, %v928_v36 }
  0xfb   : > { %v5312_v13 = vadd.f32 %v5033_v4, %v929_v60  ;;  %v1876_v22 = vadd.f32 %v1875_v56, %v1874_v28  ;;  %v5315_v63 = vadd.f32 %v5033_v4, %v930_v42  ;;  %v5318_v62 = vadd.f32 %v5033_v4, %v931_v32  ;;  %v7283_v42 = vld [vmem:[#allocation72_spill] sm:$0xff]  ;;  %v7284_v32 = vld [vmem:[#allocation73_spill] sm:$0xff] }
  0xfc   : > { %7275 = vst [vmem:[#allocation113_spill] sm:$0xff] %v5306_v35  ;;  %7276 = vst [vmem:[#allocation114_spill] sm:$0xff] %v5309_v2  ;;  %v5321_v54 = vadd.f32 %v5033_v4, %v932_v57  ;;  %v3915_v43 = vpop.eup %3914  ;;  %3930 = vrcp.f32 %v1869_v0  ;;  %v5325_v30 = vmul.f32 %v5235_v31, %v4782_v14  ;;  %v5328_v36 = vadd.f32 %v5033_v4, %v933_v52  ;;  %v7285_v14 = vld [vmem:[#allocation74_spill] sm:$0xff] }
  0xfd   : > { %7277 = vst [vmem:[#allocation115_spill] sm:$0xff] %v5312_v13  ;;  %7278 = vst [vmem:[#allocation116_spill] sm:$0xff] %v5315_v63  ;;  %v5331_v56 = vadd.f32 %v5033_v4, %v934_v25  ;;  %v3917_v28 = vpop.eup %3916  ;;  %3932 = vrcp.f32 %v1876_v22  ;;  %v1975_v60 = vadd.f32 %v3915_v43, %v5143_v34  ;;  %v5335_v38 = vadd.f32 %v946_v58, %v7283_v42  ;;  %v7287_v43 = vld [vmem:[#allocation76_spill] sm:$0xff] }
  0xfe   : > { %7279 = vst [vmem:[#allocation117_spill] sm:$0xff] %v5318_v62  ;;  %7280 = vst [vmem:[#allocation118_spill] sm:$0xff] %v5321_v54  ;;  %v5338_v57 = vadd.f32 %v946_v58, %v7284_v32  ;;  %v3919_v55 = vpop.eup %3918  ;;  %3934 = vlog2.f32 %v1869_v0  ;;  %v1982_v31 = vadd.f32 %v3917_v28, %v5152_v9  ;;  %v5342_v52 = vadd.f32 %v946_v58, %v7285_v14  ;;  %v5351_v32 = vpop.permute.xlu1 %955  ;;  %v7288_v28 = vld [vmem:[#allocation77_spill] sm:$0xff] }
  0xff   : > { %7281 = vst [vmem:[#allocation119_spill] sm:$0xff] %v5328_v36  ;;  %7282 = vst [vmem:[#allocation120_spill] sm:$0xff] %v5331_v56  ;;  %v5345_v4 = vadd.f32 %v946_v58, %v7286_v53  ;;  %v3921_v25 = vpop.eup %3920  ;;  %3936 = vlog2.f32 %v1876_v22  ;;  %v1976_v47 = vrot.slane %v1975_v60, 4  ;;  %v1989_v34 = vadd.f32 %v3919_v55, %v5166_v29  ;;  %v7290_v55 = vld [vmem:[#allocation79_spill] sm:$0xff] }
 0x100   : > { %v5349_v42 = vadd.f32 %v946_v58, %v7287_v43  ;;  %v3923_v41 = vpop.eup %3922  ;;  %v1983_v0 = vrot.slane %v1982_v31, 4  ;;  %v1996_v9 = vadd.f32 %v3921_v25, %v5179_v27  ;;  %v5355_v14 = vadd.f32 %v946_v58, %v7288_v28 }
 0x101   : > { %v5358_v53 = vadd.f32 %v946_v58, %v7289_v11  ;;  %v3925_v1 = vpop.eup %3924  ;;  %v1977_v22 = vadd.f32 %v1976_v47, %v1975_v60  ;;  %v1990_v3 = vrot.slane %v1989_v34, 4  ;;  %v2003_v29 = vadd.f32 %v3923_v41, %v5185_v12 }
 0x102   : > { %v5362_v43 = vadd.f32 %v946_v58, %v7290_v55  ;;  %v3927_v61 = vpop.eup %3926  ;;  %v1984_v6 = vadd.f32 %v1983_v0, %v1982_v31  ;;  %v1997_v56 = vrot.slane %v1996_v9, 4  ;;  %v2010_v36 = vadd.f32 %v3925_v1, %v5193_v33 }
 0x103   : > { %v5367_v27 = vadd.f32 %v5351_v32, %v5269_v51  ;;  %v3929_v25 = vpop.eup %3928  ;;  %v1978_v11 = vrot.slane %v1977_v22, 2  ;;  %v1991_v28 = vadd.f32 %v1990_v3, %v1989_v34  ;;  %v2004_v54 = vrot.slane %v2003_v29, 4 }
 0x104   : > { %v2017_v47 = vadd.f32 %v3927_v61, %v5199_v37  ;;  %v1985_v60 = vrot.slane %v1984_v6, 2  ;;  %v1998_v12 = vadd.f32 %v1997_v56, %v1996_v9  ;;  %v2011_v41 = vrot.slane %v2010_v36, 4 }
 0x105   : > { %v2024_v58 = vadd.f32 %v3929_v25, %v5204_v7  ;;  %v1979_v55 = vadd.f32 %v1978_v11, %v1977_v22  ;;  %v1992_v31 = vrot.slane %v1991_v28, 2  ;;  %v2005_v0 = vadd.f32 %v2004_v54, %v2003_v29 }
 0x106   : > { %v2018_v62 = vrot.slane %v2017_v47, 4  ;;  %v5371_v33 = vpop.eup %3930  ;;  %v1986_v1 = vadd.f32 %v1985_v60, %v1984_v6  ;;  %v1999_v51 = vrot.slane %v1998_v12, 2  ;;  %v2012_v63 = vadd.f32 %v2011_v41, %v2010_v36 }
 0x107   : > { %7291 = vst [vmem:[#allocation72_spill] sm:$0xff] %v5371_v33  ;;  %v2025_v13 = vrot.slane %v2024_v58, 4  ;;  %v5373_v2 = vpop.eup %3932  ;;  %v1980_v3 = vrot.slane %v1979_v55, 1  ;;  %v1993_v34 = vadd.f32 %v1992_v31, %v1991_v28  ;;  %v2006_v61 = vrot.slane %v2005_v0, 2 }
 0x108   : > { %7292 = vst [vmem:[#allocation73_spill] sm:$0xff] %v5373_v2  ;;  %v2019_v37 = vadd.f32 %v2018_v62, %v2017_v47  ;;  %v3935_v56 = vpop.eup %3934  ;;  %v1987_v9 = vrot.slane %v1986_v1, 1  ;;  %v2000_v35 = vadd.f32 %v1999_v51, %v1998_v12  ;;  %v2013_v7 = vrot.slane %v2012_v63, 2 }
 0x109   : > { %v2026_v22 = vadd.f32 %v2025_v13, %v2024_v58  ;;  %v3937_v25 = vpop.eup %3936  ;;  %v5375_v54 = vmul.f32 0.6931472, %v3935_v56  ;;  %v1981_v29 = vadd.f32 %v1980_v3, %v1979_v55  ;;  %v1994_v11 = vrot.slane %v1993_v34, 1 }
 0x10a   : > { %v2007_v6 = vadd.f32 %v2006_v61, %v2005_v0  ;;  %v5377_v60 = vmul.f32 0.6931472, %v3937_v25  ;;  %v1988_v36 = vadd.f32 %v1987_v9, %v1986_v1  ;;  %v2001_v41 = vrot.slane %v2000_v35, 1  ;;  %v1023_v61 = vpop.permute.xlu1 %1022 }
 0x10b   : > { %7293 = vst [vmem:[#allocation74_spill] sm:$0xff] %v5375_v54  ;;  %v2014_v2 = vadd.f32 %v2013_v7, %v2012_v63  ;;  %v1995_v62 = vadd.f32 %v1994_v11, %v1993_v34  ;;  %v2020_v31 = vrot.slane %v2019_v37, 2  ;;  %v2027_v51 = vrot.slane %v2026_v22, 2 }
 0x10c   : > { %7294 = vst [vmem:[#allocation75_spill] sm:$0xff] %v5377_v60  ;;  %v2008_v47 = vrot.slane %v2007_v6, 1  ;;  %v2002_v12 = vadd.f32 %v2001_v41, %v2000_v35  ;;  %3938 = vtanh.f32 %v1981_v29  ;;  %v990_v0 = vadd.f32 %v5351_v32, %v5273_v59 }
 0x10d   : > { %v2015_v58 = vrot.slane %v2014_v2, 1  ;;  %v2021_v3 = vadd.f32 %v2020_v31, %v2019_v37  ;;  %v2028_v63 = vadd.f32 %v2027_v51, %v2026_v22  ;;  %3940 = vtanh.f32 %v1988_v36 }
 0x10e   : > { %v2009_v55 = vadd.f32 %v2008_v47, %v2007_v6  ;;  %v991_v34 = vadd.f32 %v5351_v32, %v5277_v10  ;;  %3942 = vtanh.f32 %v1995_v62  ;;  %v992_v35 = vadd.f32 %v5351_v32, %v5281_v8 }
 0x10f   : > { %v2016_v1 = vadd.f32 %v2015_v58, %v2014_v2  ;;  %v2022_v56 = vrot.slane %v2021_v3, 1  ;;  %v993_v9 = vadd.f32 %v5351_v32, %v5285_v5  ;;  %v2029_v37 = vrot.slane %v2028_v63, 1  ;;  %v1031_v58 = vpop.permute.xlu1 %1030 }
 0x110   : > { %3944 = vtanh.f32 %v2002_v12  ;;  %v994_v59 = vadd.f32 %v5351_v32, %v5289_v39  ;;  %v995_v2 = vadd.f32 %v5351_v32, %v5293_v24  ;;  %v1045_v10 = vmul.f32 %v1023_v61, %v4785_v15  ;;  %v1043_v24 = vpop.permute.xlu0 %1042 }
 0x111   : > { %v2023_v7 = vadd.f32 %v2022_v56, %v2021_v3  ;;  %3946 = vtanh.f32 %v2009_v55  ;;  %v1046_v22 = vmul.f32 %v1023_v61, %v4788_v16  ;;  %v2030_v25 = vadd.f32 %v2029_v37, %v2028_v63 }
 0x112   : > { %3948 = vtanh.f32 %v2016_v1  ;;  %v1047_v8 = vmul.f32 %v1023_v61, %v4791_v17  ;;  %v1048_v5 = vmul.f32 %v1023_v61, %v4794_v18  ;;  %v1049_v29 = vmul.f32 %v1023_v61, %v4797_v19 }
 0x113   : > { %3950 = vtanh.f32 %v2023_v7  ;;  %v1050_v39 = vmul.f32 %v1023_v61, %v4800_v20  ;;  %v1051_v11 = vmul.f32 %v1023_v61, %v4803_v21  ;;  %v996_v6 = vadd.f32 %v5351_v32, %v5325_v30 }
 0x114   : > { %3952 = vtanh.f32 %v2030_v25  ;;  %v1052_v36 = vmul.f32 %v1023_v61, %v4815_v26  ;;  %v5406_v41 = vadd.f32 %v1045_v10, %v5335_v38  ;;  %v5409_v62 = vadd.f32 %v1046_v22, %v5338_v57  ;;  %v1151_v10 = vpop.permute.xlu0 %1150 }
 0x115   : > { %v5412_v47 = vadd.f32 %v1047_v8, %v5342_v52  ;;  %v5415_v31 = vadd.f32 %v1048_v5, %v5345_v4  ;;  %v5418_v12 = vadd.f32 %v1049_v29, %v5349_v42  ;;  %v5421_v30 = vadd.f32 %v1050_v39, %v5355_v14 }
 0x116   : > { %v5424_v32 = vadd.f32 %v1051_v11, %v5358_v53  ;;  %v5427_v38 = vadd.f32 %v1052_v36, %v5362_v43  ;;  %v5430_v57 = vmul.f32 %v1043_v24, %v4785_v15  ;;  %v5432_v52 = vpop.eup %3938  ;;  %v5435_v4 = vmul.f32 %v1043_v24, %v4788_v16 }
 0x117   : > { %7296 = vst [vmem:[#allocation77_spill] sm:$0xff] %v5432_v52  ;;  %v5438_v42 = vmul.f32 %v1043_v24, %v4791_v17  ;;  %v5441_v14 = vmul.f32 %v1043_v24, %v4794_v18  ;;  %v5444_v53 = vmul.f32 %v1043_v24, %v4797_v19  ;;  %v5446_v51 = vpop.eup %3940  ;;  %v5449_v43 = vmul.f32 %v1043_v24, %v4800_v20 }
 0x118   : > { %7295 = vst [vmem:[#allocation76_spill] sm:$0xff] %v5427_v38  ;;  %7297 = vst [vmem:[#allocation78_spill] sm:$0xff] %v5446_v51  ;;  %v5452_v55 = vmul.f32 %v1043_v24, %v4803_v21  ;;  %v1061_v3 = vmul.f32 %v1031_v58, %v4785_v15  ;;  %v1062_v1 = vmul.f32 %v1031_v58, %v4788_v16  ;;  %v5456_v63 = vpop.eup %3942 }
 0x119   : > { %7298 = vst [vmem:[#allocation79_spill] sm:$0xff] %v5456_v63  ;;  %v1063_v61 = vmul.f32 %v1031_v58, %v4791_v17  ;;  %v1064_v56 = vmul.f32 %v1031_v58, %v4794_v18  ;;  %v1065_v37 = vmul.f32 %v1031_v58, %v4797_v19  ;;  %v1066_v7 = vmul.f32 %v1031_v58, %v4800_v20 }
 0x11a   : > { %v5462_v22 = vpop.eup %3944  ;;  %v1067_v25 = vmul.f32 %v1031_v58, %v4803_v21  ;;  %v1068_v8 = vmul.f32 %v1031_v58, %v4815_v26  ;;  %v1109_v5 = vadd.f32 %v1061_v3, %v5367_v27  ;;  %v1110_v29 = vadd.f32 %v1062_v1, %v990_v0 }
 0x11b   : > { %7299 = vst [vmem:[#allocation121_spill] sm:$0xff] %v5462_v22  ;;  %v5467_v39 = vpop.eup %3946  ;;  %v1111_v11 = vadd.f32 %v1063_v61, %v991_v34  ;;  %v1112_v36 = vadd.f32 %v1064_v56, %v992_v35  ;;  %v1113_v13 = vadd.f32 %v1065_v37, %v993_v9  ;;  %v1114_v28 = vadd.f32 %v1066_v7, %v994_v59  ;;  %v7304_v9 = vld [vmem:[#allocation16_spill] sm:$0xff]  ;;  %v1035_v61 = vpop.permute.xlu1 %1034 }
 0x11c   : > { %7300 = vst [vmem:[#allocation122_spill] sm:$0xff] %v5467_v39  ;;  %v5469_v23 = vpop.eup %3948  ;;  %v1115_v40 = vadd.f32 %v1067_v25, %v995_v2  ;;  %v1116_v60 = vadd.f32 %v1068_v8, %v996_v6  ;;  %v1181_v54 = vmul.f32 %v1151_v10, %v4705_v44  ;;  %v1182_v33 = vmul.f32 %v1151_v10, %v4708_v45  ;;  %v7305_v2 = vld [vmem:[#allocation17_spill] sm:$0xff] }
 0x11d   : > { %7301 = vst [vmem:[#allocation123_spill] sm:$0xff] %v5469_v23  ;;  %v5473_v22 = vpop.eup %3950  ;;  %v1183_v58 = vmul.f32 %v1151_v10, %v4711_v46  ;;  %v1184_v27 = vmul.f32 %v1151_v10, %v4714_v48  ;;  %v1185_v0 = vmul.f32 %v1151_v10, %v4717_v49  ;;  %v1186_v34 = vmul.f32 %v1151_v10, %v4720_v50 }
 0x11e   : > { %7302 = vst [vmem:[#allocation124_spill] sm:$0xff] %v5473_v22  ;;  %v5479_v35 = vpop.eup %3952  ;;  %v1187_v59 = vmul.f32 %v1151_v10, %v7304_v9  ;;  %v1188_v6 = vmul.f32 %v1151_v10, %v7305_v2  ;;  %v1229_v3 = vadd.f32 %v1181_v54, %v1109_v5  ;;  %v1230_v1 = vadd.f32 %v1182_v33, %v1110_v29  ;;  %v7306_v29 = vld [vmem:[#allocation96_spill] sm:$0xff] }
 0x11f   : > { %7303 = vst [vmem:[#allocation125_spill] sm:$0xff] %v5479_v35  ;;  %v1231_v56 = vadd.f32 %v1183_v58, %v1111_v11  ;;  %v1232_v37 = vadd.f32 %v1184_v27, %v1112_v36  ;;  %v1233_v7 = vadd.f32 %v1185_v0, %v1113_v13  ;;  %v1234_v25 = vadd.f32 %v1186_v34, %v1114_v28  ;;  %v7307_v11 = vld [vmem:[#allocation97_spill] sm:$0xff]  ;;  %v7308_v58 = vld [vmem:[#allocation98_spill] sm:$0xff]  ;;  %v7309_v27 = vld [vmem:[#allocation99_spill] sm:$0xff] }
 0x120   : > { %v1092_v8 = vmul.f32 %v1043_v24, %v4815_v26  ;;  %v1235_v22 = vadd.f32 %v1187_v59, %v1115_v40  ;;  %v3764_v23 = vmul.f32 -1.442695, %v1229_v3  ;;  %v3765_v39 = vmul.f32 -1.442695, %v1230_v1  ;;  %v7310_v34 = vld [vmem:[#allocation100_spill] sm:$0xff]  ;;  %v7316_v1 = vld [vmem:[#allocation82_spill] sm:$0xff] }
 0x121   : > { %v1236_v63 = vadd.f32 %v1188_v6, %v1116_v60  ;;  %v3766_v51 = vmul.f32 -1.442695, %v1231_v56  ;;  %v3767_v52 = vmul.f32 -1.442695, %v1232_v37  ;;  %v1069_v35 = vmul.f32 %v1035_v61, %v4785_v15  ;;  %v7317_v56 = vld [vmem:[#allocation83_spill] sm:$0xff] }
 0x122   : > { %3954 = vpow2.f32 %v3764_v23  ;;  %v3768_v38 = vmul.f32 -1.442695, %v1233_v7  ;;  %v3769_v10 = vmul.f32 -1.442695, %v1234_v25  ;;  %v3770_v54 = vmul.f32 -1.442695, %v1235_v22 }
 0x123   : > { %3956 = vpow2.f32 %v3765_v39  ;;  %v1070_v33 = vmul.f32 %v1035_v61, %v4788_v16  ;;  %v1071_v13 = vmul.f32 %v1035_v61, %v4791_v17  ;;  %v1072_v28 = vmul.f32 %v1035_v61, %v4794_v18  ;;  %v971_v39 = vpop.permute.xlu1 %970  ;;  %v7318_v7 = vld [vmem:[#allocation84_spill] sm:$0xff] }
 0x124   : > { %3958 = vpow2.f32 %v3766_v51  ;;  %v1073_v40 = vmul.f32 %v1035_v61, %v4797_v19  ;;  %v1074_v60 = vmul.f32 %v1035_v61, %v4800_v20  ;;  %v1075_v24 = vmul.f32 %v1035_v61, %v4803_v21 }
 0x125   : > { %3960 = vpow2.f32 %v3767_v52  ;;  %v3771_v5 = vmul.f32 -1.442695, %v1236_v63  ;;  %v1076_v23 = vmul.f32 %v1035_v61, %v4815_v26  ;;  %v5493_v22 = vadd.f32 %v1069_v35, %v7306_v29  ;;  %v7311_v63 = vld [vmem:[#allocation101_spill] sm:$0xff]  ;;  %v7313_v35 = vld [vmem:[#allocation102_spill] sm:$0xff] }
 0x126   : > { %3962 = vpow2.f32 %v3768_v38  ;;  %v5496_v36 = vadd.f32 %v1070_v33, %v7307_v11  ;;  %v5499_v51 = vadd.f32 %v1071_v13, %v7308_v58  ;;  %v5502_v0 = vadd.f32 %v1072_v28, %v7309_v27  ;;  %v7315_v38 = vld [vmem:[#allocation81_spill] sm:$0xff]  ;;  %v7320_v13 = vld [vmem:[#allocation86_spill] sm:$0xff]  ;;  %v7322_v11 = vld [vmem:[#allocation104_spill] sm:$0xff] }
 0x127   : > { %3964 = vpow2.f32 %v3769_v10  ;;  %v5505_v52 = vadd.f32 %v1073_v40, %v7310_v34  ;;  %v5508_v59 = vadd.f32 %v1074_v60, %v7311_v63  ;;  %v5511_v6 = vadd.f32 %v1075_v24, %v7313_v35  ;;  %v7319_v10 = vld [vmem:[#allocation85_spill] sm:$0xff]  ;;  %v1163_v40 = vpop.permute.xlu0 %1162  ;;  %v7321_v60 = vld [vmem:[#allocation87_spill] sm:$0xff] }
 0x128   : > { %3966 = vpow2.f32 %v3770_v54  ;;  %v1013_v3 = vadd.f32 %v971_v39, %v7315_v38  ;;  %v1014_v61 = vadd.f32 %v971_v39, %v7316_v1  ;;  %v1015_v37 = vadd.f32 %v971_v39, %v7317_v56 }
 0x129   : > { %7312 = vst [vmem:[#allocation96_spill] sm:$0xff] %v5508_v59  ;;  %7314 = vst [vmem:[#allocation97_spill] sm:$0xff] %v5511_v6  ;;  %3968 = vpow2.f32 %v3771_v5  ;;  %v1016_v25 = vadd.f32 %v971_v39, %v7318_v7  ;;  %v1017_v33 = vadd.f32 %v971_v39, %v7319_v10  ;;  %v1018_v28 = vadd.f32 %v971_v39, %v7320_v13 }
 0x12a   : > { %v1019_v29 = vadd.f32 %v971_v39, %v7321_v60  ;;  %v1020_v24 = vadd.f32 %v971_v39, %v7322_v11  ;;  %v1133_v54 = vadd.f32 %v5430_v57, %v1013_v3  ;;  %v1134_v58 = vadd.f32 %v5435_v4, %v1014_v61 }
 0x12b   : > { %v1135_v27 = vadd.f32 %v5438_v42, %v1015_v37  ;;  %v1136_v34 = vadd.f32 %v5441_v14, %v1016_v25  ;;  %v1137_v5 = vadd.f32 %v5444_v53, %v1017_v33  ;;  %v1138_v63 = vadd.f32 %v5449_v43, %v1018_v28 }
 0x12c   : > { %v3955_v35 = vpop.eup %3954  ;;  %v1139_v38 = vadd.f32 %v5452_v55, %v1019_v29  ;;  %v1140_v1 = vadd.f32 %v1092_v8, %v1020_v24  ;;  %v1205_v56 = vmul.f32 %v1163_v40, %v4705_v44  ;;  %v1206_v39 = vmul.f32 %v1163_v40, %v4708_v45 }
 0x12d   : > { %v3957_v7 = vpop.eup %3956  ;;  %v1583_v57 = vadd.f32 1.0, %v3955_v35  ;;  %v1207_v4 = vmul.f32 %v1163_v40, %v4711_v46  ;;  %v1208_v42 = vmul.f32 %v1163_v40, %v4714_v48  ;;  %v1209_v14 = vmul.f32 %v1163_v40, %v4717_v49 }
 0x12e   : > { %v3959_v3 = vpop.eup %3958  ;;  %v1584_v53 = vadd.f32 1.0, %v3957_v7  ;;  %v1210_v43 = vmul.f32 %v1163_v40, %v4720_v50  ;;  %v1211_v61 = vmul.f32 %v1163_v40, %v7304_v9  ;;  %v1212_v55 = vmul.f32 %v1163_v40, %v7305_v2  ;;  %v7323_v40 = vld [vmem:[#allocation103_spill] sm:$0xff] }
 0x12f   : > { %v3961_v8 = vpop.eup %3960  ;;  %v1585_v37 = vadd.f32 1.0, %v3959_v3  ;;  %3970 = vrcp.f32 %v1583_v57  ;;  %v1253_v25 = vadd.f32 %v1205_v56, %v1133_v54  ;;  %v1254_v10 = vadd.f32 %v1206_v39, %v1134_v58  ;;  %v1039_v54 = vpop.permute.xlu1 %1038 }
 0x130   : > { %v3963_v33 = vpop.eup %3962  ;;  %v1586_v13 = vadd.f32 1.0, %v3961_v8  ;;  %3972 = vrcp.f32 %v1584_v53  ;;  %v1255_v28 = vadd.f32 %v1207_v4, %v1135_v27  ;;  %v1256_v60 = vadd.f32 %v1208_v42, %v1136_v34 }
 0x131   : > { %v3965_v29 = vpop.eup %3964  ;;  %v1587_v11 = vadd.f32 1.0, %v3963_v33  ;;  %3974 = vrcp.f32 %v1585_v37  ;;  %v1257_v24 = vadd.f32 %v1209_v14, %v1137_v5  ;;  %v1258_v35 = vadd.f32 %v1210_v43, %v1138_v63 }
 0x132   : > { %v3967_v7 = vpop.eup %3966  ;;  %v1588_v6 = vadd.f32 1.0, %v3965_v29  ;;  %3976 = vrcp.f32 %v1586_v13  ;;  %v5537_v59 = vadd.f32 %v1076_v23, %v7323_v40  ;;  %v1259_v57 = vadd.f32 %v1211_v61, %v1139_v38  ;;  %v7325_v13 = vld [vmem:[#allocation114_spill] sm:$0xff]  ;;  %v7326_v29 = vld [vmem:[#allocation115_spill] sm:$0xff] }
 0x133   : > { %v3969_v58 = vpop.eup %3968  ;;  %v1589_v56 = vadd.f32 1.0, %v3967_v7  ;;  %3978 = vrcp.f32 %v1587_v11  ;;  %v1260_v27 = vadd.f32 %v1212_v55, %v1140_v1  ;;  %v3788_v34 = vmul.f32 -1.442695, %v1253_v25  ;;  %v1143_v8 = vpop.permute.xlu1 %1142  ;;  %v7328_v7 = vld [vmem:[#allocation117_spill] sm:$0xff] }
 0x134   : > { %v1590_v39 = vadd.f32 1.0, %v3969_v58  ;;  %3980 = vrcp.f32 %v1588_v6  ;;  %v3789_v4 = vmul.f32 -1.442695, %v1254_v10  ;;  %v3790_v5 = vmul.f32 -1.442695, %v1255_v28  ;;  %v7324_v10 = vld [vmem:[#allocation113_spill] sm:$0xff] }
 0x135   : > { %3982 = vrcp.f32 %v1589_v56  ;;  %v3791_v63 = vmul.f32 -1.442695, %v1256_v60  ;;  %v3792_v42 = vmul.f32 -1.442695, %v1257_v24  ;;  %v3793_v14 = vmul.f32 -1.442695, %v1258_v35 }
 0x136   : > { %3984 = vrcp.f32 %v1590_v39  ;;  %v3794_v23 = vmul.f32 -1.442695, %v1259_v57  ;;  %v1077_v38 = vmul.f32 %v1039_v54, %v4785_v15  ;;  %v1078_v3 = vmul.f32 %v1039_v54, %v4788_v16  ;;  %v7327_v24 = vld [vmem:[#allocation116_spill] sm:$0xff]  ;;  %v7330_v56 = vld [vmem:[#allocation119_spill] sm:$0xff] }
 0x137   : > { %3986 = vpow2.f32 %v3788_v34  ;;  %v1079_v6 = vmul.f32 %v1039_v54, %v4791_v17  ;;  %v1080_v1 = vmul.f32 %v1039_v54, %v4794_v18  ;;  %v1081_v53 = vmul.f32 %v1039_v54, %v4797_v19 }
 0x138   : > { %3988 = vpow2.f32 %v3789_v4  ;;  %v3795_v43 = vmul.f32 -1.442695, %v1260_v27  ;;  %v1082_v61 = vmul.f32 %v1039_v54, %v4800_v20  ;;  %v1083_v55 = vmul.f32 %v1039_v54, %v4803_v21 }
 0x139   : > { %v3971_v37 = vpop.eup %3970  ;;  %3990 = vpow2.f32 %v3790_v5  ;;  %v1084_v25 = vmul.f32 %v1039_v54, %v4815_v26  ;;  %v5556_v33 = vadd.f32 %v1077_v38, %v7324_v10  ;;  %v5559_v28 = vadd.f32 %v1078_v3, %v7325_v13  ;;  %v7329_v54 = vld [vmem:[#allocation118_spill] sm:$0xff] }
 0x13a   : > { %v3973_v60 = vpop.eup %3972  ;;  %2209 = vst [vmem:[%s5547_s18 + $0x80] sm:$0xff] %v3971_v37  ;;  %3992 = vpow2.f32 %v3791_v63  ;;  %v5563_v11 = vadd.f32 %v1079_v6, %v7326_v29  ;;  %v5566_v35 = vadd.f32 %v1080_v1, %v7327_v24  ;;  %v5569_v40 = vadd.f32 %v1081_v53, %v7328_v7 }
 0x13b   : > { %v3975_v57 = vpop.eup %3974  ;;  %2210 = vst [vmem:[%s5547_s18 + $0x88] sm:$0xff] %v3973_v60  ;;  %3994 = vpow2.f32 %v3792_v42  ;;  %v5573_v58 = vadd.f32 %v1082_v61, %v7329_v54  ;;  %v5576_v27 = vadd.f32 %v1083_v55, %v7330_v56  ;;  %v1165_v34 = vmul.f32 %v1143_v8, %v4705_v44  ;;  %v1147_v60 = vpop.permute.xlu1 %1146 }
 0x13c   : > { %v3977_v39 = vpop.eup %3976  ;;  %2211 = vst [vmem:[%s5547_s18 + $0x90] sm:$0xff] %v3975_v57  ;;  %3996 = vpow2.f32 %v3793_v14  ;;  %v1166_v4 = vmul.f32 %v1143_v8, %v4708_v45  ;;  %v1167_v5 = vmul.f32 %v1143_v8, %v4711_v46  ;;  %v1168_v63 = vmul.f32 %v1143_v8, %v4714_v48  ;;  %v7332_v57 = vld [vmem:[#allocation76_spill] sm:$0xff] }
 0x13d   : > { %v3979_v42 = vpop.eup %3978  ;;  %2212 = vst [vmem:[%s5547_s18 + $0x98] sm:$0xff] %v3977_v39  ;;  %3998 = vpow2.f32 %v3794_v23  ;;  %v1169_v38 = vmul.f32 %v1143_v8, %v4717_v49  ;;  %v1170_v3 = vmul.f32 %v1143_v8, %v4720_v50  ;;  %v1171_v6 = vmul.f32 %v1143_v8, %v7304_v9 }
 0x13e   : > { %v3981_v1 = vpop.eup %3980  ;;  %2213 = vst [vmem:[%s5547_s18 + $0xa0] sm:$0xff] %v3979_v42  ;;  %4000 = vpow2.f32 %v3795_v43  ;;  %v1172_v14 = vmul.f32 %v1143_v8, %v7305_v2  ;;  %v1213_v53 = vadd.f32 %v1165_v34, %v5406_v41  ;;  %v1214_v61 = vadd.f32 %v1166_v4, %v5409_v62  ;;  %v7331_v43 = vld [vmem:[#allocation120_spill] sm:$0xff] }
 0x13f   : > { %v3983_v55 = vpop.eup %3982  ;;  %2214 = vst [vmem:[%s5547_s18 + $0xa8] sm:$0xff] %v3981_v1  ;;  %v1215_v23 = vadd.f32 %v1167_v5, %v5412_v47  ;;  %v1216_v37 = vadd.f32 %v1168_v63, %v5415_v31  ;;  %v1217_v10 = vadd.f32 %v1169_v38, %v5418_v12  ;;  %v1218_v13 = vadd.f32 %v1170_v3, %v5421_v30 }
 0x140   : > { %v3985_v29 = vpop.eup %3984  ;;  %2215 = vst [vmem:[%s5547_s18 + $0xb0] sm:$0xff] %v3983_v55  ;;  %v5598_v8 = vadd.f32 %v1084_v25, %v7331_v43  ;;  %v1219_v41 = vadd.f32 %v1171_v6, %v5424_v32  ;;  %v3748_v24 = vmul.f32 -1.442695, %v1213_v53  ;;  %v3749_v62 = vmul.f32 -1.442695, %v1214_v61 }
 0x141   : > { %v3987_v7 = vpop.eup %3986  ;;  %2216 = vst [vmem:[%s5547_s18 + $0xb8] sm:$0xff] %v3985_v29  ;;  %v1220_v47 = vadd.f32 %v1172_v14, %v7332_v57  ;;  %v3750_v54 = vmul.f32 -1.442695, %v1215_v23  ;;  %v3751_v31 = vmul.f32 -1.442695, %v1216_v37  ;;  %v1173_v39 = vmul.f32 %v1147_v60, %v4705_v44  ;;  %v7333_v29 = vld [vmem:[#allocation94_spill] sm:$0xff] }
 0x142   : > { %v3752_v56 = vmul.f32 -1.442695, %v1217_v10  ;;  %v3989_v12 = vpop.eup %3988  ;;  %v1607_v34 = vadd.f32 1.0, %v3987_v7  ;;  %4002 = vpow2.f32 %v3748_v24  ;;  %v3753_v30 = vmul.f32 -1.442695, %v1218_v13  ;;  %v7335_v57 = vld [vmem:[#allocation80_spill] sm:$0xff] }
 0x143   : > { %v3991_v4 = vpop.eup %3990  ;;  %v1608_v25 = vadd.f32 1.0, %v3989_v12  ;;  %4004 = vpow2.f32 %v3749_v62  ;;  %v3754_v5 = vmul.f32 -1.442695, %v1219_v41  ;;  %v1174_v32 = vmul.f32 %v1147_v60, %v4708_v45  ;;  %v7334_v41 = vld [vmem:[#allocation95_spill] sm:$0xff] }
 0x144   : > { %v3993_v63 = vpop.eup %3992  ;;  %v1609_v42 = vadd.f32 1.0, %v3991_v4  ;;  %4006 = vrcp.f32 %v1607_v34  ;;  %v1175_v38 = vmul.f32 %v1147_v60, %v4711_v46  ;;  %v1176_v3 = vmul.f32 %v1147_v60, %v4714_v48  ;;  %v7336_v34 = vld [vmem:[#allocation107_spill] sm:$0xff] }
 0x145   : > { %v3995_v6 = vpop.eup %3994  ;;  %v1610_v1 = vadd.f32 1.0, %v3993_v63  ;;  %4008 = vrcp.f32 %v1608_v25  ;;  %v1177_v14 = vmul.f32 %v1147_v60, %v4717_v49  ;;  %v1178_v53 = vmul.f32 %v1147_v60, %v4720_v50  ;;  %v7337_v63 = vld [vmem:[#allocation110_spill] sm:$0xff] }
 0x146   : > { %v3997_v61 = vpop.eup %3996  ;;  %v1611_v55 = vadd.f32 1.0, %v3995_v6  ;;  %4010 = vrcp.f32 %v1609_v42  ;;  %v1179_v23 = vmul.f32 %v1147_v60, %v7304_v9  ;;  %v1180_v37 = vmul.f32 %v1147_v60, %v7305_v2  ;;  %v7338_v6 = vld [vmem:[#allocation108_spill] sm:$0xff] }
 0x147   : > { %v3999_v10 = vpop.eup %3998  ;;  %v1612_v13 = vadd.f32 1.0, %v3997_v61  ;;  %4012 = vrcp.f32 %v1610_v1  ;;  %v1221_v43 = vadd.f32 %v1173_v39, %v7333_v29  ;;  %v1222_v24 = vadd.f32 %v1174_v32, %v7334_v41  ;;  %v7339_v1 = vld [vmem:[#allocation109_spill] sm:$0xff]  ;;  %v7340_v39 = vld [vmem:[#allocation111_spill] sm:$0xff]  ;;  %v1155_v32 = vpop.permute.xlu1 %1154 }
 0x148   : > { %v4001_v62 = vpop.eup %4000  ;;  %v1613_v7 = vadd.f32 1.0, %v3999_v10  ;;  %4014 = vrcp.f32 %v1611_v55  ;;  %v1223_v12 = vadd.f32 %v1175_v38, %v7335_v57  ;;  %v1224_v4 = vadd.f32 %v1176_v3, %v7336_v34 }
 0x149   : > { %v1614_v25 = vadd.f32 1.0, %v4001_v62  ;;  %4016 = vrcp.f32 %v1612_v13  ;;  %v1225_v42 = vadd.f32 %v1177_v14, %v7337_v63  ;;  %v1226_v60 = vadd.f32 %v1178_v53, %v7338_v6 }
 0x14a   : > { %4018 = vrcp.f32 %v1613_v7  ;;  %v3755_v61 = vmul.f32 -1.442695, %v1220_v47  ;;  %v1227_v26 = vadd.f32 %v1179_v23, %v7339_v1  ;;  %v1228_v29 = vadd.f32 %v1180_v37, %v7340_v39  ;;  %v7342_v39 = vld [vmem:[#allocation97_spill] sm:$0xff] }
 0x14b   : > { %4020 = vrcp.f32 %v1614_v25  ;;  %v3756_v10 = vmul.f32 -1.442695, %v1221_v43  ;;  %v3757_v55 = vmul.f32 -1.442695, %v1222_v24  ;;  %v3758_v41 = vmul.f32 -1.442695, %v1223_v12 }
 0x14c   : > { %v4003_v38 = vpop.eup %4002  ;;  %4022 = vpow2.f32 %v3750_v54  ;;  %v5619_v3 = vmul.f32 -1.442695, %v1224_v4  ;;  %v5621_v13 = vmul.f32 -1.442695, %v1225_v42  ;;  %v5623_v14 = vmul.f32 -1.442695, %v1226_v60 }
 0x14d   : > { %v4005_v53 = vpop.eup %4004  ;;  %4024 = vpow2.f32 %v3751_v31  ;;  %v1567_v47 = vadd.f32 1.0, %v4003_v38  ;;  %v5625_v23 = vmul.f32 -1.442695, %v1227_v26  ;;  %v1189_v37 = vmul.f32 %v1155_v32, %v4705_v44  ;;  %v7341_v60 = vld [vmem:[#allocation96_spill] sm:$0xff] }
 0x14e   : > { %v4007_v43 = vpop.eup %4006  ;;  %4026 = vpow2.f32 %v3752_v56  ;;  %v1568_v24 = vadd.f32 1.0, %v4005_v53  ;;  %v1190_v54 = vmul.f32 %v1155_v32, %v4708_v45  ;;  %v1191_v62 = vmul.f32 %v1155_v32, %v4711_v46 }
 0x14f   : > { %v4009_v7 = vpop.eup %4008  ;;  %2233 = vst [vmem:[%s5547_s18 + $0x140] sm:$0xff] %v4007_v43  ;;  %4028 = vpow2.f32 %v3753_v30  ;;  %v1192_v57 = vmul.f32 %v1155_v32, %v4714_v48  ;;  %v1193_v31 = vmul.f32 %v1155_v32, %v4717_v49  ;;  %v1194_v26 = vmul.f32 %v1155_v32, %v4720_v50 }
 0x150   : > { %v4011_v12 = vpop.eup %4010  ;;  %2234 = vst [vmem:[%s5547_s18 + $0x148] sm:$0xff] %v4009_v7  ;;  %4030 = vpow2.f32 %v3754_v5  ;;  %v1195_v56 = vmul.f32 %v1155_v32, %v7304_v9  ;;  %v1196_v34 = vmul.f32 %v1155_v32, %v7305_v2  ;;  %v1237_v4 = vadd.f32 %v1189_v37, %v5493_v22 }
 0x151   : > { %v4013_v25 = vpop.eup %4012  ;;  %2235 = vst [vmem:[%s5547_s18 + $0x150] sm:$0xff] %v4011_v12  ;;  %4032 = vpow2.f32 %v3755_v61  ;;  %v1238_v30 = vadd.f32 %v1190_v54, %v5496_v36  ;;  %v1239_v63 = vadd.f32 %v1191_v62, %v5499_v51  ;;  %v1240_v42 = vadd.f32 %v1192_v57, %v5502_v0  ;;  %v1159_v0 = vpop.permute.xlu1 %1158 }
 0x152   : > { %v4015_v6 = vpop.eup %4014  ;;  %2236 = vst [vmem:[%s5547_s18 + $0x158] sm:$0xff] %v4013_v25  ;;  %4034 = vrcp.f32 %v1567_v47  ;;  %v1241_v5 = vadd.f32 %v1193_v31, %v5505_v52  ;;  %v1242_v1 = vadd.f32 %v1194_v26, %v7341_v60  ;;  %v1243_v22 = vadd.f32 %v1195_v56, %v7342_v39 }
 0x153   : > { %v4017_v32 = vpop.eup %4016  ;;  %2237 = vst [vmem:[%s5547_s18 + $0x160] sm:$0xff] %v4015_v6  ;;  %4036 = vrcp.f32 %v1568_v24  ;;  %v5647_v61 = vmul.f32 -1.442695, %v1228_v29  ;;  %v1244_v36 = vadd.f32 %v1196_v34, %v5537_v59  ;;  %v5650_v51 = vmul.f32 -1.442695, %v1237_v4 }
 0x154   : > { %v4019_v38 = vpop.eup %4018  ;;  %2238 = vst [vmem:[%s5547_s18 + $0x168] sm:$0xff] %v4017_v32  ;;  %4038 = vpow2.f32 %v3756_v10  ;;  %v5653_v52 = vmul.f32 -1.442695, %v1238_v30  ;;  %v5655_v53 = vmul.f32 -1.442695, %v1239_v63  ;;  %v1197_v10 = vmul.f32 %v1159_v0, %v4705_v44 }
 0x155   : > { %v5657_v47 = vmul.f32 -1.442695, %v1240_v42  ;;  %v4021_v37 = vpop.eup %4020  ;;  %2239 = vst [vmem:[%s5547_s18 + $0x170] sm:$0xff] %v4019_v38  ;;  %4040 = vpow2.f32 %v3757_v55  ;;  %v5660_v29 = vmul.f32 -1.442695, %v1241_v5  ;;  %v1198_v54 = vmul.f32 %v1159_v0, %v4708_v45 }
 0x156   : > { %v5662_v43 = vmul.f32 -1.442695, %v1242_v1  ;;  %v5664_v59 = vmul.f32 -1.442695, %v1243_v22  ;;  %v4023_v24 = vpop.eup %4022  ;;  %2240 = vst [vmem:[%s5547_s18 + $0x178] sm:$0xff] %v4021_v37  ;;  %4042 = vpow2.f32 %v3758_v41  ;;  %v1199_v62 = vmul.f32 %v1159_v0, %v4711_v46 }
 0x157   : > { %v4025_v7 = vpop.eup %4024  ;;  %v1569_v57 = vadd.f32 1.0, %v4023_v24  ;;  %4044 = vpow2.f32 %v5619_v3  ;;  %v1200_v55 = vmul.f32 %v1159_v0, %v4714_v48  ;;  %v1201_v31 = vmul.f32 %v1159_v0, %v4717_v49 }
 0x158   : > { %v4027_v26 = vpop.eup %4026  ;;  %v1570_v12 = vadd.f32 1.0, %v4025_v7  ;;  %4046 = vpow2.f32 %v5621_v13  ;;  %v1202_v41 = vmul.f32 %v1159_v0, %v4720_v50  ;;  %v1203_v56 = vmul.f32 %v1159_v0, %v7304_v9 }
 0x159   : > { %v4029_v34 = vpop.eup %4028  ;;  %v1571_v4 = vadd.f32 1.0, %v4027_v26  ;;  %4048 = vrcp.f32 %v1569_v57  ;;  %v1204_v25 = vmul.f32 %v1159_v0, %v7305_v2  ;;  %v1245_v30 = vadd.f32 %v1197_v10, %v5556_v33  ;;  %v7343_v57 = vld [vmem:[#allocation33_spill] sm:$0xff] }
 0x15a   : > { %v4031_v3 = vpop.eup %4030  ;;  %v1572_v63 = vadd.f32 1.0, %v4029_v34  ;;  %4050 = vrcp.f32 %v1570_v12  ;;  %v1246_v42 = vadd.f32 %v1198_v54, %v5559_v28  ;;  %v1247_v6 = vadd.f32 %v1199_v62, %v5563_v11  ;;  %v7344_v12 = vld [vmem:[#allocation34_spill] sm:$0xff]  ;;  %v1277_v34 = vpop.permute.xlu0 %1276 }
 0x15b   : > { %v4033_v13 = vpop.eup %4032  ;;  %v1573_v5 = vadd.f32 1.0, %v4031_v3  ;;  %4052 = vrcp.f32 %v1571_v4  ;;  %v1248_v60 = vadd.f32 %v1200_v55, %v5566_v35  ;;  %v1249_v1 = vadd.f32 %v1201_v31, %v5569_v40  ;;  %v1264_v35 = vpop.permute.xlu1 %1263  ;;  %v7347_v3 = vld [vmem:[#allocation38_spill] sm:$0xff] }
 0x15c   : > { %v4035_v39 = vpop.eup %4034  ;;  %v1574_v22 = vadd.f32 1.0, %v4033_v13  ;;  %4054 = vrcp.f32 %v1572_v63  ;;  %v1250_v33 = vadd.f32 %v1202_v41, %v5573_v58  ;;  %v1251_v32 = vadd.f32 %v1203_v56, %v5576_v27  ;;  %v7345_v41 = vld [vmem:[#allocation35_spill] sm:$0xff] }
 0x15d   : > { %v5684_v0 = vpop.eup %4036  ;;  %4056 = vrcp.f32 %v1573_v5  ;;  %2193 = vst [vmem:[%s5547_s18] sm:$0xff] %v4035_v39  ;;  %v5687_v28 = vmul.f32 -1.442695, %v1244_v36  ;;  %v1252_v11 = vadd.f32 %v1204_v25, %v5598_v8  ;;  %v5690_v38 = vmul.f32 -1.442695, %v1245_v30  ;;  %v7346_v30 = vld [vmem:[#allocation37_spill] sm:$0xff]  ;;  %v7348_v13 = vld [vmem:[#allocation39_spill] sm:$0xff] }
 0x15e   : > { %v4039_v37 = vpop.eup %4038  ;;  %4058 = vrcp.f32 %v1574_v22  ;;  %2194 = vst [vmem:[%s5547_s18 + $0x8] sm:$0xff] %v5684_v0  ;;  %v5694_v40 = vmul.f32 -1.442695, %v1246_v42  ;;  %v5696_v58 = vmul.f32 -1.442695, %v1247_v6  ;;  %v1266_v55 = vmul.f32 %v1264_v35, %v7343_v57  ;;  %v7349_v5 = vld [vmem:[#allocation40_spill] sm:$0xff] }
 0x15f   : > { %v5698_v27 = vmul.f32 -1.442695, %v1248_v60  ;;  %v4041_v24 = vpop.eup %4040  ;;  %4060 = vpow2.f32 %v5623_v14  ;;  %v1575_v36 = vadd.f32 1.0, %v4039_v37  ;;  %v5701_v10 = vmul.f32 -1.442695, %v1249_v1  ;;  %v7350_v22 = vld [vmem:[#allocation41_spill] sm:$0xff]  ;;  %v1289_v37 = vpop.permute.xlu1 %1288 }
 0x160   : > { %v5703_v8 = vmul.f32 -1.442695, %v1250_v33  ;;  %v4043_v54 = vpop.eup %4042  ;;  %4062 = vpow2.f32 %v5625_v23  ;;  %v1576_v62 = vadd.f32 1.0, %v4041_v24  ;;  %v5706_v7 = vmul.f32 -1.442695, %v1251_v32 }
 0x161   : > { %v4045_v31 = vpop.eup %4044  ;;  %4064 = vpow2.f32 %v5647_v61  ;;  %v1577_v26 = vadd.f32 1.0, %v4043_v54  ;;  %v1267_v14 = vmul.f32 %v1264_v35, %v7344_v12  ;;  %v1268_v56 = vmul.f32 %v1264_v35, %v7345_v41 }
 0x162   : > { %v4047_v4 = vpop.eup %4046  ;;  %v1578_v25 = vadd.f32 1.0, %v4045_v31  ;;  %4066 = vrcp.f32 %v1575_v36  ;;  %v1269_v23 = vmul.f32 %v1264_v35, %v7346_v30  ;;  %v1270_v63 = vmul.f32 %v1264_v35, %v7347_v3 }
 0x163   : > { %v4049_v42 = vpop.eup %4048  ;;  %v1579_v6 = vadd.f32 1.0, %v4047_v4  ;;  %4068 = vrcp.f32 %v1576_v62  ;;  %v1271_v61 = vmul.f32 %v1264_v35, %v7348_v13  ;;  %v1272_v60 = vmul.f32 %v1264_v35, %v7349_v5 }
 0x164   : > { %v4051_v1 = vpop.eup %4050  ;;  %2195 = vst [vmem:[%s5547_s18 + $0x10] sm:$0xff] %v4049_v42  ;;  %4070 = vrcp.f32 %v1577_v26  ;;  %v5717_v39 = vmul.f32 -1.442695, %v1252_v11  ;;  %v1273_v33 = vmul.f32 %v1264_v35, %v7350_v22  ;;  %v1279_v32 = vadd.f32 %v1277_v34, %v1266_v55 }
 0x165   : > { %v4053_v24 = vpop.eup %4052  ;;  %2196 = vst [vmem:[%s5547_s18 + $0x18] sm:$0xff] %v4051_v1  ;;  %4072 = vrcp.f32 %v1578_v25  ;;  %v1280_v36 = vadd.f32 %v1277_v34, %v1267_v14  ;;  %v1281_v54 = vadd.f32 %v1277_v34, %v1268_v56  ;;  %v1282_v62 = vadd.f32 %v1277_v34, %v1269_v23 }
 0x166   : > { %v4055_v31 = vpop.eup %4054  ;;  %2197 = vst [vmem:[%s5547_s18 + $0x20] sm:$0xff] %v4053_v24  ;;  %4074 = vrcp.f32 %v1579_v6  ;;  %v1283_v4 = vadd.f32 %v1277_v34, %v1270_v63  ;;  %v1284_v26 = vadd.f32 %v1277_v34, %v1271_v61  ;;  %v1285_v11 = vadd.f32 %v1277_v34, %v1272_v60  ;;  %v7351_v60 = vld [vmem:[#allocation49_spill] sm:$0xff] }
 0x167   : > { %v4057_v42 = vpop.eup %4056  ;;  %2198 = vst [vmem:[%s5547_s18 + $0x28] sm:$0xff] %v4055_v31  ;;  %4076 = vpow2.f32 %v5650_v51  ;;  %v1291_v35 = vmul.f32 %v1289_v37, %v4785_v15  ;;  %v1292_v55 = vmul.f32 %v1289_v37, %v4788_v16  ;;  %v1293_v14 = vmul.f32 %v1289_v37, %v4791_v17  ;;  %v7393_v15 = vld [vmem:[#allocation93_spill] sm:$0xff] }
 0x168   : > { %v4059_v25 = vpop.eup %4058  ;;  %2199 = vst [vmem:[%s5547_s18 + $0x30] sm:$0xff] %v4057_v42  ;;  %4078 = vpow2.f32 %v5653_v52  ;;  %v1294_v56 = vmul.f32 %v1289_v37, %v4794_v18  ;;  %v1295_v23 = vmul.f32 %v1289_v37, %v4797_v19  ;;  %v1296_v63 = vmul.f32 %v1289_v37, %v4800_v20  ;;  %v1309_v18 = vpop.permute.xlu1 %1308 }
 0x169   : > { %v4061_v6 = vpop.eup %4060  ;;  %2200 = vst [vmem:[%s5547_s18 + $0x38] sm:$0xff] %v4059_v25  ;;  %4080 = vpow2.f32 %v5655_v53  ;;  %v1286_v51 = vadd.f32 %v1277_v34, %v1273_v33  ;;  %v1297_v61 = vmul.f32 %v1289_v37, %v4803_v21  ;;  %v1298_v1 = vmul.f32 %v1289_v37, %v7351_v60 }
 0x16a   : > { %v4063_v24 = vpop.eup %4062  ;;  %v1580_v31 = vadd.f32 1.0, %v4061_v6  ;;  %4082 = vpow2.f32 %v5657_v47  ;;  %v1299_v52 = vadd.f32 %v1291_v35, %v1279_v32  ;;  %v1300_v42 = vadd.f32 %v1292_v55, %v1280_v36 }
 0x16b   : > { %v4065_v19 = vpop.eup %4064  ;;  %v1581_v17 = vadd.f32 1.0, %v4063_v24  ;;  %4084 = vpow2.f32 %v5660_v29  ;;  %v1301_v25 = vadd.f32 %v1293_v14, %v1281_v54  ;;  %v1302_v53 = vadd.f32 %v1294_v56, %v1282_v62 }
 0x16c   : > { %v4067_v34 = vpop.eup %4066  ;;  %v1582_v33 = vadd.f32 1.0, %v4065_v19  ;;  %4086 = vrcp.f32 %v1580_v31  ;;  %v1303_v37 = vadd.f32 %v1295_v23, %v1283_v4  ;;  %v1304_v60 = vadd.f32 %v1296_v63, %v1284_v26 }
 0x16d   : > { %v5738_v6 = vpop.eup %4068  ;;  %4088 = vrcp.f32 %v1581_v17  ;;  %2201 = vst [vmem:[%s5547_s18 + $0x40] sm:$0xff] %v4067_v34  ;;  %v1305_v47 = vadd.f32 %v1297_v61, %v1285_v11  ;;  %v1311_v32 = vmul.f32 %v1309_v18, %v4705_v44  ;;  %v1312_v36 = vmul.f32 %v1309_v18, %v4708_v45  ;;  %v7386_v44 = vld [vmem:[#allocation54_spill] sm:$0xff] }
 0x16e   : > { %v4071_v29 = vpop.eup %4070  ;;  %4090 = vrcp.f32 %v1582_v33  ;;  %2202 = vst [vmem:[%s5547_s18 + $0x48] sm:$0xff] %v5738_v6  ;;  %v1313_v19 = vmul.f32 %v1309_v18, %v4711_v46  ;;  %v1314_v54 = vmul.f32 %v1309_v18, %v4714_v48  ;;  %v1315_v62 = vmul.f32 %v1309_v18, %v4717_v49 }
 0x16f   : > { %v4073_v4 = vpop.eup %4072  ;;  %2203 = vst [vmem:[%s5547_s18 + $0x50] sm:$0xff] %v4071_v29  ;;  %4092 = vpow2.f32 %v5662_v43  ;;  %v1316_v17 = vmul.f32 %v1309_v18, %v4720_v50  ;;  %v1317_v26 = vmul.f32 %v1309_v18, %v7304_v9  ;;  %v1318_v11 = vmul.f32 %v1309_v18, %v7305_v2 }
 0x170   : > { %v4075_v35 = vpop.eup %4074  ;;  %2204 = vst [vmem:[%s5547_s18 + $0x58] sm:$0xff] %v4073_v4  ;;  %4094 = vpow2.f32 %v5664_v59  ;;  %v1319_v55 = vadd.f32 %v1311_v32, %v1299_v52  ;;  %v1320_v14 = vadd.f32 %v1312_v36, %v1300_v42  ;;  %v1321_v56 = vadd.f32 %v1313_v19, %v1301_v25  ;;  %v7353_v4 = vld [vmem:[#allocation78_spill] sm:$0xff] }
 0x171   : > { %v4077_v23 = vpop.eup %4076  ;;  %2205 = vst [vmem:[%s5547_s18 + $0x60] sm:$0xff] %v4075_v35  ;;  %4096 = vpow2.f32 %v5687_v28  ;;  %v1306_v63 = vadd.f32 %v1298_v1, %v1286_v51  ;;  %v1322_v61 = vadd.f32 %v1314_v54, %v1302_v53  ;;  %v1323_v43 = vadd.f32 %v1315_v62, %v1303_v37  ;;  %v7352_v54 = vld [vmem:[#allocation77_spill] sm:$0xff] }
 0x172   : > { %v4079_v24 = vpop.eup %4078  ;;  %v1591_v31 = vadd.f32 1.0, %v4077_v23  ;;  %4098 = vpow2.f32 %v5690_v38  ;;  %v1324_v34 = vadd.f32 %v1316_v17, %v1304_v60  ;;  %v1325_v18 = vadd.f32 %v1317_v26, %v1305_v47 }
 0x173   : > { %v4081_v33 = vpop.eup %4080  ;;  %v1592_v29 = vadd.f32 1.0, %v4079_v24  ;;  %4100 = vpow2.f32 %v5694_v40  ;;  %v1326_v59 = vadd.f32 %v1318_v11, %v1306_v63  ;;  %v5759_v52 = vmul.f32 -1.442695, %v1319_v55  ;;  %v7354_v11 = vld [vmem:[#allocation79_spill] sm:$0xff]  ;;  %v7355_v55 = vld [vmem:[#allocation121_spill] sm:$0xff]  ;;  %v7358_v24 = vld [vmem:[#allocation124_spill] sm:$0xff] }
 0x174   : > { %v4083_v42 = vpop.eup %4082  ;;  %v1593_v25 = vadd.f32 1.0, %v4081_v33  ;;  %4102 = vrcp.f32 %v1591_v31  ;;  %v5761_v28 = vmul.f32 -1.442695, %v1320_v14  ;;  %v5763_v51 = vmul.f32 -1.442695, %v1321_v56  ;;  %v7356_v56 = vld [vmem:[#allocation122_spill] sm:$0xff] }
 0x175   : > { %v4085_v1 = vpop.eup %4084  ;;  %v1594_v53 = vadd.f32 1.0, %v4083_v42  ;;  %4104 = vrcp.f32 %v1592_v29  ;;  %v5765_v38 = vmul.f32 -1.442695, %v1322_v61  ;;  %v5767_v60 = vmul.f32 -1.442695, %v1323_v43  ;;  %v7357_v61 = vld [vmem:[#allocation123_spill] sm:$0xff] }
 0x176   : > { %v4087_v40 = vpop.eup %4086  ;;  %v1595_v37 = vadd.f32 1.0, %v4085_v1  ;;  %4106 = vrcp.f32 %v1593_v25  ;;  %v5769_v47 = vmul.f32 -1.442695, %v1324_v34  ;;  %v5771_v32 = vmul.f32 -1.442695, %v1325_v18  ;;  %v7359_v34 = vld [vmem:[#allocation125_spill] sm:$0xff] }
 0x177   : > { %v4089_v36 = vpop.eup %4088  ;;  %2206 = vst [vmem:[%s5547_s18 + $0x68] sm:$0xff] %v4087_v40  ;;  %4108 = vrcp.f32 %v1594_v53  ;;  %v5774_v19 = vmul.f32 -1.442695, %v1326_v59  ;;  %v2161_v62 = vsub.f32 1.0, %v7352_v54  ;;  %v2162_v17 = vsub.f32 1.0, %v7353_v4  ;;  %v7433_v54 = vld [vmem:[#allocation32_spill] sm:$0xff] }
 0x178   : > { %v4091_v26 = vpop.eup %4090  ;;  %2207 = vst [vmem:[%s5547_s18 + $0x70] sm:$0xff] %v4089_v36  ;;  %4110 = vrcp.f32 %v1595_v37  ;;  %v2163_v35 = vsub.f32 1.0, %v7354_v11  ;;  %v2164_v14 = vsub.f32 1.0, %v7355_v55  ;;  %v2165_v23 = vsub.f32 1.0, %v7356_v56 }
 0x179   : > { %v4093_v63 = vpop.eup %4092  ;;  %2208 = vst [vmem:[%s5547_s18 + $0x78] sm:$0xff] %v4091_v26  ;;  %4112 = vpow2.f32 %v5696_v58  ;;  %v2166_v43 = vsub.f32 1.0, %v7357_v61  ;;  %v2167_v31 = vsub.f32 1.0, %v7358_v24  ;;  %v2168_v18 = vsub.f32 1.0, %v7359_v34 }
 0x17a   : > { %v4095_v33 = vpop.eup %4094  ;;  %v1596_v29 = vadd.f32 1.0, %v4093_v63  ;;  %4114 = vpow2.f32 %v5698_v27  ;;  %v2169_v59 = vadd.f32 1e-05, %v2161_v62  ;;  %v2170_v42 = vadd.f32 1e-05, %v2162_v17 }
 0x17b   : > { %v4097_v25 = vpop.eup %4096  ;;  %v1597_v1 = vadd.f32 1.0, %v4095_v33  ;;  %4116 = vpow2.f32 %v5701_v10  ;;  %v2171_v53 = vadd.f32 1e-05, %v2163_v35  ;;  %v2172_v40 = vadd.f32 1e-05, %v2164_v14 }
 0x17c   : > { %v4099_v37 = vpop.eup %4098  ;;  %v1598_v58 = vadd.f32 1.0, %v4097_v25  ;;  %4118 = vrcp.f32 %v1596_v29  ;;  %v2173_v36 = vadd.f32 1e-05, %v2165_v23  ;;  %v2174_v26 = vadd.f32 1e-05, %v2166_v43 }
 0x17d   : > { %v4101_v2 = vpop.eup %4100  ;;  %4120 = vrcp.f32 %v1597_v1  ;;  %v1599_v63 = vadd.f32 1.0, %v4099_v37  ;;  %v2175_v9 = vadd.f32 1e-05, %v2167_v31  ;;  %v2176_v27 = vadd.f32 1e-05, %v2168_v18  ;;  %v7370_v1 = vld [vmem:[#allocation52_spill] sm:$0xff] }
 0x17e   : > { %v4103_v62 = vpop.eup %4102  ;;  %4122 = vrcp.f32 %v1598_v58  ;;  %v1600_v17 = vadd.f32 1.0, %v4101_v2  ;;  %v5789_v33 = vadd.f32 1e-05, %v2169_v59  ;;  %v5791_v10 = vadd.f32 1e-05, %v2170_v42  ;;  %v7368_v59 = vld [vmem:[#allocation60_spill] sm:$0xff] }
 0x17f   : > { %v5793_v35 = vpop.eup %4104  ;;  %2217 = vst [vmem:[%s5547_s18 + $0xc0] sm:$0xff] %v4103_v62  ;;  %4124 = vpow2.f32 %v5703_v8  ;;  %v5797_v14 = vadd.f32 1e-05, %v2171_v53  ;;  %v5799_v23 = vadd.f32 1e-05, %v2172_v40  ;;  %v7369_v42 = vld [vmem:[#allocation61_spill] sm:$0xff] }
 0x180   : > { %7360 = vst [vmem:[#allocation98_spill] sm:$0xff] %v5789_v33  ;;  %7361 = vst [vmem:[#allocation99_spill] sm:$0xff] %v5791_v10  ;;  %v5801_v43 = vadd.f32 1e-05, %v2173_v36  ;;  %v4107_v31 = vpop.eup %4106  ;;  %4126 = vpow2.f32 %v5706_v7  ;;  %v5806_v2 = vadd.f32 1e-05, %v2174_v26  ;;  %v824_v25 = vadd.f32 %v7369_v42, %v7368_v59 }
 0x181   : > { %7362 = vst [vmem:[#allocation100_spill] sm:$0xff] %v5797_v14  ;;  %7363 = vst [vmem:[#allocation101_spill] sm:$0xff] %v5799_v23  ;;  %v5808_v18 = vadd.f32 1e-05, %v2175_v9  ;;  %v5810_v29 = vadd.f32 1e-05, %v2176_v27  ;;  %v4109_v8 = vpop.eup %4108  ;;  %4128 = vpow2.f32 %v5717_v39 }
 0x182   : > { %7364 = vst [vmem:[#allocation102_spill] sm:$0xff] %v5801_v43  ;;  %2218 = vst [vmem:[%s5547_s18 + $0xc8] sm:$0xff] %v5793_v35  ;;  %v7371_v53 = vld [vmem:[#allocation70_spill] sm:$0xff]  ;;  %v7372_v37 = vld [vmem:[#allocation53_spill] sm:$0xff]  ;;  %v4111_v36 = vpop.eup %4110  ;;  %4130 = vrcp.f32 %v1599_v63 }
 0x183   : > { %7365 = vst [vmem:[#allocation81_spill] sm:$0xff] %v5806_v2  ;;  %7366 = vst [vmem:[#allocation82_spill] sm:$0xff] %v5808_v18  ;;  %v5818_v40 = vadd.f32 %v7371_v53, %v7370_v1  ;;  %v7373_v7 = vld [vmem:[#allocation71_spill] sm:$0xff]  ;;  %v7374_v9 = vld [vmem:[#allocation62_spill] sm:$0xff]  ;;  %v4113_v53 = vpop.eup %4112  ;;  %4132 = vrcp.f32 %v1600_v17 }
 0x184   : > { %7367 = vst [vmem:[#allocation83_spill] sm:$0xff] %v5810_v29  ;;  %2219 = vst [vmem:[%s5547_s18 + $0xd0] sm:$0xff] %v4107_v31  ;;  %v5822_v58 = vadd.f32 %v7373_v7, %v7372_v37  ;;  %v7375_v26 = vld [vmem:[#allocation50_spill] sm:$0xff]  ;;  %v7376_v62 = vld [vmem:[#allocation63_spill] sm:$0xff]  ;;  %4134 = vpow2.f32 %v5759_v52 }
 0x185   : > { %2220 = vst [vmem:[%s5547_s18 + $0xd8] sm:$0xff] %v4109_v8  ;;  %v5827_v27 = vadd.f32 %v7375_v26, %v7374_v9  ;;  %v7377_v39 = vld [vmem:[#allocation51_spill] sm:$0xff]  ;;  %v7378_v59 = vld [vmem:[#allocation56_spill] sm:$0xff]  ;;  %2221 = vst [vmem:[%s5547_s18 + $0xe0] sm:$0xff] %v4111_v36  ;;  %4136 = vpow2.f32 %v5761_v28 }
 0x186   : > { %v5831_v31 = vadd.f32 %v7377_v39, %v7376_v62  ;;  %v7379_v42 = vrot.slane %v7378_v59, 2  ;;  %v7380_v37 = vld [vmem:[#allocation59_spill] sm:$0xff]  ;;  %v7381_v8 = vld [vmem:[#allocation57_spill] sm:$0xff]  ;;  %v7382_v63 = vld [vmem:[#allocation66_spill] sm:$0xff]  ;;  %v4115_v62 = vpop.eup %4114  ;;  %v1601_v39 = vadd.f32 1.0, %v4113_v53 }
 0x187   : > { %v5838_v7 = vadd.f32 %v7380_v37, %v824_v25  ;;  %v5842_v50 = vsub.f32 %v7382_v63, %v7381_v8  ;;  %v7383_v9 = vld [vmem:[#allocation58_spill] sm:$0xff]  ;;  %v7384_v26 = vld [vmem:[#allocation67_spill] sm:$0xff]  ;;  %v1602_v25 = vadd.f32 1.0, %v4115_v62 }
 0x188   : > { %v1791_v1 = vmax.f32 %v7378_v59, %v7379_v42  ;;  %v5846_v49 = vsub.f32 %v7384_v26, %v7383_v9  ;;  %v7385_v36 = vld [vmem:[#allocation55_spill] sm:$0xff]  ;;  %v4117_v42 = vpop.eup %4116  ;;  %v1801_v37 = vmax.f32 %v5818_v40, %v5831_v31  ;;  %4138 = vrcp.f32 %v1601_v39 }
 0x189   : > { %v1794_v17 = vmax.f32 %v7385_v36, %v5827_v27  ;;  %v1808_v8 = vmax.f32 %v5822_v58, %v5838_v7  ;;  %v4119_v63 = vpop.eup %4118  ;;  %v1603_v9 = vadd.f32 1.0, %v4117_v42  ;;  %4140 = vrcp.f32 %v1602_v25  ;;  %v7387_v42 = vld [vmem:[#allocation68_spill] sm:$0xff] }
 0x18a   : > { %v1792_v59 = vrot.slane %v1791_v1, 1  ;;  %v4121_v26 = vpop.eup %4120  ;;  %2222 = vst [vmem:[%s5547_s18 + $0xe8] sm:$0xff] %v4119_v63  ;;  %v1802_v48 = vrot.slane %v1801_v37, 4  ;;  %v5858_v46 = vmul.f32 1.442695, %v5842_v50 }
 0x18b   : > { %v1795_v53 = vrot.slane %v1794_v17, 4  ;;  %v1809_v62 = vrot.slane %v1808_v8, 4  ;;  %v4123_v28 = vpop.eup %4122  ;;  %2223 = vst [vmem:[%s5547_s18 + $0xf0] sm:$0xff] %v4121_v26  ;;  %4142 = vrcp.f32 %v1603_v9  ;;  %v5870_v63 = vmul.f32 1.442695, %v5846_v49 }
 0x18c   : > { %v1793_v52 = vmax.f32 %v1791_v1, %v1792_v59  ;;  %v4125_v1 = vpop.eup %4124  ;;  %2224 = vst [vmem:[%s5547_s18 + $0xf8] sm:$0xff] %v4123_v28  ;;  %4144 = vpow2.f32 %v5763_v51  ;;  %v1803_v59 = vmax.f32 %v1801_v37, %v1802_v48 }
 0x18d   : > { %v1796_v45 = vmax.f32 %v1794_v17, %v1795_v53  ;;  %v1810_v25 = vmax.f32 %v1808_v8, %v1809_v62  ;;  %v4127_v20 = vpop.eup %4126  ;;  %v1604_v16 = vadd.f32 1.0, %v4125_v1  ;;  %4146 = vpow2.f32 %v5765_v38 }
 0x18e   : > { %v5862_v21 = vsub.f32 %v7386_v44, %v1793_v52  ;;  %v5865_v39 = vsub.f32 %v7387_v42, %v1793_v52  ;;  %v4129_v9 = vpop.eup %4128  ;;  %v1605_v52 = vadd.f32 1.0, %v4127_v20  ;;  %4148 = vpow2.f32 %v5767_v60  ;;  %v7388_v42 = vld [vmem:[#allocation90_spill] sm:$0xff]  ;;  %v7389_v20 = vld [vmem:[#allocation72_spill] sm:$0xff] }
 0x18f   : > { %v1797_v17 = vrot.slane %v1796_v45, 2  ;;  %v1804_v53 = vrot.slane %v1803_v59, 2  ;;  %v1811_v51 = vrot.slane %v1810_v25, 2  ;;  %v4131_v48 = vpop.eup %4130  ;;  %v1606_v37 = vadd.f32 1.0, %v4129_v9 }
 0x190   : > { %v1839_v44 = vmul.f32 1.442695, %v5862_v21  ;;  %4150 = vrcp.f32 %v1604_v16  ;;  %v5876_v26 = vmul.f32 1.442695, %v5865_v39  ;;  %v5878_v62 = vpop.eup %4132  ;;  %2225 = vst [vmem:[%s5547_s18 + $0x100] sm:$0xff] %v4131_v48  ;;  %v5883_v1 = vmul.f32 %v7389_v20, %v7388_v42  ;;  %v7395_v42 = vld [vmem:[#allocation106_spill] sm:$0xff] }
 0x191   : > { %v1798_v8 = vmax.f32 %v1796_v45, %v1797_v17  ;;  %4152 = vrcp.f32 %v1605_v52  ;;  %v1805_v38 = vmax.f32 %v1803_v59, %v1804_v53  ;;  %v1812_v28 = vmax.f32 %v1810_v25, %v1811_v51  ;;  %v4135_v60 = vpop.eup %4134  ;;  %2226 = vst [vmem:[%s5547_s18 + $0x108] sm:$0xff] %v5878_v62  ;;  %v7391_v45 = vld [vmem:[#allocation91_spill] sm:$0xff]  ;;  %v7392_v17 = vld [vmem:[#allocation73_spill] sm:$0xff] }
 0x192   : > { %7390 = vst [vmem:[#allocation84_spill] sm:$0xff] %v5883_v1  ;;  %4154 = vrcp.f32 %v1606_v37  ;;  %v1922_v9 = vmul.f32 %v7392_v17, %v7391_v45  ;;  %v5891_v22 = vmul.f32 %v7389_v20, %v7393_v15  ;;  %v4137_v52 = vpop.eup %4136  ;;  %v1735_v59 = vadd.f32 1.0, %v4135_v60  ;;  %v7396_v20 = vld [vmem:[#allocation74_spill] sm:$0xff]  ;;  %v7397_v60 = vld [vmem:[#allocation65_spill] sm:$0xff] }
 0x193   : > { %v1799_v16 = vrot.slane %v1798_v8, 1  ;;  %4156 = vpow2.f32 %v5769_v47  ;;  %v1806_v25 = vrot.slane %v1805_v38, 1  ;;  %v1813_v53 = vrot.slane %v1812_v28, 1  ;;  %v4139_v51 = vpop.eup %4138 }
 0x194   : > { %7394 = vst [vmem:[#allocation85_spill] sm:$0xff] %v5891_v22  ;;  %4158 = vpow2.f32 %v5771_v32  ;;  %v1736_v48 = vadd.f32 1.0, %v4137_v52  ;;  %v1936_v45 = vmul.f32 %v7392_v17, %v7395_v42  ;;  %v4141_v5 = vpop.eup %4140  ;;  %2227 = vst [vmem:[%s5547_s18 + $0x110] sm:$0xff] %v4139_v51  ;;  %v1967_v13 = vsub.f32 %v7397_v60, %v7396_v20  ;;  %v7401_v17 = vld [vmem:[#allocation88_spill] sm:$0xff] }
 0x195   : > { %v1800_v37 = vmax.f32 %v1798_v8, %v1799_v16  ;;  %4160 = vpow2.f32 %v5774_v19  ;;  %v1807_v15 = vmax.f32 %v1805_v38, %v1806_v25  ;;  %v1814_v47 = vmax.f32 %v1812_v28, %v1813_v53  ;;  %v4143_v3 = vpop.eup %4142  ;;  %2228 = vst [vmem:[%s5547_s18 + $0x118] sm:$0xff] %v4141_v5  ;;  %v7400_v16 = vld [vmem:[#allocation75_spill] sm:$0xff] }
 0x196   : > { %4162 = vrcp.f32 %v1735_v59  ;;  %v1968_v52 = vsub.f32 %v7401_v17, %v7400_v16  ;;  %v4145_v51 = vpop.eup %4144  ;;  %2229 = vst [vmem:[%s5547_s18 + $0x120] sm:$0xff] %v4143_v3  ;;  %v2048_v42 = vmul.f32 %v7353_v4, %v1936_v45 }
 0x197   : > { %v5903_v32 = vsub.f32 %v7385_v36, %v1800_v37  ;;  %v5906_v8 = vsub.f32 %v5827_v27, %v1800_v37  ;;  %4164 = vrcp.f32 %v1736_v48  ;;  %v5913_v19 = vsub.f32 %v5818_v40, %v1807_v15  ;;  %v4147_v36 = vpop.eup %4146 }
 0x198   : > { %v5916_v38 = vsub.f32 %v5822_v58, %v1814_v47  ;;  %v5919_v5 = vsub.f32 %v5831_v31, %v1807_v15  ;;  %v1737_v28 = vadd.f32 1.0, %v4145_v51  ;;  %v5922_v27 = vsub.f32 %v5838_v7, %v1814_v47  ;;  %v4149_v59 = vpop.eup %4148  ;;  %v7406_v47 = vld [vmem:[#allocation69_spill] sm:$0xff]  ;;  %v7408_v51 = vld [vmem:[#allocation64_spill] sm:$0xff]  ;;  %2186 = vst [vmem:[%s5931_s22 + $0x48] sm:$0xff] %v2048_v42 }
 0x199   : > { %7398 = vst [vmem:[#allocation86_spill] sm:$0xff] %v5903_v32  ;;  %7399 = vst [vmem:[#allocation87_spill] sm:$0xff] %v5906_v8  ;;  %4166 = vpow2.f32 %v1839_v44  ;;  %v1841_v3 = vmul.f32 1.442695, %v5903_v32  ;;  %v1738_v25 = vadd.f32 1.0, %v4147_v36  ;;  %v1739_v53 = vadd.f32 1.0, %v4149_v59 }
 0x19a   : > { %7402 = vst [vmem:[#allocation104_spill] sm:$0xff] %v5913_v19  ;;  %7403 = vst [vmem:[#allocation103_spill] sm:$0xff] %v5916_v38  ;;  %v1843_v40 = vmul.f32 1.442695, %v5913_v19  ;;  %v1845_v58 = vmul.f32 1.442695, %v5916_v38  ;;  %4168 = vpow2.f32 %v5858_v46  ;;  %v4151_v31 = vpop.eup %4150  ;;  %v2040_v37 = vmul.f32 %v7353_v4, %v1922_v9 }
 0x19b   : > { %7404 = vst [vmem:[#allocation113_spill] sm:$0xff] %v5919_v5  ;;  %7405 = vst [vmem:[#allocation114_spill] sm:$0xff] %v5922_v27  ;;  %4170 = vrcp.f32 %v1737_v28  ;;  %v5934_v7 = vmul.f32 1.442695, %v5906_v8  ;;  %v5937_v44 = vmul.f32 1.442695, %v5919_v5  ;;  %v4153_v48 = vpop.eup %4152  ;;  %v7407_v60 = vsub.f32 %v7406_v47, %v7396_v20 }
 0x19c   : > { %2230 = vst [vmem:[%s5547_s18 + $0x128] sm:$0xff] %v4151_v31  ;;  %4172 = vrcp.f32 %v1738_v25  ;;  %v5941_v46 = vmul.f32 1.442695, %v5922_v27  ;;  %v4155_v15 = vpop.eup %4154  ;;  %2231 = vst [vmem:[%s5547_s18 + $0x130] sm:$0xff] %v4153_v48  ;;  %v7409_v36 = vsub.f32 %v7408_v51, %v7400_v16  ;;  %v2063_v59 = vmul.f32 %v1967_v13, %v5891_v22  ;;  %v4462_v48 = vld [vmem:[%s5547_s18 + $0x88] sm:$0xff]  ;;  %v7434_v19 = vld [vmem:[#allocation36_spill] sm:$0xff] }
 0x19d   : > { %4174 = vrcp.f32 %v1739_v53  ;;  %v2055_v17 = vmul.f32 %v7407_v60, %v5883_v1  ;;  %v4157_v25 = vpop.eup %4156  ;;  %2232 = vst [vmem:[%s5547_s18 + $0x138] sm:$0xff] %v4155_v15  ;;  %v2064_v31 = vmul.f32 %v1968_v52, %v1936_v45  ;;  %2178 = vst [vmem:[%s5931_s22 + $0x8] sm:$0xff] %v2040_v37  ;;  %v2620_v20 = vmul.f32 %v5684_v0, %v2040_v37  ;;  %v7431_v4 = vld [vmem:[#allocation31_spill] sm:$0xff] }
 0x19e   : > { %v2056_v28 = vmul.f32 %v7409_v36, %v1922_v9  ;;  %4176 = vpow2.f32 %v1841_v3  ;;  %v2628_v9 = vmul.f32 %v5738_v6, %v2048_v42  ;;  %v4159_v16 = vpop.eup %4158  ;;  %v1740_v13 = vadd.f32 1.0, %v4157_v25  ;;  %v7413_v36 = vld [vmem:[#allocation26_spill] sm:$0xff] }
 0x19f   : > { %4178 = vpow2.f32 %v1843_v40  ;;  %v2071_v53 = vadd.f32 %v2063_v59, %v2055_v17  ;;  %v3054_v47 = vmul.f32 %v4462_v48, %v2040_v37  ;;  %v4161_v60 = vpop.eup %4160  ;;  %v1741_v51 = vadd.f32 1.0, %v4159_v16  ;;  %2636 = vst [vmem:[%s5959_s25 + $0x8] sm:$0xff] %v2620_v20  ;;  %v7412_v17 = vld [vmem:[#allocation18_spill] sm:$0xff] }
 0x1a0   : > { %4180 = vpow2.f32 %v1845_v58  ;;  %v2078_v3 = vadd.f32 %v2064_v31, %v2056_v28  ;;  %2644 = vst [vmem:[%s5959_s25 + $0x48] sm:$0xff] %v2628_v9  ;;  %v3062_v45 = vmul.f32 %v5793_v35, %v2048_v42  ;;  %v5970_v52 = vpop.eup %4162  ;;  %v1742_v0 = vadd.f32 1.0, %v4161_v60  ;;  %v7414_v42 = vld [vmem:[#allocation19_spill] sm:$0xff] }
 0x1a1   : > { %7410 = vst [vmem:[#allocation115_spill] sm:$0xff] %v5970_v52  ;;  %4182 = vrcp.f32 %v1740_v13  ;;  %v2072_v6 = vrot.slane %v2071_v53, 4  ;;  %3070 = vst [vmem:[%s5959_s25 + $0x88] sm:$0xff] %v3054_v47  ;;  %v3488_v40 = vmul.f32 %v5878_v62, %v2040_v37  ;;  %v5974_v15 = vpop.eup %4164  ;;  %v2449_v58 = vsub.f32 %v5970_v52, %v7412_v17  ;;  %v7415_v31 = vld [vmem:[#allocation27_spill] sm:$0xff]  ;;  %v7420_v17 = vld [vmem:[#allocation28_spill] sm:$0xff] }
 0x1a2   : > { %7411 = vst [vmem:[#allocation116_spill] sm:$0xff] %v5974_v15  ;;  %4184 = vrcp.f32 %v1741_v51  ;;  %v2835_v28 = vsub.f32 %v5970_v52, %v7413_v36  ;;  %v2079_v59 = vrot.slane %v2078_v3, 4  ;;  %3078 = vst [vmem:[%s5959_s25 + $0xc8] sm:$0xff] %v3062_v45  ;;  %v2450_v25 = vsub.f32 %v5974_v15, %v7414_v42  ;;  %v7417_v51 = vld [vmem:[#allocation92_spill] sm:$0xff]  ;;  %v7422_v36 = vld [vmem:[#allocation21_spill] sm:$0xff] }
 0x1a3   : > { %v5981_v35 = vpop.eup %4166  ;;  %4186 = vrcp.f32 %v1742_v0  ;;  %v2836_v62 = vsub.f32 %v5974_v15, %v7415_v31  ;;  %v5987_v37 = vadd.f32 %v2072_v6, %v2071_v53  ;;  %3504 = vst [vmem:[%s5959_s25 + $0x108] sm:$0xff] %v3488_v40  ;;  %v2457_v9 = vmul.f32 3.3333333, %v2449_v58  ;;  %v7419_v0 = vld [vmem:[#allocation20_spill] sm:$0xff] }
 0x1a4   : > { %v5990_v20 = vpop.eup %4168  ;;  %v2843_v16 = vmul.f32 3.3333333, %v2835_v28  ;;  %4188 = vpow2.f32 %v5870_v63  ;;  %v5993_v13 = vadd.f32 %v2079_v59, %v2078_v3  ;;  %v2458_v47 = vmul.f32 3.3333333, %v2450_v25  ;;  %v7423_v59 = vld [vmem:[#allocation29_spill] sm:$0xff] }
 0x1a5   : > { %v5995_v48 = vpop.eup %4170  ;;  %v2844_v60 = vmul.f32 3.3333333, %v2836_v62  ;;  %4190 = vpow2.f32 %v5876_v26  ;;  %v6000_v45 = vadd.f32 %v5990_v20, %v7417_v51  ;;  %v2465_v40 = vmul.f32 %v2457_v9, %v2457_v9  ;;  %v7424_v62 = vld [vmem:[#allocation22_spill] sm:$0xff] }
 0x1a6   : > { %7416 = vst [vmem:[#allocation117_spill] sm:$0xff] %v5995_v48  ;;  %v6002_v53 = vpop.eup %4172  ;;  %v2451_v6 = vsub.f32 %v5995_v48, %v7419_v0  ;;  %v2837_v63 = vsub.f32 %v5995_v48, %v7420_v17  ;;  %v2851_v3 = vmul.f32 %v2843_v16, %v2843_v16  ;;  %v2466_v26 = vmul.f32 %v2458_v47, %v2458_v47  ;;  %v7425_v17 = vld [vmem:[#allocation30_spill] sm:$0xff] }
 0x1a7   : > { %7418 = vst [vmem:[#allocation118_spill] sm:$0xff] %v6002_v53  ;;  %v6008_v58 = vpop.eup %4174  ;;  %v2452_v28 = vsub.f32 %v6002_v53, %v7422_v36  ;;  %v2838_v42 = vsub.f32 %v6002_v53, %v7423_v59  ;;  %v6014_v25 = vmul.f32 %v2844_v60, %v2844_v60  ;;  %v2473_v15 = vmul.f32 -0.5, %v2465_v40 }
 0x1a8   : > { %7421 = vst [vmem:[#allocation119_spill] sm:$0xff] %v6008_v58  ;;  %v6016_v31 = vpop.eup %4176  ;;  %v2453_v9 = vsub.f32 %v6008_v58, %v7424_v62  ;;  %v2459_v0 = vmul.f32 3.3333333, %v2451_v6  ;;  %v2839_v16 = vsub.f32 %v6008_v58, %v7425_v17  ;;  %v2474_v36 = vmul.f32 -0.5, %v2466_v26  ;;  %v7428_v58 = vld [vmem:[#allocation23_spill] sm:$0xff] }
 0x1a9   : > { %v6022_v48 = vpop.eup %4178  ;;  %v2460_v52 = vmul.f32 3.3333333, %v2452_v28  ;;  %v2845_v47 = vmul.f32 3.3333333, %v2837_v63  ;;  %v6024_v30 = vmul.f32 -0.5, %v2851_v3 }
 0x1aa   : > { %v6026_v59 = vpop.eup %4180  ;;  %v2461_v60 = vmul.f32 3.3333333, %v2453_v9  ;;  %v2467_v53 = vmul.f32 %v2459_v0, %v2459_v0  ;;  %v2481_v41 = vadd.f32 0.28503427, %v2473_v15  ;;  %v2846_v12 = vmul.f32 3.3333333, %v2838_v42 }
 0x1ab   : > { %v6028_v57 = vpop.eup %4182  ;;  %v2468_v6 = vmul.f32 %v2460_v52, %v2460_v52  ;;  %v2482_v40 = vadd.f32 0.28503427, %v2474_v36  ;;  %v2847_v62 = vmul.f32 3.3333333, %v2839_v16  ;;  %v2853_v22 = vmul.f32 %v2845_v47, %v2845_v47  ;;  %v7430_v9 = vld [vmem:[#allocation24_spill] sm:$0xff]  ;;  %v7432_v36 = vld [vmem:[#allocation25_spill] sm:$0xff] }
 0x1ac   : > { %7426 = vst [vmem:[#allocation120_spill] sm:$0xff] %v6028_v57  ;;  %v6030_v17 = vpop.eup %4184  ;;  %v2454_v28 = vsub.f32 %v6028_v57, %v7428_v58  ;;  %v2469_v63 = vmul.f32 %v2461_v60, %v2461_v60  ;;  %v2475_v3 = vmul.f32 -0.5, %v2467_v53  ;;  %v2489_v26 = vmul.f32 1.442695, %v2481_v41 }
 0x1ad   : > { %7427 = vst [vmem:[#allocation76_spill] sm:$0xff] %v6030_v17  ;;  %v6034_v1 = vpop.eup %4186  ;;  %v2455_v15 = vsub.f32 %v6030_v17, %v7430_v9  ;;  %v2476_v42 = vmul.f32 -0.5, %v2468_v6  ;;  %v2491_v0 = vmul.f32 1.442695, %v2482_v40  ;;  %v2840_v52 = vsub.f32 %v6028_v57, %v7431_v4 }
 0x1ae   : > { %7429 = vst [vmem:[#allocation94_spill] sm:$0xff] %v6034_v1  ;;  %v6040_v16 = vpop.eup %4188  ;;  %v2456_v47 = vsub.f32 %v6034_v1, %v7432_v36  ;;  %v2462_v27 = vmul.f32 3.3333333, %v2454_v28  ;;  %v2477_v58 = vmul.f32 -0.5, %v2469_v63  ;;  %v2483_v60 = vadd.f32 0.28503427, %v2475_v3 }
 0x1af   : > { %v6044_v53 = vpop.eup %4190  ;;  %v2463_v41 = vmul.f32 3.3333333, %v2455_v15  ;;  %v2484_v38 = vadd.f32 0.28503427, %v2476_v42  ;;  %4192 = vpow2.f32 %v2489_v26  ;;  %v2841_v6 = vsub.f32 %v6030_v17, %v7433_v54 }
 0x1b0   : > { %v2464_v40 = vmul.f32 3.3333333, %v2456_v47  ;;  %v2470_v9 = vmul.f32 %v2462_v27, %v2462_v27  ;;  %v2485_v34 = vadd.f32 0.28503427, %v2477_v58  ;;  %4194 = vpow2.f32 %v2491_v0 }
 0x1b1   : > { %v2471_v4 = vmul.f32 %v2463_v41, %v2463_v41  ;;  %v2493_v57 = vmul.f32 1.442695, %v2483_v60  ;;  %v2495_v5 = vmul.f32 1.442695, %v2484_v38  ;;  %v2842_v28 = vsub.f32 %v6034_v1, %v7434_v19 }
 0x1b2   : > { %v2472_v63 = vmul.f32 %v2464_v40, %v2464_v40  ;;  %v2478_v3 = vmul.f32 -0.5, %v2470_v9  ;;  %v2497_v36 = vmul.f32 1.442695, %v2485_v34  ;;  %v2848_v8 = vmul.f32 3.3333333, %v2840_v52 }
 0x1b3   : > { %v2479_v15 = vmul.f32 -0.5, %v2471_v4  ;;  %4196 = vpow2.f32 %v2493_v57  ;;  %v2849_v26 = vmul.f32 3.3333333, %v2841_v6  ;;  %v2850_v42 = vmul.f32 3.3333333, %v2842_v28 }
 0x1b4   : > { %v2480_v32 = vmul.f32 -0.5, %v2472_v63  ;;  %v2486_v54 = vadd.f32 0.28503427, %v2478_v3  ;;  %4198 = vpow2.f32 %v2495_v5  ;;  %v2854_v27 = vmul.f32 %v2846_v12, %v2846_v12 }
 0x1b5   : > { %v2487_v47 = vadd.f32 0.28503427, %v2479_v15  ;;  %4200 = vpow2.f32 %v2497_v36  ;;  %v2855_v0 = vmul.f32 %v2847_v62, %v2847_v62  ;;  %v2856_v58 = vmul.f32 %v2848_v8, %v2848_v8 }
 0x1b6   : > { %v2488_v38 = vadd.f32 0.28503427, %v2480_v32  ;;  %v2499_v60 = vmul.f32 1.442695, %v2486_v54  ;;  %v2857_v41 = vmul.f32 %v2849_v26, %v2849_v26  ;;  %v2858_v19 = vmul.f32 %v2850_v42, %v2850_v42 }
 0x1b7   : > { %v2501_v40 = vmul.f32 1.442695, %v2487_v47  ;;  %v2860_v34 = vmul.f32 -0.5, %v6014_v25  ;;  %v2861_v52 = vmul.f32 -0.5, %v2853_v22  ;;  %v2862_v9 = vmul.f32 -0.5, %v2854_v27 }
 0x1b8   : > { %4202 = vpow2.f32 %v2499_v60  ;;  %v2503_v57 = vmul.f32 1.442695, %v2488_v38  ;;  %v2863_v6 = vmul.f32 -0.5, %v2855_v0  ;;  %v2864_v4 = vmul.f32 -0.5, %v2856_v58 }
 0x1b9   : > { %v4193_v28 = vpop.eup %4192  ;;  %4204 = vpow2.f32 %v2501_v40  ;;  %v2865_v12 = vmul.f32 -0.5, %v2857_v41  ;;  %v2866_v5 = vmul.f32 -0.5, %v2858_v19  ;;  %v2867_v62 = vadd.f32 0.28503427, %v6024_v30 }
 0x1ba   : > { %v4195_v8 = vpop.eup %4194  ;;  %4206 = vpow2.f32 %v2503_v57  ;;  %v6053_v32 = vmul.f32 %v4193_v28, %v5789_v33  ;;  %v2868_v63 = vadd.f32 0.28503427, %v2860_v34  ;;  %v2869_v3 = vadd.f32 0.28503427, %v2861_v52 }
 0x1bb   : > { %v6056_v22 = vmul.f32 %v4195_v8, %v5791_v10  ;;  %v2870_v25 = vadd.f32 0.28503427, %v2862_v9  ;;  %v2871_v36 = vadd.f32 0.28503427, %v2863_v6  ;;  %v2872_v15 = vadd.f32 0.28503427, %v2864_v4 }
 0x1bc   : > { %7435 = vst [vmem:[#allocation95_spill] sm:$0xff] %v6053_v32  ;;  %v2570_v26 = vadd.f32 1e-05, %v6053_v32  ;;  %v2873_v42 = vadd.f32 0.28503427, %v2865_v12  ;;  %4208 = vpow2.f32 %v5934_v7  ;;  %v1878_v4 = vrot.slane %v6000_v45, 4 }
 0x1bd   : > { %7436 = vst [vmem:[#allocation80_spill] sm:$0xff] %v6056_v22  ;;  %v2874_v54 = vadd.f32 0.28503427, %v2866_v5  ;;  %v4197_v30 = vpop.eup %4196  ;;  %v2571_v27 = vadd.f32 1e-05, %v6056_v22  ;;  %4210 = vpow2.f32 %v5937_v44  ;;  %v7440_v5 = vld [vmem:[#allocation112_spill] sm:$0xff]  ;;  %v1891_v8 = vadd.f32 %v6044_v53, %v5981_v35 }
 0x1be   : > { %v2875_v47 = vmul.f32 1.442695, %v2867_v62  ;;  %v2877_v0 = vmul.f32 1.442695, %v2868_v63  ;;  %v4199_v58 = vpop.eup %4198  ;;  %v6063_v38 = vmul.f32 %v4197_v30, %v5797_v14  ;;  %4212 = vlog2.f32 %v2570_v26 }
 0x1bf   : > { %v2879_v60 = vmul.f32 1.442695, %v2869_v3  ;;  %v2881_v41 = vmul.f32 1.442695, %v2870_v25  ;;  %v4201_v19 = vpop.eup %4200  ;;  %v6066_v40 = vmul.f32 %v4199_v58, %v5799_v23  ;;  %4214 = vlog2.f32 %v2571_v27 }
 0x1c0   : > { %7437 = vst [vmem:[#allocation107_spill] sm:$0xff] %v6063_v38  ;;  %v2883_v7 = vmul.f32 1.442695, %v2871_v36  ;;  %v2885_v34 = vmul.f32 1.442695, %v2872_v15  ;;  %v6069_v52 = vmul.f32 %v4201_v19, %v5801_v43  ;;  %4216 = vpow2.f32 %v2875_v47 }
 0x1c1   : > { %7438 = vst [vmem:[#allocation110_spill] sm:$0xff] %v6066_v40  ;;  %v2572_v9 = vadd.f32 1e-05, %v6063_v38  ;;  %v2887_v44 = vmul.f32 1.442695, %v2873_v42  ;;  %4218 = vpow2.f32 %v2877_v0  ;;  %v1884_v62 = vadd.f32 %v6040_v16, %v7440_v5 }
 0x1c2   : > { %7439 = vst [vmem:[#allocation108_spill] sm:$0xff] %v6069_v52  ;;  %v2573_v57 = vadd.f32 1e-05, %v6066_v40  ;;  %v2889_v6 = vmul.f32 1.442695, %v2874_v54  ;;  %v4203_v28 = vpop.eup %4202  ;;  %v1879_v25 = vadd.f32 %v1878_v4, %v6000_v45  ;;  %v1892_v54 = vrot.slane %v1891_v8, 4 }
 0x1c3   : > { %v2574_v12 = vadd.f32 1e-05, %v6069_v52  ;;  %4220 = vlog2.f32 %v2572_v9  ;;  %v4205_v63 = vpop.eup %4204  ;;  %v6080_v3 = vmul.f32 %v4203_v28, %v5806_v2  ;;  %v1885_v42 = vrot.slane %v1884_v62, 4  ;;  %v4509_v40 = vld [vmem:[%s5547_s18 + $0x48] sm:$0xff] }
 0x1c4   : > { %4222 = vlog2.f32 %v2573_v57  ;;  %v4207_v15 = vpop.eup %4206  ;;  %v6085_v26 = vmul.f32 %v4205_v63, %v5808_v18  ;;  %v1880_v47 = vrot.slane %v1879_v25, 2  ;;  %v1893_v19 = vadd.f32 %v1892_v54, %v1891_v8 }
 0x1c5   : > { %7441 = vst [vmem:[#allocation109_spill] sm:$0xff] %v6080_v3  ;;  %4224 = vlog2.f32 %v2574_v12  ;;  %v6088_v30 = vmul.f32 %v4207_v15, %v5810_v29  ;;  %v2575_v27 = vadd.f32 1e-05, %v6080_v3  ;;  %v1886_v58 = vadd.f32 %v1885_v42, %v1884_v62 }
 0x1c6   : > { %7442 = vst [vmem:[#allocation111_spill] sm:$0xff] %v6085_v26  ;;  %4226 = vpow2.f32 %v2879_v60  ;;  %v6091_v0 = vpop.eup %4208  ;;  %v2576_v45 = vadd.f32 1e-05, %v6085_v26  ;;  %v1881_v4 = vadd.f32 %v1880_v47, %v1879_v25  ;;  %v1894_v63 = vrot.slane %v1893_v19, 2 }
 0x1c7   : > { %7443 = vst [vmem:[#allocation96_spill] sm:$0xff] %v6088_v30  ;;  %4228 = vpow2.f32 %v2881_v41  ;;  %v6094_v9 = vpop.eup %4210  ;;  %v2577_v57 = vadd.f32 1e-05, %v6088_v30  ;;  %v1898_v28 = vadd.f32 %v6091_v0, %v6016_v31  ;;  %v1887_v60 = vrot.slane %v1886_v58, 2 }
 0x1c8   : > { %4230 = vlog2.f32 %v2575_v27  ;;  %v4213_v12 = vpop.eup %4212  ;;  %v6101_v15 = vadd.f32 %v6094_v9, %v6022_v48  ;;  %v1882_v8 = vrot.slane %v1881_v4, 1  ;;  %v1895_v27 = vadd.f32 %v1894_v63, %v1893_v19 }
 0x1c9   : > { %4232 = vlog2.f32 %v2576_v45  ;;  %v4215_v41 = vpop.eup %4214  ;;  %v2579_v62 = vmul.f32 0.6931472, %v4213_v12  ;;  %v1899_v42 = vrot.slane %v1898_v28, 4  ;;  %v1888_v25 = vadd.f32 %v1887_v60, %v1886_v58 }
 0x1ca   : > { %4234 = vlog2.f32 %v2577_v57  ;;  %v4217_v54 = vpop.eup %4216  ;;  %v2581_v36 = vmul.f32 0.6931472, %v4215_v41  ;;  %v6107_v17 = vadd.f32 %v1882_v8, %v1881_v4 }
 0x1cb   : > { %4236 = vpow2.f32 %v2883_v7  ;;  %v4219_v47 = vpop.eup %4218  ;;  %v2594_v1 = vsel %vm2135_vm0, %v2579_v62, 0.0  ;;  %v6105_v45 = vmul.f32 %v4217_v54, %v5789_v33  ;;  %v1889_v41 = vrot.slane %v1888_v25, 1 }
 0x1cc   : > { %4238 = vpow2.f32 %v2885_v34  ;;  %v2595_v12 = vsel %vm2135_vm0, %v2581_v36, 0.0  ;;  %v6111_v57 = vmul.f32 %v4219_v47, %v5791_v10  ;;  %v1896_v54 = vrot.slane %v1895_v27, 1 }
 0x1cd   : > { %7444 = vst [vmem:[#allocation97_spill] sm:$0xff] %v6105_v45  ;;  %v4221_v30 = vpop.eup %4220  ;;  %4240 = vpow2.f32 %v2887_v44  ;;  %v2596_v19 = vadd.f32 %v2595_v12, %v2594_v1  ;;  %v2980_v60 = vadd.f32 1e-05, %v6105_v45  ;;  %v6116_v4 = vadd.f32 %v1889_v41, %v1888_v25 }
 0x1ce   : > { %7445 = vst [vmem:[#allocation79_spill] sm:$0xff] %v6111_v57  ;;  %v4223_v7 = vpop.eup %4222  ;;  %v2583_v58 = vmul.f32 0.6931472, %v4221_v30  ;;  %4242 = vpow2.f32 %v2889_v6  ;;  %v2981_v62 = vadd.f32 1e-05, %v6111_v57  ;;  %v6127_v25 = vadd.f32 %v1896_v54, %v1895_v27 }
 0x1cf   : > { %v4225_v34 = vpop.eup %4224  ;;  %v2585_v63 = vmul.f32 0.6931472, %v4223_v7  ;;  %4244 = vpow2.f32 %v5941_v46  ;;  %v1900_v41 = vadd.f32 %v1899_v42, %v1898_v28 }
 0x1d0   : > { %v4227_v36 = vpop.eup %4226  ;;  %v2587_v44 = vmul.f32 0.6931472, %v4225_v34  ;;  %v2597_v8 = vsel %vm2135_vm0, %v2583_v58, 0.0  ;;  %4246 = vlog2.f32 %v2980_v60 }
 0x1d1   : > { %v4229_v47 = vpop.eup %4228  ;;  %v2598_v30 = vadd.f32 %v2597_v8, %v2596_v19  ;;  %v2599_v1 = vsel %vm2135_vm0, %v2585_v63, 0.0  ;;  %v6121_v6 = vmul.f32 %v4227_v36, %v5797_v14  ;;  %4248 = vlog2.f32 %v2981_v62 }
 0x1d2   : > { %v4231_v12 = vpop.eup %4230  ;;  %v2601_v7 = vsel %vm2135_vm0, %v2587_v44, 0.0  ;;  %v6125_v46 = vmul.f32 %v4229_v47, %v5799_v23  ;;  %v1906_v63 = vrot.slane %v6101_v15, 4  ;;  %v1901_v14 = vrot.slane %v1900_v41, 2 }
 0x1d3   : > { %7446 = vst [vmem:[#allocation121_spill] sm:$0xff] %v6121_v6  ;;  %v4233_v58 = vpop.eup %4232  ;;  %v2589_v60 = vmul.f32 0.6931472, %v4231_v12  ;;  %v2600_v34 = vadd.f32 %v2599_v1, %v2598_v30  ;;  %v2982_v19 = vadd.f32 1e-05, %v6121_v6  ;;  %4250 = vrcp.f32 %v6107_v17  ;;  %v4495_v6 = vld [vmem:[%s5547_s18 + $0x150] sm:$0xff] }
 0x1d4   : > { %7447 = vst [vmem:[#allocation122_spill] sm:$0xff] %v6125_v46  ;;  %v4235_v8 = vpop.eup %4234  ;;  %v2591_v36 = vmul.f32 0.6931472, %v4233_v58  ;;  %v2983_v62 = vadd.f32 1e-05, %v6125_v46  ;;  %v1902_v30 = vadd.f32 %v1901_v14, %v1900_v41  ;;  %v4491_v46 = vld [vmem:[%s5547_s18 + $0x130] sm:$0xff] }
 0x1d5   : > { %v4237_v44 = vpop.eup %4236  ;;  %v2593_v47 = vmul.f32 0.6931472, %v4235_v8  ;;  %v2602_v23 = vadd.f32 %v2601_v7, %v2600_v34  ;;  %v2603_v27 = vsel %vm2135_vm0, %v2589_v60, 0.0  ;;  %4252 = vlog2.f32 %v2982_v19 }
 0x1d6   : > { %v4239_v28 = vpop.eup %4238  ;;  %v2605_v42 = vsel %vm2135_vm0, %v2591_v36, 0.0  ;;  %v6136_v54 = vmul.f32 %v4237_v44, %v5801_v43  ;;  %4254 = vlog2.f32 %v2983_v62  ;;  %v1907_v7 = vadd.f32 %v1906_v63, %v6101_v15 }
 0x1d7   : > { %v4241_v1 = vpop.eup %4240  ;;  %v2604_v12 = vadd.f32 %v2603_v27, %v2602_v23  ;;  %v2607_v58 = vsel %vm2135_vm0, %v2593_v47, 0.0  ;;  %v6140_v10 = vmul.f32 %v4239_v28, %v5806_v2  ;;  %v1903_v8 = vrot.slane %v1902_v30, 1 }
 0x1d8   : > { %7448 = vst [vmem:[#allocation123_spill] sm:$0xff] %v6136_v54  ;;  %v4243_v34 = vpop.eup %4242  ;;  %v6144_v60 = vmul.f32 %v4241_v1, %v5808_v18  ;;  %v2984_v19 = vadd.f32 1e-05, %v6136_v54  ;;  %4256 = vrcp.f32 %v6116_v4  ;;  %v1908_v62 = vrot.slane %v1907_v7, 2 }
 0x1d9   : > { %7449 = vst [vmem:[#allocation124_spill] sm:$0xff] %v6140_v10  ;;  %v6148_v36 = vpop.eup %4244  ;;  %v2606_v14 = vadd.f32 %v2605_v42, %v2604_v12  ;;  %v6151_v23 = vmul.f32 %v4243_v34, %v5810_v29  ;;  %v2985_v41 = vadd.f32 1e-05, %v6140_v10  ;;  %v1904_v63 = vadd.f32 %v1903_v8, %v1902_v30 }
 0x1da   : > { %7450 = vst [vmem:[#allocation60_spill] sm:$0xff] %v6144_v60  ;;  %v4247_v44 = vpop.eup %4246  ;;  %v2986_v15 = vadd.f32 1e-05, %v6144_v60  ;;  %4258 = vlog2.f32 %v2984_v19  ;;  %v1912_v47 = vadd.f32 %v6148_v36, %v6026_v59  ;;  %v1909_v12 = vadd.f32 %v1908_v62, %v1907_v7 }
 0x1db   : > { %7451 = vst [vmem:[#allocation61_spill] sm:$0xff] %v6151_v23  ;;  %v4249_v27 = vpop.eup %4248  ;;  %v2608_v28 = vadd.f32 %v2607_v58, %v2606_v14  ;;  %v2987_v1 = vadd.f32 1e-05, %v6151_v23  ;;  %v2989_v18 = vmul.f32 0.6931472, %v4247_v44  ;;  %4260 = vlog2.f32 %v2985_v41 }
 0x1dc   : > { %v2991_v42 = vmul.f32 0.6931472, %v4249_v27  ;;  %4262 = vlog2.f32 %v2986_v15  ;;  %v1913_v34 = vrot.slane %v1912_v47, 4  ;;  %v7452_v19 = vrot.slane %v5987_v37, 2 }
 0x1dd   : > { %2609 = vadd.xlane.f32.xlu0 %v2608_v28  ;;  %4264 = vlog2.f32 %v2987_v1  ;;  %v3012_v29 = vrot.slane %v2989_v18, 1  ;;  %v2081_v8 = vrot.slane %v5993_v13, 2  ;;  %v4251_v2 = vpop.eup %4250  ;;  %v1910_v58 = vrot.slane %v1909_v12, 1 }
 0x1de   : > { %v2075_v30 = vadd.f32 %v7452_v19, %v5987_v37  ;;  %v3013_v43 = vrot.slane %v2991_v42, 1  ;;  %v1914_v14 = vadd.f32 %v1913_v34, %v1912_v47  ;;  %4266 = vrcp.f32 %v6127_v25 }
 0x1df   : > { %v4253_v41 = vpop.eup %4252  ;;  %v3028_v44 = vsel %vm2135_vm0, %v3012_v29, 0.0  ;;  %v6165_v7 = vmul.f32 %v4251_v2, %v7417_v51  ;;  %4268 = vrcp.f32 %v1904_v63  ;;  %v6168_v18 = vmul.f32 %v4251_v2, %v5990_v20 }
 0x1e0   : > { %v4255_v62 = vpop.eup %4254  ;;  %v2993_v37 = vmul.f32 0.6931472, %v4253_v41  ;;  %v3029_v15 = vsel %vm2135_vm0, %v3013_v43, 0.0  ;;  %v1911_v27 = vadd.f32 %v1910_v58, %v1909_v12  ;;  %v1915_v28 = vrot.slane %v1914_v14, 2 }
 0x1e1   : > { %v2995_v47 = vmul.f32 0.6931472, %v4255_v62  ;;  %v3030_v1 = vadd.f32 %v3029_v15, %v3028_v44  ;;  %4270 = vlog2.f32 %v6107_v17  ;;  %v6174_v29 = vmul.f32 %v7354_v11, %v6165_v7 }
 0x1e2   : > { %v4257_v51 = vpop.eup %4256  ;;  %v3014_v42 = vrot.slane %v2993_v37, 1  ;;  %v1916_v2 = vadd.f32 %v1915_v28, %v1914_v14  ;;  %4272 = vrcp.f32 %v1911_v27  ;;  %v6178_v20 = vmul.f32 %v7354_v11, %v6168_v18 }
 0x1e3   : > { %v3015_v43 = vrot.slane %v2995_v47, 1  ;;  %v6181_v12 = vmul.f32 %v4257_v51, %v7440_v5  ;;  %v6184_v34 = vmul.f32 %v4257_v51, %v6040_v16  ;;  %4274 = vlog2.f32 %v6116_v4  ;;  %2179 = vst [vmem:[%s5931_s22 + $0x10] sm:$0xff] %v6174_v29 }
 0x1e4   : > { %v4259_v17 = vpop.eup %4258  ;;  %v3031_v19 = vsel %vm2135_vm0, %v3014_v42, 0.0  ;;  %v1917_v58 = vrot.slane %v1916_v2, 1  ;;  %4276 = vlog2.f32 %v6127_v25  ;;  %v2076_v14 = vrot.slane %v2075_v30, 1  ;;  %2187 = vst [vmem:[%s5931_s22 + $0x50] sm:$0xff] %v6178_v20 }
 0x1e5   : > { %v4261_v41 = vpop.eup %4260  ;;  %v2997_v44 = vmul.f32 0.6931472, %v4259_v17  ;;  %v3032_v5 = vadd.f32 %v3031_v19, %v3030_v1  ;;  %v3033_v62 = vsel %vm2135_vm0, %v3015_v43, 0.0  ;;  %4278 = vlog2.f32 %v1904_v63 }
 0x1e6   : > { %v4263_v16 = vpop.eup %4262  ;;  %v2999_v4 = vmul.f32 0.6931472, %v4261_v41  ;;  %v1918_v37 = vadd.f32 %v1917_v58, %v1916_v2  ;;  %4280 = vlog2.f32 %v1911_v27  ;;  %v6196_v15 = vmul.f32 %v7355_v55, %v6181_v12 }
 0x1e7   : > { %v4265_v28 = vpop.eup %4264  ;;  %v3001_v25 = vmul.f32 0.6931472, %v4263_v16  ;;  %v3016_v47 = vrot.slane %v2997_v44, 1  ;;  %v3034_v51 = vadd.f32 %v3033_v62, %v3032_v5  ;;  %v6200_v1 = vmul.f32 %v7355_v55, %v6184_v34 }
 0x1e8   : > { %v4267_v42 = vpop.eup %4266  ;;  %v3003_v63 = vmul.f32 0.6931472, %v4265_v28  ;;  %v3017_v43 = vrot.slane %v2999_v4, 1  ;;  %4282 = vrcp.f32 %v1918_v37  ;;  %v6202_v17 = vadd.f32 %v2076_v14, %v2075_v30  ;;  %2180 = vst [vmem:[%s5931_s22 + $0x18] sm:$0xff] %v6196_v15 }
 0x1e9   : > { %v4269_v27 = vpop.eup %4268  ;;  %v3018_v2 = vrot.slane %v3001_v25, 1  ;;  %v3035_v19 = vsel %vm2135_vm0, %v3016_v47, 0.0  ;;  %v1928_v58 = vmul.f32 %v4267_v42, %v5981_v35  ;;  %v1939_v41 = vmul.f32 %v4267_v42, %v6044_v53  ;;  %2188 = vst [vmem:[%s5931_s22 + $0x58] sm:$0xff] %v6200_v1 }
 0x1ea   : > { %v3019_v44 = vrot.slane %v3003_v63, 1  ;;  %v3036_v5 = vadd.f32 %v3035_v19, %v3034_v51  ;;  %v3037_v62 = vsel %vm2135_vm0, %v3017_v43, 0.0  ;;  %v1930_v16 = vmul.f32 %v4269_v27, %v6016_v31  ;;  %v7453_v19 = vld [vmem:[#allocation89_spill] sm:$0xff] }
 0x1eb   : > { %v4271_v30 = vpop.eup %4270  ;;  %v3039_v14 = vsel %vm2135_vm0, %v3018_v2, 0.0  ;;  %v1940_v4 = vmul.f32 %v4269_v27, %v6091_v0  ;;  %4284 = vlog2.f32 %v1918_v37  ;;  %v6216_v28 = vmul.f32 %v7356_v56, %v1928_v58 }
 0x1ec   : > { %v4273_v35 = vpop.eup %4272  ;;  %v3038_v53 = vadd.f32 %v3037_v62, %v3036_v5  ;;  %v3041_v25 = vsel %vm2135_vm0, %v3019_v44, 0.0  ;;  %v1948_v47 = vmul.f32 0.6931472, %v4271_v30  ;;  %v6220_v51 = vmul.f32 %v7357_v61, %v1930_v16 }
 0x1ed   : > { %v4275_v31 = vpop.eup %4274  ;;  %v1932_v42 = vmul.f32 %v4273_v35, %v6022_v48  ;;  %v1941_v63 = vmul.f32 %v4273_v35, %v6094_v9  ;;  %v6225_v0 = vmul.f32 %v7356_v56, %v1939_v41  ;;  %v6228_v37 = vmul.f32 %v7357_v61, %v1940_v4  ;;  %2181 = vst [vmem:[%s5931_s22 + $0x20] sm:$0xff] %v6216_v28 }
 0x1ee   : > { %v4277_v43 = vpop.eup %4276  ;;  %v3040_v27 = vadd.f32 %v3039_v14, %v3038_v53  ;;  %v1950_v2 = vmul.f32 0.6931472, %v4275_v31  ;;  %v1961_v44 = vsub.f32 %v7453_v19, %v1948_v47  ;;  %v1969_v5 = vsub.f32 %v5842_v50, %v1948_v47  ;;  %2182 = vst [vmem:[%s5931_s22 + $0x28] sm:$0xff] %v6220_v51  ;;  %v7454_v47 = vld [vmem:[#allocation105_spill] sm:$0xff] }
 0x1ef   : > { %v4279_v48 = vpop.eup %4278  ;;  %v1952_v9 = vmul.f32 0.6931472, %v4277_v43  ;;  %v6237_v62 = vmul.f32 %v7358_v24, %v1932_v42  ;;  %v6240_v30 = vmul.f32 %v7358_v24, %v1941_v63  ;;  %v2082_v14 = vadd.f32 %v2081_v8, %v5993_v13  ;;  %2189 = vst [vmem:[%s5931_s22 + $0x60] sm:$0xff] %v6225_v0  ;;  %2190 = vst [vmem:[%s5931_s22 + $0x68] sm:$0xff] %v6228_v37  ;;  %v7455_v8 = vld [vmem:[#allocation86_spill] sm:$0xff] }
 0x1f0   : > { %v4281_v50 = vpop.eup %4280  ;;  %v3042_v35 = vadd.f32 %v3041_v25, %v3040_v27  ;;  %v1954_v53 = vmul.f32 0.6931472, %v4279_v48  ;;  %v1962_v31 = vsub.f32 %v7454_v47, %v1950_v2  ;;  %v1970_v43 = vsub.f32 %v5846_v49, %v1950_v2  ;;  %v7456_v27 = vld [vmem:[#allocation87_spill] sm:$0xff]  ;;  %v7457_v2 = vld [vmem:[#allocation104_spill] sm:$0xff] }
 0x1f1   : > { %v1956_v19 = vmul.f32 0.6931472, %v4281_v50  ;;  %v1963_v33 = vsub.f32 %v5862_v21, %v1952_v9  ;;  %v1971_v23 = vsub.f32 %v5865_v39, %v1952_v9  ;;  %v2057_v60 = vmul.f32 %v1961_v44, %v6165_v7  ;;  %2183 = vst [vmem:[%s5931_s22 + $0x30] sm:$0xff] %v6237_v62  ;;  %2191 = vst [vmem:[%s5931_s22 + $0x70] sm:$0xff] %v6240_v30  ;;  %v7458_v44 = vld [vmem:[#allocation113_spill] sm:$0xff] }
 0x1f2   : > { %v4283_v13 = vpop.eup %4282  ;;  %3043 = vadd.xlane.f32.xlu1 %v3042_v35  ;;  %v1964_v25 = vsub.f32 %v7455_v8, %v1954_v53  ;;  %v1972_v48 = vsub.f32 %v7456_v27, %v1954_v53  ;;  %v2058_v47 = vmul.f32 %v1962_v31, %v6181_v12  ;;  %v2065_v49 = vmul.f32 %v1969_v5, %v6168_v18  ;;  %v7459_v27 = vld [vmem:[#allocation125_spill] sm:$0xff] }
 0x1f3   : > { %v1934_v21 = vmul.f32 %v4283_v13, %v6026_v59  ;;  %v1942_v39 = vmul.f32 %v4283_v13, %v6148_v36  ;;  %v1965_v7 = vsub.f32 %v7457_v2, %v1956_v19  ;;  %v1973_v9 = vsub.f32 %v7458_v44, %v1956_v19  ;;  %v7463_v44 = vld [vmem:[#allocation78_spill] sm:$0xff] }
 0x1f4   : > { %v2059_v50 = vmul.f32 %v1963_v33, %v1928_v58  ;;  %v2060_v10 = vmul.f32 %v1964_v25, %v1930_v16  ;;  %v2066_v35 = vmul.f32 %v1970_v43, %v6184_v34  ;;  %v2067_v8 = vmul.f32 %v1971_v23, %v1939_v41  ;;  %v7460_v34 = vld [vmem:[#allocation77_spill] sm:$0xff]  ;;  %v7461_v23 = vld [vmem:[#allocation103_spill] sm:$0xff]  ;;  %v7462_v25 = vld [vmem:[#allocation114_spill] sm:$0xff] }
 0x1f5   : > { %v4285_v53 = vpop.eup %4284  ;;  %v6268_v12 = vmul.f32 %v7459_v27, %v1934_v21  ;;  %v6271_v18 = vmul.f32 %v7459_v27, %v1942_v39  ;;  %v2061_v59 = vmul.f32 %v1965_v7, %v1932_v42  ;;  %v2068_v36 = vmul.f32 %v1972_v48, %v1940_v4 }
 0x1f6   : > { %v1958_v5 = vmul.f32 0.6931472, %v4285_v53  ;;  %v2069_v31 = vmul.f32 %v1973_v9, %v1941_v63  ;;  %v2083_v13 = vrot.slane %v2082_v14, 1  ;;  %v2085_v19 = vadd.f32 %v2065_v49, %v2057_v60 }
 0x1f7   : > { %v2092_v33 = vadd.f32 %v2066_v35, %v2058_v47  ;;  %v2099_v58 = vadd.f32 %v2067_v8, %v2059_v50  ;;  %v2106_v16 = vadd.f32 %v2068_v36, %v2060_v10  ;;  %v2127_v43 = vmul.f32 %v7460_v34, %v6202_v17  ;;  %2184 = vst [vmem:[%s5931_s22 + $0x38] sm:$0xff] %v6268_v12 }
 0x1f8   : > { %2192 = vst [vmem:[%s5931_s22 + $0x78] sm:$0xff] %v6271_v18  ;;  %v1966_v41 = vsub.f32 %v7461_v23, %v1958_v5  ;;  %v1974_v2 = vsub.f32 %v7462_v25, %v1958_v5  ;;  %v2084_v42 = vadd.f32 %v2083_v13, %v2082_v14  ;;  %v2086_v4 = vrot.slane %v2085_v19, 4 }
 0x1f9   : > { %v2093_v48 = vrot.slane %v2092_v33, 4  ;;  %v2100_v63 = vrot.slane %v2099_v58, 4  ;;  %v2107_v7 = vrot.slane %v2106_v16, 4  ;;  %v2113_v60 = vadd.f32 %v2069_v31, %v2061_v59 }
 0x1fa   : > { %v2062_v47 = vmul.f32 %v1966_v41, %v1934_v21  ;;  %v2070_v49 = vmul.f32 %v1974_v2, %v1942_v39  ;;  %v2087_v10 = vadd.f32 %v2086_v4, %v2085_v19  ;;  %v2128_v9 = vmul.f32 %v7463_v44, %v2084_v42  ;;  %v6290_v4 = vld [vmem:[%s5547_s18 + $0x18] sm:$0xff] }
 0x1fb   : > { %v2094_v17 = vadd.f32 %v2093_v48, %v2092_v33  ;;  %v2101_v50 = vadd.f32 %v2100_v63, %v2099_v58  ;;  %v2108_v35 = vadd.f32 %v2107_v7, %v2106_v16  ;;  %v2114_v8 = vrot.slane %v2113_v60, 4  ;;  %v6285_v33 = vld [vmem:[%s5547_s18 + $0x10] sm:$0xff]  ;;  %v6295_v63 = vld [vmem:[%s5547_s18 + $0x20] sm:$0xff] }
 0x1fc   : > { %v2088_v53 = vrot.slane %v2087_v10, 2  ;;  %v2120_v36 = vadd.f32 %v2070_v49, %v2062_v47  ;;  %v2136_v5 = vsel %vm2135_vm0, %v2127_v43, 0.0  ;;  %v2137_v14 = vsel %vm2135_vm0, %v2128_v9, 0.0 }
 0x1fd   : > { %v2095_v13 = vrot.slane %v2094_v17, 2  ;;  %v2102_v23 = vrot.slane %v2101_v50, 2  ;;  %v2109_v21 = vrot.slane %v2108_v35, 2  ;;  %v2115_v39 = vadd.f32 %v2114_v8, %v2113_v60 }
 0x1fe   : > { %v2089_v59 = vadd.f32 %v2088_v53, %v2087_v10  ;;  %v2121_v31 = vrot.slane %v2120_v36, 4  ;;  %v2138_v19 = vadd.f32 %v2137_v14, %v2136_v5  ;;  %v2621_v58 = vmul.f32 %v6285_v33, %v6174_v29 }
 0x1ff   : > { %v2096_v16 = vadd.f32 %v2095_v13, %v2094_v17  ;;  %v2103_v41 = vadd.f32 %v2102_v23, %v2101_v50  ;;  %v2110_v43 = vadd.f32 %v2109_v21, %v2108_v35  ;;  %v2116_v25 = vrot.slane %v2115_v39, 2  ;;  %v6301_v17 = vld [vmem:[%s5547_s18 + $0x28] sm:$0xff]  ;;  %v6306_v35 = vld [vmem:[%s5547_s18 + $0x30] sm:$0xff]  ;;  %v6314_v21 = vld [vmem:[%s5547_s18 + $0x38] sm:$0xff] }
 0x200   : > { %v2090_v2 = vrot.slane %v2089_v59, 1  ;;  %v2122_v42 = vadd.f32 %v2121_v31, %v2120_v36  ;;  %v2622_v48 = vmul.f32 %v6290_v4, %v6196_v15  ;;  %v2623_v7 = vmul.f32 %v6295_v63, %v6216_v28  ;;  %2637 = vst [vmem:[%s5959_s25 + $0x10] sm:$0xff] %v2621_v58 }
 0x201   : > { %v2097_v60 = vrot.slane %v2096_v16, 1  ;;  %v2104_v47 = vrot.slane %v2103_v41, 1  ;;  %v2111_v49 = vrot.slane %v2110_v43, 1  ;;  %v2117_v10 = vadd.f32 %v2116_v25, %v2115_v39 }
 0x202   : > { %v2091_v44 = vadd.f32 %v2090_v2, %v2089_v59  ;;  %v2123_v9 = vrot.slane %v2122_v42, 2  ;;  %v2624_v50 = vmul.f32 %v6301_v17, %v6220_v51  ;;  %v2625_v8 = vmul.f32 %v6306_v35, %v6237_v62  ;;  %2638 = vst [vmem:[%s5959_s25 + $0x18] sm:$0xff] %v2622_v48  ;;  %2639 = vst [vmem:[%s5959_s25 + $0x20] sm:$0xff] %v2623_v7  ;;  %v6319_v59 = vld [vmem:[%s5547_s18 + $0x50] sm:$0xff]  ;;  %v6330_v2 = vld [vmem:[%s5547_s18 + $0x58] sm:$0xff] }
 0x203   : > { %v2098_v53 = vadd.f32 %v2097_v60, %v2096_v16  ;;  %v2105_v36 = vadd.f32 %v2104_v47, %v2103_v41  ;;  %v2112_v5 = vadd.f32 %v2111_v49, %v2110_v43  ;;  %v2118_v14 = vrot.slane %v2117_v10, 1  ;;  %v6335_v48 = vld [vmem:[%s5547_s18 + $0x60] sm:$0xff] }
 0x204   : > { %v2124_v13 = vadd.f32 %v2123_v9, %v2122_v42  ;;  %v2129_v23 = vmul.f32 %v7354_v11, %v2091_v44  ;;  %v2626_v39 = vmul.f32 %v6314_v21, %v6268_v12  ;;  %v2629_v31 = vmul.f32 %v6319_v59, %v6178_v20  ;;  %2640 = vst [vmem:[%s5959_s25 + $0x28] sm:$0xff] %v2624_v50  ;;  %v6351_v9 = vld [vmem:[%s5547_s18 + $0x70] sm:$0xff] }
 0x205   : > { %2641 = vst [vmem:[%s5959_s25 + $0x30] sm:$0xff] %v2625_v8  ;;  %v2119_v58 = vadd.f32 %v2118_v14, %v2117_v10  ;;  %v2130_v16 = vmul.f32 %v7355_v55, %v2098_v53  ;;  %v2131_v41 = vmul.f32 %v7356_v56, %v2105_v36  ;;  %v2132_v11 = vmul.f32 %v7357_v61, %v2112_v5  ;;  %v6346_v10 = vld [vmem:[%s5547_s18 + $0x68] sm:$0xff]  ;;  %v6359_v8 = vld [vmem:[%s5547_s18 + $0x78] sm:$0xff]  ;;  %v6364_v36 = vld [vmem:[%s5547_s18 + $0x90] sm:$0xff] }
 0x206   : > { %v2125_v43 = vrot.slane %v2124_v13, 1  ;;  %v2139_v25 = vsel %vm2135_vm0, %v2129_v23, 0.0  ;;  %v2630_v42 = vmul.f32 %v6330_v2, %v6200_v1  ;;  %v2631_v55 = vmul.f32 %v6335_v48, %v6225_v0  ;;  %2642 = vst [vmem:[%s5959_s25 + $0x38] sm:$0xff] %v2626_v39  ;;  %2645 = vst [vmem:[%s5959_s25 + $0x50] sm:$0xff] %v2629_v31  ;;  %v6377_v39 = vld [vmem:[%s5547_s18 + $0xa0] sm:$0xff] }
 0x207   : > { %v2133_v56 = vmul.f32 %v7358_v24, %v2119_v58  ;;  %v2140_v61 = vadd.f32 %v2139_v25, %v2138_v19  ;;  %v2141_v7 = vsel %vm2135_vm0, %v2130_v16, 0.0  ;;  %v2143_v60 = vsel %vm2135_vm0, %v2131_v41, 0.0  ;;  %v6382_v58 = vld [vmem:[%s5547_s18 + $0xa8] sm:$0xff]  ;;  %v6388_v41 = vld [vmem:[%s5547_s18 + $0xb0] sm:$0xff] }
 0x208   : > { %v2126_v47 = vadd.f32 %v2125_v43, %v2124_v13  ;;  %v2145_v49 = vsel %vm2135_vm0, %v2132_v11, 0.0  ;;  %v2632_v44 = vmul.f32 %v6346_v10, %v6228_v37  ;;  %v2633_v24 = vmul.f32 %v6351_v9, %v6240_v30  ;;  %2646 = vst [vmem:[%s5959_s25 + $0x58] sm:$0xff] %v2630_v42  ;;  %2647 = vst [vmem:[%s5959_s25 + $0x60] sm:$0xff] %v2631_v55  ;;  %v6372_v13 = vld [vmem:[%s5547_s18 + $0x98] sm:$0xff]  ;;  %v6398_v42 = vld [vmem:[%s5547_s18 + $0xd0] sm:$0xff] }
 0x209   : > { %v2142_v19 = vadd.f32 %v2141_v7, %v2140_v61  ;;  %v2147_v50 = vsel %vm2135_vm0, %v2133_v56, 0.0  ;;  %v2634_v53 = vmul.f32 %v6359_v8, %v6271_v18  ;;  %v3055_v5 = vmul.f32 %v6364_v36, %v6174_v29  ;;  %v6393_v43 = vld [vmem:[%s5547_s18 + $0xb8] sm:$0xff] }
 0x20a   : > { %v2134_v14 = vmul.f32 %v7459_v27, %v2126_v47  ;;  %2648 = vst [vmem:[%s5959_s25 + $0x68] sm:$0xff] %v2632_v44  ;;  %2649 = vst [vmem:[%s5959_s25 + $0x70] sm:$0xff] %v2633_v24  ;;  %v3056_v23 = vmul.f32 %v6372_v13, %v6196_v15  ;;  %v3057_v31 = vmul.f32 %v6377_v39, %v6216_v28  ;;  %v6405_v61 = vld [vmem:[%s5547_s18 + $0xd8] sm:$0xff]  ;;  %v6415_v44 = vld [vmem:[%s5547_s18 + $0xe8] sm:$0xff]  ;;  %v6526_v26 = vadd.f32 1e-05, %v6268_v12 }
 0x20b   : > { %v3058_v27 = vmul.f32 %v6382_v58, %v6220_v51  ;;  %v2144_v16 = vadd.f32 %v2143_v60, %v2142_v19  ;;  %2650 = vst [vmem:[%s5959_s25 + $0x78] sm:$0xff] %v2634_v53  ;;  %v3059_v11 = vmul.f32 %v6388_v41, %v6237_v62  ;;  %v3060_v25 = vmul.f32 %v6393_v43, %v6268_v12  ;;  %v6410_v60 = vld [vmem:[%s5547_s18 + $0xe0] sm:$0xff]  ;;  %v6423_v53 = vld [vmem:[%s5547_s18 + $0xf0] sm:$0xff] }
 0x20c   : > { %v3063_v55 = vmul.f32 %v6398_v42, %v6178_v20  ;;  %3071 = vst [vmem:[%s5959_s25 + $0x90] sm:$0xff] %v3055_v5  ;;  %v2149_v56 = vsel %vm2135_vm0, %v2134_v14, 0.0  ;;  %v3064_v7 = vmul.f32 %v6405_v61, %v6200_v1  ;;  %v3065_v47 = vmul.f32 %v6410_v60, %v6225_v0  ;;  %3072 = vst [vmem:[%s5959_s25 + $0x98] sm:$0xff] %v3056_v23  ;;  %v6428_v14 = vld [vmem:[%s5547_s18 + $0xf8] sm:$0xff]  ;;  %v4487_v23 = vld [vmem:[%s5547_s18 + $0x110] sm:$0xff] }
 0x20d   : > { %v3066_v24 = vmul.f32 %v6415_v44, %v6228_v37  ;;  %3073 = vst [vmem:[%s5959_s25 + $0xa0] sm:$0xff] %v3057_v31  ;;  %3074 = vst [vmem:[%s5959_s25 + $0xa8] sm:$0xff] %v3058_v27  ;;  %v2146_v19 = vadd.f32 %v2145_v49, %v2144_v16  ;;  %v3067_v5 = vmul.f32 %v6423_v53, %v6240_v30  ;;  %v4488_v31 = vld [vmem:[%s5547_s18 + $0x118] sm:$0xff]  ;;  %v4489_v16 = vld [vmem:[%s5547_s18 + $0x120] sm:$0xff] }
 0x20e   : > { %v3068_v54 = vmul.f32 %v6428_v14, %v6271_v18  ;;  %3075 = vst [vmem:[%s5959_s25 + $0xb0] sm:$0xff] %v3059_v11  ;;  %3076 = vst [vmem:[%s5959_s25 + $0xb8] sm:$0xff] %v3060_v25  ;;  %v3489_v49 = vmul.f32 %v4487_v23, %v6174_v29  ;;  %v3490_v27 = vmul.f32 %v4488_v31, %v6196_v15  ;;  %v4490_v25 = vld [vmem:[%s5547_s18 + $0x128] sm:$0xff] }
 0x20f   : > { %3079 = vst [vmem:[%s5959_s25 + $0xd0] sm:$0xff] %v3063_v55  ;;  %3080 = vst [vmem:[%s5959_s25 + $0xd8] sm:$0xff] %v3064_v7  ;;  %v3491_v11 = vmul.f32 %v4489_v16, %v6216_v28  ;;  %v3492_v55 = vmul.f32 %v4490_v25, %v6220_v51  ;;  %v3493_v7 = vmul.f32 %v4491_v46, %v6237_v62  ;;  %v4493_v31 = vld [vmem:[%s5547_s18 + $0x148] sm:$0xff] }
 0x210   : > { %3081 = vst [vmem:[%s5959_s25 + $0xe0] sm:$0xff] %v3065_v47  ;;  %3082 = vst [vmem:[%s5959_s25 + $0xe8] sm:$0xff] %v3066_v24  ;;  %v2148_v47 = vadd.f32 %v2147_v50, %v2146_v19  ;;  %v4492_v24 = vld [vmem:[%s5547_s18 + $0x138] sm:$0xff]  ;;  %v6454_v16 = vld [vmem:[%s5931_s22 + $0x48] sm:$0xff]  ;;  %v3497_v46 = vmul.f32 %v4495_v6, %v6178_v20 }
 0x211   : > { %3083 = vst [vmem:[%s5959_s25 + $0xf0] sm:$0xff] %v3067_v5  ;;  %3084 = vst [vmem:[%s5959_s25 + $0xf8] sm:$0xff] %v3068_v54  ;;  %v3494_v23 = vmul.f32 %v4492_v24, %v6268_v12  ;;  %v3496_v25 = vmul.f32 %v6454_v16, %v4493_v31  ;;  %v4496_v50 = vld [vmem:[%s5547_s18 + $0x158] sm:$0xff]  ;;  %v4497_v19 = vld [vmem:[%s5547_s18 + $0x160] sm:$0xff]  ;;  %v6543_v12 = vadd.f32 1e-05, %v6200_v1 }
 0x212   : > { %3505 = vst [vmem:[%s5959_s25 + $0x110] sm:$0xff] %v3489_v49  ;;  %v3498_v54 = vmul.f32 %v4496_v50, %v6200_v1  ;;  %v3499_v5 = vmul.f32 %v4497_v19, %v6225_v0  ;;  %v4498_v24 = vld [vmem:[%s5547_s18 + $0x168] sm:$0xff]  ;;  %v4499_v31 = vld [vmem:[%s5547_s18 + $0x170] sm:$0xff]  ;;  %3506 = vst [vmem:[%s5959_s25 + $0x118] sm:$0xff] %v3490_v27  ;;  %v2150_v6 = vadd.f32 %v2149_v56, %v2148_v47 }
 0x213   : > { %v3500_v57 = vmul.f32 %v4498_v24, %v6228_v37  ;;  %v3501_v45 = vmul.f32 %v4499_v31, %v6240_v30  ;;  %3507 = vst [vmem:[%s5959_s25 + $0x120] sm:$0xff] %v3491_v11  ;;  %3508 = vst [vmem:[%s5959_s25 + $0x128] sm:$0xff] %v3492_v55  ;;  %v4500_v49 = vld [vmem:[%s5547_s18 + $0x178] sm:$0xff]  ;;  %v7464_v19 = vld [vmem:[#allocation84_spill] sm:$0xff]  ;;  %v6489_v55 = vadd.f32 1e-05, %v6174_v29 }
 0x214   : > { %3509 = vst [vmem:[%s5959_s25 + $0x130] sm:$0xff] %v3493_v7  ;;  %v3502_v50 = vmul.f32 %v4500_v49, %v6271_v18  ;;  %3510 = vst [vmem:[%s5959_s25 + $0x138] sm:$0xff] %v3494_v23  ;;  %v2039_v24 = vmul.f32 %v7460_v34, %v7464_v19  ;;  %v7465_v31 = vld [vmem:[#allocation85_spill] sm:$0xff]  ;;  %v4501_v56 = vld [vmem:[%s5931_s22 + $0x8] sm:$0xff]  ;;  %v6492_v7 = vadd.f32 1e-05, %v6196_v15  ;;  %2151 = vadd.xlane.f32.xlu0 %v2150_v6 }
 0x215   : > { %3512 = vst [vmem:[%s5959_s25 + $0x148] sm:$0xff] %v3496_v25  ;;  %3513 = vst [vmem:[%s5959_s25 + $0x150] sm:$0xff] %v3497_v46  ;;  %v2047_v27 = vmul.f32 %v7460_v34, %v7465_v31  ;;  %v6486_v11 = vadd.f32 1e-05, %v4501_v56  ;;  %v4502_v47 = vld [vmem:[%s5547_s18] sm:$0xff]  ;;  %v7466_v34 = vld [vmem:[#allocation33_spill] sm:$0xff] }
 0x216   : > { %3514 = vst [vmem:[%s5959_s25 + $0x158] sm:$0xff] %v3498_v54  ;;  %3515 = vst [vmem:[%s5959_s25 + $0x160] sm:$0xff] %v3499_v5  ;;  %v2265_v23 = vsub.f32 %v4502_v47, %v7466_v34  ;;  %v6501_v29 = vld [vmem:[%s5547_s18 + $0x80] sm:$0xff]  ;;  %v6510_v19 = vadd.f32 1e-05, %v2039_v24  ;;  %v7474_v1 = vld [vmem:[#allocation39_spill] sm:$0xff] }
 0x217   : > { %3516 = vst [vmem:[%s5959_s25 + $0x168] sm:$0xff] %v3500_v57  ;;  %3517 = vst [vmem:[%s5959_s25 + $0x170] sm:$0xff] %v3501_v45  ;;  %v2619_v45 = vmul.f32 %v4502_v47, %v2039_v24  ;;  %v4503_v57 = vld [vmem:[%s5547_s18 + $0x40] sm:$0xff]  ;;  %v3053_v15 = vmul.f32 %v6501_v29, %v2039_v24  ;;  %v6513_v31 = vadd.f32 1e-05, %v6216_v28 }
 0x218   : > { %3518 = vst [vmem:[%s5959_s25 + $0x178] sm:$0xff] %v3502_v50  ;;  %2177 = vst [vmem:[%s5931_s22] sm:$0xff] %v2039_v24  ;;  %v2627_v25 = vmul.f32 %v4503_v57, %v2047_v27  ;;  %v6505_v46 = vld [vmem:[%s5547_s18 + $0xc0] sm:$0xff]  ;;  %v6520_v56 = vadd.f32 1e-05, %v6220_v51  ;;  %v6523_v47 = vadd.f32 1e-05, %v6237_v62 }
 0x219   : > { %2185 = vst [vmem:[%s5931_s22 + $0x40] sm:$0xff] %v2047_v27  ;;  %v3061_v54 = vmul.f32 %v6505_v46, %v2047_v27  ;;  %v4506_v5 = vld [vmem:[%s5547_s18 + $0x100] sm:$0xff]  ;;  %2635 = vst [vmem:[%s5959_s25] sm:$0xff] %v2619_v45  ;;  %v6532_v28 = vadd.f32 1e-05, %v2047_v27  ;;  %v6535_v45 = vadd.f32 1e-05, %v6454_v16 }
 0x21a   : > { %v3487_v6 = vmul.f32 %v4506_v5, %v2039_v24  ;;  %v4507_v49 = vld [vmem:[%s5547_s18 + $0x140] sm:$0xff]  ;;  %2643 = vst [vmem:[%s5959_s25 + $0x40] sm:$0xff] %v2627_v25  ;;  %3069 = vst [vmem:[%s5959_s25 + $0x80] sm:$0xff] %v3053_v15  ;;  %v4508_v5 = vld [vmem:[%s5547_s18 + $0x8] sm:$0xff]  ;;  %v6538_v51 = vadd.f32 1e-05, %v6178_v20 }
 0x21b   : > { %v3495_v50 = vmul.f32 %v4507_v49, %v2047_v27  ;;  %3077 = vst [vmem:[%s5959_s25 + $0xc0] sm:$0xff] %v3061_v54  ;;  %v7467_v49 = vld [vmem:[#allocation34_spill] sm:$0xff]  ;;  %v7468_v25 = vld [vmem:[#allocation35_spill] sm:$0xff]  ;;  %v6546_v15 = vadd.f32 1e-05, %v6225_v0  ;;  %v7470_v27 = vld [vmem:[#allocation37_spill] sm:$0xff] }
 0x21c   : > { %v2266_v24 = vsub.f32 %v4508_v5, %v7467_v49  ;;  %3503 = vst [vmem:[%s5959_s25 + $0x100] sm:$0xff] %v3487_v6  ;;  %v2267_v62 = vsub.f32 %v6285_v33, %v7468_v25  ;;  %v6549_v54 = vadd.f32 1e-05, %v6228_v37  ;;  %v2268_v6 = vsub.f32 %v6290_v4, %v7470_v27  ;;  %v7475_v0 = vld [vmem:[#allocation40_spill] sm:$0xff]  ;;  %v7476_v37 = vld [vmem:[#allocation41_spill] sm:$0xff] }
 0x21d   : > { %3511 = vst [vmem:[%s5959_s25 + $0x140] sm:$0xff] %v3495_v50  ;;  %v6554_v16 = vadd.f32 1e-05, %v6240_v30  ;;  %v6557_v20 = vadd.f32 1e-05, %v6271_v18  ;;  %v7473_v50 = vld [vmem:[#allocation38_spill] sm:$0xff]  ;;  %v2270_v5 = vsub.f32 %v6301_v17, %v7474_v1  ;;  %v2271_v3 = vsub.f32 %v6306_v35, %v7475_v0 }
 0x21e   : > { %7469 = vst [vmem:[#allocation52_spill] sm:$0xff] %v6549_v54  ;;  %v2269_v33 = vsub.f32 %v6295_v63, %v7473_v50  ;;  %v2272_v52 = vsub.f32 %v6314_v21, %v7476_v37  ;;  %v2273_v4 = vsub.f32 %v4503_v57, %v7466_v34  ;;  %v2274_v30 = vsub.f32 %v4509_v40, %v7467_v49 }
 0x21f   : > { %7471 = vst [vmem:[#allocation70_spill] sm:$0xff] %v6554_v16  ;;  %7472 = vst [vmem:[#allocation53_spill] sm:$0xff] %v6557_v20  ;;  %v2275_v18 = vsub.f32 %v6319_v59, %v7468_v25  ;;  %v2276_v63 = vsub.f32 %v6330_v2, %v7470_v27  ;;  %v2277_v17 = vsub.f32 %v6335_v48, %v7473_v50  ;;  %v2281_v57 = vmul.f32 5.0, %v2265_v23 }
 0x220   : > { %v2278_v35 = vsub.f32 %v6346_v10, %v7474_v1  ;;  %v2279_v21 = vsub.f32 %v6351_v9, %v7475_v0  ;;  %v2280_v34 = vsub.f32 %v6359_v8, %v7476_v37  ;;  %v2282_v40 = vmul.f32 5.0, %v2266_v24 }
 0x221   : > { %v2283_v49 = vmul.f32 5.0, %v2267_v62  ;;  %v2284_v38 = vmul.f32 5.0, %v2268_v6  ;;  %v2285_v59 = vmul.f32 5.0, %v2269_v33  ;;  %v2286_v25 = vmul.f32 5.0, %v2270_v5 }
 0x222   : > { %v2287_v22 = vmul.f32 5.0, %v2271_v3  ;;  %v2288_v2 = vmul.f32 5.0, %v2272_v52  ;;  %v2289_v27 = vmul.f32 5.0, %v2273_v4  ;;  %v2290_v32 = vmul.f32 5.0, %v2274_v30 }
 0x223   : > { %v2291_v48 = vmul.f32 5.0, %v2275_v18  ;;  %v2292_v50 = vmul.f32 5.0, %v2276_v63  ;;  %v2293_v20 = vmul.f32 5.0, %v2277_v17  ;;  %v2294_v10 = vmul.f32 5.0, %v2278_v35 }
 0x224   : > { %v2295_v1 = vmul.f32 5.0, %v2279_v21  ;;  %v2296_v16 = vmul.f32 5.0, %v2280_v34  ;;  %v2297_v9 = vmul.f32 %v2281_v57, %v2281_v57  ;;  %v2298_v0 = vmul.f32 %v2282_v40, %v2282_v40 }
 0x225   : > { %v2299_v54 = vmul.f32 %v2283_v49, %v2283_v49  ;;  %v2300_v8 = vmul.f32 %v2284_v38, %v2284_v38  ;;  %v2301_v23 = vmul.f32 %v2285_v59, %v2285_v59  ;;  %v2302_v24 = vmul.f32 %v2286_v25, %v2286_v25 }
 0x226   : > { %v2303_v62 = vmul.f32 %v2287_v22, %v2287_v22  ;;  %v2304_v6 = vmul.f32 %v2288_v2, %v2288_v2  ;;  %v2305_v33 = vmul.f32 %v2289_v27, %v2289_v27  ;;  %v2306_v5 = vmul.f32 %v2290_v32, %v2290_v32 }
 0x227   : > { %v2307_v3 = vmul.f32 %v2291_v48, %v2291_v48  ;;  %v2308_v52 = vmul.f32 %v2292_v50, %v2292_v50  ;;  %v2309_v37 = vmul.f32 %v2293_v20, %v2293_v20  ;;  %v2310_v4 = vmul.f32 %v2294_v10, %v2294_v10 }
 0x228   : > { %v2311_v30 = vmul.f32 %v2295_v1, %v2295_v1  ;;  %v2312_v18 = vmul.f32 %v2296_v16, %v2296_v16  ;;  %v2313_v63 = vmul.f32 -0.5, %v2297_v9  ;;  %v2314_v17 = vmul.f32 -0.5, %v2298_v0 }
 0x229   : > { %v2315_v35 = vmul.f32 -0.5, %v2299_v54  ;;  %v2316_v21 = vmul.f32 -0.5, %v2300_v8  ;;  %v2317_v34 = vmul.f32 -0.5, %v2301_v23  ;;  %v2318_v57 = vmul.f32 -0.5, %v2302_v24  ;;  %v7477_v54 = vld [vmem:[#allocation42_spill] sm:$0xff]  ;;  %v4510_v24 = vld [vmem:[%s5547_s18 + $0x88] sm:$0xff] }
 0x22a   : > { %v2319_v40 = vmul.f32 -0.5, %v2303_v62  ;;  %v2320_v38 = vmul.f32 -0.5, %v2304_v6  ;;  %v2321_v49 = vmul.f32 -0.5, %v2305_v33  ;;  %v2322_v59 = vmul.f32 -0.5, %v2306_v5  ;;  %v7478_v62 = vld [vmem:[#allocation43_spill] sm:$0xff] }
 0x22b   : > { %v2323_v22 = vmul.f32 -0.5, %v2307_v3  ;;  %v2324_v25 = vmul.f32 -0.5, %v2308_v52  ;;  %v2325_v32 = vmul.f32 -0.5, %v2309_v37  ;;  %v2326_v2 = vmul.f32 -0.5, %v2310_v4  ;;  %v7479_v52 = vld [vmem:[#allocation44_spill] sm:$0xff] }
 0x22c   : > { %v2327_v27 = vmul.f32 -0.5, %v2311_v30  ;;  %v2328_v20 = vmul.f32 -0.5, %v2312_v18  ;;  %v2329_v48 = vadd.f32 0.69049937, %v2313_v63  ;;  %v2330_v50 = vadd.f32 0.69049937, %v2314_v17 }
 0x22d   : > { %v2331_v16 = vadd.f32 0.69049937, %v2315_v35  ;;  %v2332_v10 = vadd.f32 0.69049937, %v2316_v21  ;;  %v2333_v1 = vadd.f32 0.69049937, %v2317_v34  ;;  %v2651_v9 = vsub.f32 %v6501_v29, %v7477_v54 }
 0x22e   : > { %v2334_v0 = vadd.f32 0.69049937, %v2318_v57  ;;  %v2335_v8 = vadd.f32 0.69049937, %v2319_v40  ;;  %v2336_v23 = vadd.f32 0.69049937, %v2320_v38  ;;  %v2652_v6 = vsub.f32 %v4510_v24, %v7478_v62 }
 0x22f   : > { %v2337_v33 = vadd.f32 0.69049937, %v2321_v49  ;;  %v2338_v5 = vadd.f32 0.69049937, %v2322_v59  ;;  %v2339_v3 = vadd.f32 0.69049937, %v2323_v22  ;;  %v2653_v37 = vsub.f32 %v6364_v36, %v7479_v52 }
 0x230   : > { %v2340_v4 = vadd.f32 0.69049937, %v2324_v25  ;;  %v2341_v30 = vadd.f32 0.69049937, %v2325_v32  ;;  %v2342_v18 = vadd.f32 0.69049937, %v2326_v2 }
 0x231   : > { %v7480_v63 = vld [vmem:[#allocation45_spill] sm:$0xff]  ;;  %v2343_v35 = vadd.f32 0.69049937, %v2327_v27  ;;  %v2344_v29 = vadd.f32 0.69049937, %v2328_v20  ;;  %v7481_v34 = vld [vmem:[#allocation46_spill] sm:$0xff] }
 0x232   : > { %v2654_v17 = vsub.f32 %v6372_v13, %v7480_v63  ;;  %v2345_v21 = vmul.f32 1.442695, %v2329_v48  ;;  %v2655_v57 = vsub.f32 %v6377_v39, %v7481_v34  ;;  %v2347_v40 = vmul.f32 1.442695, %v2330_v50  ;;  %v7482_v59 = vld [vmem:[#allocation47_spill] sm:$0xff] }
 0x233   : > { %v2349_v38 = vmul.f32 1.442695, %v2331_v16  ;;  %v2351_v49 = vmul.f32 1.442695, %v2332_v10  ;;  %v2656_v22 = vsub.f32 %v6382_v58, %v7482_v59  ;;  %v2353_v36 = vmul.f32 1.442695, %v2333_v1 }
 0x234   : > { %4286 = vpow2.f32 %v2345_v21  ;;  %v2355_v25 = vmul.f32 1.442695, %v2334_v0  ;;  %v2357_v32 = vmul.f32 1.442695, %v2335_v8  ;;  %v2359_v2 = vmul.f32 1.442695, %v2336_v23 }
 0x235   : > { %4288 = vpow2.f32 %v2347_v40  ;;  %v2361_v13 = vmul.f32 1.442695, %v2337_v33  ;;  %v2363_v27 = vmul.f32 1.442695, %v2338_v5  ;;  %v2365_v20 = vmul.f32 1.442695, %v2339_v3 }
 0x236   : > { %4290 = vpow2.f32 %v2349_v38  ;;  %v2367_v48 = vmul.f32 1.442695, %v2340_v4  ;;  %v2369_v24 = vmul.f32 1.442695, %v2341_v30  ;;  %v2371_v39 = vmul.f32 1.442695, %v2342_v18 }
 0x237   : > { %4292 = vpow2.f32 %v2351_v49  ;;  %v2373_v50 = vmul.f32 1.442695, %v2343_v35  ;;  %v2375_v16 = vmul.f32 1.442695, %v2344_v29  ;;  %v7483_v10 = vld [vmem:[#allocation48_spill] sm:$0xff]  ;;  %v7484_v1 = vld [vmem:[#allocation49_spill] sm:$0xff]  ;;  %v2659_v8 = vsub.f32 %v6505_v46, %v7477_v54 }
 0x238   : > { %4294 = vpow2.f32 %v2353_v36  ;;  %v2657_v58 = vsub.f32 %v6388_v41, %v7483_v10  ;;  %v2658_v0 = vsub.f32 %v6393_v43, %v7484_v1  ;;  %v4511_v23 = vld [vmem:[%s5547_s18 + $0xc8] sm:$0xff]  ;;  %v2661_v5 = vsub.f32 %v6398_v42, %v7479_v52 }
 0x239   : > { %4296 = vpow2.f32 %v2355_v25  ;;  %v2660_v33 = vsub.f32 %v4511_v23, %v7478_v62  ;;  %v2662_v3 = vsub.f32 %v6405_v61, %v7480_v63  ;;  %v2663_v41 = vsub.f32 %v6410_v60, %v7481_v34 }
 0x23a   : > { %4298 = vpow2.f32 %v2357_v32  ;;  %v2664_v43 = vsub.f32 %v6415_v44, %v7482_v59  ;;  %v2665_v46 = vsub.f32 %v6423_v53, %v7483_v10  ;;  %v2666_v54 = vsub.f32 %v6428_v14, %v7484_v1 }
 0x23b   : > { %4300 = vpow2.f32 %v2359_v2  ;;  %v2667_v62 = vmul.f32 5.0, %v2651_v9  ;;  %v2668_v4 = vmul.f32 5.0, %v2652_v6  ;;  %v2669_v42 = vmul.f32 5.0, %v2653_v37 }
 0x23c   : > { %4302 = vpow2.f32 %v2361_v13  ;;  %v2670_v52 = vmul.f32 5.0, %v2654_v17  ;;  %v2671_v61 = vmul.f32 5.0, %v2655_v57  ;;  %v2672_v30 = vmul.f32 5.0, %v2656_v22 }
 0x23d   : > { %4304 = vpow2.f32 %v2363_v27  ;;  %v2673_v18 = vmul.f32 5.0, %v2657_v58  ;;  %v2674_v60 = vmul.f32 5.0, %v2658_v0  ;;  %v2675_v44 = vmul.f32 5.0, %v2659_v8 }
 0x23e   : > { %v4287_v63 = vpop.eup %4286  ;;  %4306 = vpow2.f32 %v2365_v20  ;;  %v2676_v35 = vmul.f32 5.0, %v2660_v33  ;;  %v2677_v29 = vmul.f32 5.0, %v2661_v5  ;;  %v2678_v14 = vmul.f32 5.0, %v2662_v3 }
 0x23f   : > { %v4289_v53 = vpop.eup %4288  ;;  %4308 = vpow2.f32 %v2367_v48  ;;  %v2377_v21 = vmul.f32 %v4287_v63, %v6510_v19  ;;  %v2679_v9 = vmul.f32 5.0, %v2663_v41  ;;  %v2680_v17 = vmul.f32 5.0, %v2664_v43 }
 0x240   : > { %v4291_v6 = vpop.eup %4290  ;;  %4310 = vpow2.f32 %v2369_v24  ;;  %v2378_v37 = vmul.f32 %v4289_v53, %v6486_v11  ;;  %v2681_v34 = vmul.f32 5.0, %v2665_v46  ;;  %v2682_v38 = vmul.f32 5.0, %v2666_v54 }
 0x241   : > { %v4293_v57 = vpop.eup %4292  ;;  %4312 = vpow2.f32 %v2371_v39  ;;  %v2379_v40 = vmul.f32 %v4291_v6, %v6489_v55  ;;  %v2683_v49 = vmul.f32 %v2667_v62, %v2667_v62  ;;  %v2684_v36 = vmul.f32 %v2668_v4, %v2668_v4 }
 0x242   : > { %v4295_v59 = vpop.eup %4294  ;;  %4314 = vpow2.f32 %v2373_v50  ;;  %v2380_v22 = vmul.f32 %v4293_v57, %v6492_v7  ;;  %v2685_v25 = vmul.f32 %v2669_v42, %v2669_v42  ;;  %v2686_v13 = vmul.f32 %v2670_v52, %v2670_v52 }
 0x243   : > { %v4297_v32 = vpop.eup %4296  ;;  %4316 = vpow2.f32 %v2375_v16  ;;  %v2381_v2 = vmul.f32 %v4295_v59, %v6513_v31  ;;  %v2687_v27 = vmul.f32 %v2671_v61, %v2671_v61  ;;  %v2688_v24 = vmul.f32 %v2672_v30, %v2672_v30  ;;  %v7485_v59 = vld [vmem:[#allocation52_spill] sm:$0xff] }
 0x244   : > { %v4299_v20 = vpop.eup %4298  ;;  %v2382_v48 = vmul.f32 %v4297_v32, %v6520_v56  ;;  %v2689_v39 = vmul.f32 %v2673_v18, %v2673_v18  ;;  %v2690_v10 = vmul.f32 %v2674_v60, %v2674_v60  ;;  %v2691_v50 = vmul.f32 %v2675_v44, %v2675_v44 }
 0x245   : > { %v4301_v58 = vpop.eup %4300  ;;  %v2383_v1 = vmul.f32 %v4299_v20, %v6523_v47  ;;  %v2692_v0 = vmul.f32 %v2676_v35, %v2676_v35  ;;  %v6621_v8 = vmul.f32 %v2677_v29, %v2677_v29  ;;  %v6624_v33 = vmul.f32 %v2678_v14, %v2678_v14 }
 0x246   : > { %v4303_v23 = vpop.eup %4302  ;;  %v2384_v16 = vmul.f32 %v4301_v58, %v6526_v26  ;;  %v6626_v5 = vmul.f32 %v2679_v9, %v2679_v9  ;;  %v6628_v3 = vmul.f32 %v2680_v17, %v2680_v17  ;;  %v6631_v46 = vmul.f32 %v2681_v34, %v2681_v34  ;;  %v7487_v58 = vld [vmem:[#allocation53_spill] sm:$0xff] }
 0x247   : > { %v4305_v41 = vpop.eup %4304  ;;  %v2385_v43 = vmul.f32 %v4303_v23, %v6532_v28  ;;  %v6633_v54 = vmul.f32 %v2682_v38, %v2682_v38  ;;  %v6635_v62 = vmul.f32 -0.5, %v2683_v49  ;;  %v6638_v52 = vmul.f32 -0.5, %v2684_v36 }
 0x248   : > { %v4307_v4 = vpop.eup %4306  ;;  %v2386_v42 = vmul.f32 %v4305_v41, %v6535_v45  ;;  %v6640_v61 = vmul.f32 -0.5, %v2685_v25  ;;  %v6642_v30 = vmul.f32 -0.5, %v2686_v13  ;;  %v6645_v44 = vmul.f32 -0.5, %v2687_v27 }
 0x249   : > { %v4309_v18 = vpop.eup %4308  ;;  %v2387_v60 = vmul.f32 %v4307_v4, %v6538_v51  ;;  %v2393_v63 = vadd.f32 %v2385_v43, %v2377_v21  ;;  %v6647_v35 = vmul.f32 -0.5, %v2688_v24  ;;  %v6650_v9 = vmul.f32 -0.5, %v2689_v39 }
 0x24a   : > { %v4311_v29 = vpop.eup %4310  ;;  %v2388_v53 = vmul.f32 %v4309_v18, %v6543_v12  ;;  %v2400_v14 = vadd.f32 %v2386_v42, %v2378_v37  ;;  %v6652_v6 = vmul.f32 -0.5, %v2690_v10  ;;  %v6655_v49 = vmul.f32 -0.5, %v2691_v50  ;;  %v7486_v37 = vld [vmem:[#allocation70_spill] sm:$0xff] }
 0x24b   : > { %v4313_v17 = vpop.eup %4312  ;;  %v2389_v34 = vmul.f32 %v4311_v29, %v6546_v15  ;;  %v2394_v57 = vrot.slane %v2393_v63, 4  ;;  %v2407_v38 = vadd.f32 %v2387_v60, %v2379_v40  ;;  %v6658_v13 = vmul.f32 -0.5, %v2692_v0 }
 0x24c   : > { %v4315_v21 = vpop.eup %4314  ;;  %v2390_v36 = vmul.f32 %v4313_v17, %v7485_v59  ;;  %v2401_v25 = vrot.slane %v2400_v14, 4  ;;  %v2414_v32 = vadd.f32 %v2388_v53, %v2380_v22 }
 0x24d   : > { %v4317_v27 = vpop.eup %4316  ;;  %v2391_v20 = vmul.f32 %v4315_v21, %v7486_v37  ;;  %v2395_v24 = vadd.f32 %v2394_v57, %v2393_v63  ;;  %v2408_v39 = vrot.slane %v2407_v38, 4  ;;  %v2421_v10 = vadd.f32 %v2389_v34, %v2381_v2 }
 0x24e   : > { %v2392_v23 = vmul.f32 %v4317_v27, %v7487_v58  ;;  %v2402_v41 = vadd.f32 %v2401_v25, %v2400_v14  ;;  %v2415_v43 = vrot.slane %v2414_v32, 4  ;;  %v2428_v40 = vadd.f32 %v2390_v36, %v2382_v48 }
 0x24f   : > { %v2396_v50 = vrot.slane %v2395_v24, 2  ;;  %v2409_v4 = vadd.f32 %v2408_v39, %v2407_v38  ;;  %v2422_v42 = vrot.slane %v2421_v10, 4  ;;  %v2435_v18 = vadd.f32 %v2391_v20, %v2383_v1 }
 0x250   : > { %v2403_v60 = vrot.slane %v2402_v41, 2  ;;  %v2416_v29 = vadd.f32 %v2415_v43, %v2414_v32  ;;  %v2429_v22 = vrot.slane %v2428_v40, 4  ;;  %v2442_v0 = vadd.f32 %v2392_v23, %v2384_v16 }
 0x251   : > { %v2397_v53 = vadd.f32 %v2396_v50, %v2395_v24  ;;  %v2410_v17 = vrot.slane %v2409_v4, 2  ;;  %v2423_v59 = vadd.f32 %v2422_v42, %v2421_v10  ;;  %v2436_v21 = vrot.slane %v2435_v18, 4 }
 0x252   : > { %v2404_v63 = vadd.f32 %v2403_v60, %v2402_v41  ;;  %v2417_v57 = vrot.slane %v2416_v29, 2  ;;  %v2430_v2 = vadd.f32 %v2429_v22, %v2428_v40  ;;  %v2443_v34 = vrot.slane %v2442_v0, 4  ;;  %v7488_v60 = vld [vmem:[#allocation95_spill] sm:$0xff] }
 0x253   : > { %v2398_v27 = vrot.slane %v2397_v53, 1  ;;  %v2411_v14 = vadd.f32 %v2410_v17, %v2409_v4  ;;  %v2424_v25 = vrot.slane %v2423_v59, 2  ;;  %v2437_v48 = vadd.f32 %v2436_v21, %v2435_v18  ;;  %v7489_v21 = vld [vmem:[#allocation80_spill] sm:$0xff] }
 0x254   : > { %v2405_v36 = vrot.slane %v2404_v63, 1  ;;  %v2418_v38 = vadd.f32 %v2417_v57, %v2416_v29  ;;  %v2431_v39 = vrot.slane %v2430_v2, 2  ;;  %v2444_v1 = vadd.f32 %v2443_v34, %v2442_v0 }
 0x255   : > { %v2399_v20 = vadd.f32 %v2398_v27, %v2397_v53  ;;  %v2412_v32 = vrot.slane %v2411_v14, 1  ;;  %v2425_v43 = vadd.f32 %v2424_v25, %v2423_v59  ;;  %v2438_v16 = vrot.slane %v2437_v48, 2  ;;  %v7490_v53 = vld [vmem:[#allocation107_spill] sm:$0xff]  ;;  %v7491_v25 = vld [vmem:[#allocation110_spill] sm:$0xff] }
 0x256   : > { %v2406_v24 = vadd.f32 %v2405_v36, %v2404_v63  ;;  %v2419_v23 = vrot.slane %v2418_v38, 1  ;;  %v2432_v10 = vadd.f32 %v2431_v39, %v2430_v2  ;;  %v2445_v50 = vrot.slane %v2444_v1, 2  ;;  %v7492_v39 = vld [vmem:[#allocation108_spill] sm:$0xff] }
 0x257   : > { %v2413_v41 = vadd.f32 %v2412_v32, %v2411_v14  ;;  %v2426_v42 = vrot.slane %v2425_v43, 1  ;;  %v2439_v40 = vadd.f32 %v2438_v16, %v2437_v48  ;;  %v2513_v22 = vadd.f32 %v7488_v60, %v2399_v20  ;;  %v7493_v20 = vld [vmem:[#allocation109_spill] sm:$0xff] }
 0x258   : > { %v2420_v4 = vadd.f32 %v2419_v23, %v2418_v38  ;;  %v2433_v17 = vrot.slane %v2432_v10, 1  ;;  %v2446_v18 = vadd.f32 %v2445_v50, %v2444_v1  ;;  %v2514_v29 = vadd.f32 %v7489_v21, %v2406_v24  ;;  %v7495_v50 = vld [vmem:[#allocation96_spill] sm:$0xff] }
 0x259   : > { %v2427_v57 = vadd.f32 %v2426_v42, %v2425_v43  ;;  %v2440_v0 = vrot.slane %v2439_v40, 1  ;;  %v2515_v34 = vadd.f32 %v7490_v53, %v2413_v41  ;;  %v2521_v59 = vadd.f32 1e-05, %v2513_v22  ;;  %v7494_v43 = vld [vmem:[#allocation111_spill] sm:$0xff] }
 0x25a   : > { %v2434_v27 = vadd.f32 %v2433_v17, %v2432_v10  ;;  %v2447_v63 = vrot.slane %v2446_v18, 1  ;;  %v2516_v2 = vadd.f32 %v7491_v25, %v2420_v4  ;;  %v2522_v36 = vadd.f32 1e-05, %v2514_v29 }
 0x25b   : > { %v2441_v14 = vadd.f32 %v2440_v0, %v2439_v40  ;;  %v2517_v48 = vadd.f32 %v7492_v39, %v2427_v57  ;;  %v2523_v32 = vadd.f32 1e-05, %v2515_v34  ;;  %4318 = vlog2.f32 %v2521_v59 }
 0x25c   : > { %v2448_v38 = vadd.f32 %v2447_v63, %v2446_v18  ;;  %v2518_v1 = vadd.f32 %v7493_v20, %v2434_v27  ;;  %v2524_v16 = vadd.f32 1e-05, %v2516_v2  ;;  %4320 = vlog2.f32 %v2522_v36  ;;  %v7496_v2 = vld [vmem:[#allocation2_spill] sm:$0xff] }
 0x25d   : > { %v2519_v24 = vadd.f32 %v7494_v43, %v2441_v14  ;;  %v2525_v23 = vadd.f32 1e-05, %v2517_v48  ;;  %4322 = vlog2.f32 %v2523_v32  ;;  %v2709_v10 = vmul.f32 -0.5, %v6621_v8  ;;  %v7499_v48 = vld [vmem:[#allocation116_spill] sm:$0xff]  ;;  %v7501_v43 = vld [vmem:[#allocation117_spill] sm:$0xff] }
 0x25e   : > { %v2520_v41 = vadd.f32 %v7495_v50, %v2448_v38  ;;  %v2526_v42 = vadd.f32 1e-05, %v2518_v1  ;;  %4324 = vlog2.f32 %v2524_v16  ;;  %v2710_v40 = vmul.f32 -0.5, %v6624_v33  ;;  %v7500_v16 = vld [vmem:[#allocation4_spill] sm:$0xff] }
 0x25f   : > { %v2527_v60 = vadd.f32 1e-05, %v2519_v24  ;;  %4326 = vlog2.f32 %v2525_v23  ;;  %v2711_v22 = vmul.f32 -0.5, %v6626_v5  ;;  %v2712_v4 = vmul.f32 -0.5, %v6628_v3 }
 0x260   : > { %v2528_v17 = vadd.f32 1e-05, %v2520_v41  ;;  %4328 = vlog2.f32 %v2526_v42  ;;  %v2713_v18 = vmul.f32 -0.5, %v6631_v46  ;;  %v2714_v21 = vmul.f32 -0.5, %v6633_v54 }
 0x261   : > { %4330 = vlog2.f32 %v2527_v60  ;;  %v2715_v8 = vadd.f32 0.69049937, %v6635_v62  ;;  %v2716_v29 = vadd.f32 0.69049937, %v6638_v52  ;;  %v2717_v57 = vadd.f32 0.69049937, %v6640_v61 }
 0x262   : > { %4332 = vlog2.f32 %v2528_v17  ;;  %v2718_v33 = vadd.f32 0.69049937, %v6642_v30  ;;  %v2719_v5 = vadd.f32 0.69049937, %v6645_v44  ;;  %v2720_v3 = vadd.f32 0.69049937, %v6647_v35 }
 0x263   : > { %v2721_v0 = vadd.f32 0.69049937, %v6650_v9  ;;  %v2722_v46 = vadd.f32 0.69049937, %v6652_v6  ;;  %v2723_v54 = vadd.f32 0.69049937, %v6655_v49  ;;  %v3271_v24 = vsub.f32 %v7501_v43, %v7500_v16 }
 0x264   : > { %v2724_v53 = vadd.f32 0.69049937, %v6658_v13  ;;  %v2725_v62 = vadd.f32 0.69049937, %v2709_v10  ;;  %v2726_v34 = vadd.f32 0.69049937, %v2710_v40 }
 0x265   : > { %v4319_v52 = vpop.eup %4318  ;;  %v2727_v59 = vadd.f32 0.69049937, %v2711_v22  ;;  %v2728_v61 = vadd.f32 0.69049937, %v2712_v4  ;;  %v2729_v27 = vadd.f32 0.69049937, %v2713_v18 }
 0x266   : > { %v4321_v63 = vpop.eup %4320  ;;  %v2530_v30 = vmul.f32 0.6931472, %v4319_v52  ;;  %v2730_v25 = vadd.f32 0.69049937, %v2714_v21  ;;  %v2731_v44 = vmul.f32 1.442695, %v2715_v8 }
 0x267   : > { %v7497_v35 = vld [vmem:[#allocation115_spill] sm:$0xff]  ;;  %v4323_v9 = vpop.eup %4322  ;;  %v2532_v14 = vmul.f32 0.6931472, %v4321_v63  ;;  %v2733_v6 = vmul.f32 1.442695, %v2716_v29  ;;  %v7502_v60 = vld [vmem:[#allocation5_spill] sm:$0xff] }
 0x268   : > { %v3269_v36 = vsub.f32 %v7497_v35, %v7496_v2  ;;  %v2735_v39 = vmul.f32 1.442695, %v2717_v57  ;;  %v7498_v49 = vld [vmem:[#allocation3_spill] sm:$0xff]  ;;  %v4325_v32 = vpop.eup %4324  ;;  %v2534_v38 = vmul.f32 0.6931472, %v4323_v9  ;;  %v2545_v20 = vsel %vm2135_vm0, %v2530_v30, 0.0 }
 0x269   : > { %v3270_v13 = vsub.f32 %v7499_v48, %v7498_v49  ;;  %v2737_v1 = vmul.f32 1.442695, %v2718_v33  ;;  %v4327_v23 = vpop.eup %4326  ;;  %v2536_v10 = vmul.f32 0.6931472, %v4325_v32  ;;  %v2546_v50 = vsel %vm2135_vm0, %v2532_v14, 0.0  ;;  %v7503_v22 = vld [vmem:[#allocation118_spill] sm:$0xff] }
 0x26a   : > { %4334 = vpow2.f32 %v2731_v44  ;;  %v2739_v41 = vmul.f32 1.442695, %v2719_v5  ;;  %v4329_v42 = vpop.eup %4328  ;;  %v2547_v40 = vadd.f32 %v2546_v50, %v2545_v20  ;;  %v3272_v4 = vsub.f32 %v7503_v22, %v7502_v60  ;;  %v7504_v17 = vld [vmem:[#allocation6_spill] sm:$0xff]  ;;  %v7505_v18 = vld [vmem:[#allocation119_spill] sm:$0xff] }
 0x26b   : > { %4336 = vpow2.f32 %v2733_v6  ;;  %v3273_v21 = vsub.f32 %v7505_v18, %v7504_v17  ;;  %v4331_v8 = vpop.eup %4330  ;;  %v2538_v29 = vmul.f32 0.6931472, %v4327_v23  ;;  %v2548_v57 = vsel %vm2135_vm0, %v2534_v38, 0.0  ;;  %v7510_v17 = vld [vmem:[#allocation9_spill] sm:$0xff]  ;;  %v7511_v18 = vld [vmem:[#allocation94_spill] sm:$0xff] }
 0x26c   : > { %4338 = vpow2.f32 %v2735_v39  ;;  %v2741_v33 = vmul.f32 1.442695, %v2720_v3  ;;  %v4333_v52 = vpop.eup %4332  ;;  %v2540_v63 = vmul.f32 0.6931472, %v4329_v42  ;;  %v2549_v30 = vadd.f32 %v2548_v57, %v2547_v40  ;;  %v7508_v42 = vld [vmem:[#allocation8_spill] sm:$0xff] }
 0x26d   : > { %v2550_v5 = vsel %vm2135_vm0, %v2536_v10, 0.0  ;;  %4340 = vpow2.f32 %v2737_v1  ;;  %v2542_v44 = vmul.f32 0.6931472, %v4331_v8  ;;  %v2544_v9 = vmul.f32 0.6931472, %v4333_v52  ;;  %v7509_v40 = vld [vmem:[#allocation76_spill] sm:$0xff] }
 0x26e   : > { %4342 = vpow2.f32 %v2739_v41  ;;  %v2743_v14 = vmul.f32 1.442695, %v2721_v0  ;;  %v2551_v6 = vadd.f32 %v2550_v5, %v2549_v30  ;;  %v2745_v49 = vmul.f32 1.442695, %v2722_v46 }
 0x26f   : > { %4344 = vpow2.f32 %v2741_v33  ;;  %v2747_v48 = vmul.f32 1.442695, %v2723_v54  ;;  %v2552_v32 = vsel %vm2135_vm0, %v2538_v29, 0.0  ;;  %v2749_v38 = vmul.f32 1.442695, %v2724_v53  ;;  %v7506_v53 = vld [vmem:[#allocation7_spill] sm:$0xff] }
 0x270   : > { %4346 = vpow2.f32 %v2743_v14  ;;  %v2751_v39 = vmul.f32 1.442695, %v2725_v62  ;;  %v2553_v3 = vadd.f32 %v2552_v32, %v2551_v6  ;;  %v2554_v20 = vsel %vm2135_vm0, %v2540_v63, 0.0  ;;  %v7507_v62 = vld [vmem:[#allocation120_spill] sm:$0xff] }
 0x271   : > { %4348 = vpow2.f32 %v2745_v49  ;;  %v2753_v16 = vmul.f32 1.442695, %v2726_v34  ;;  %v2556_v1 = vsel %vm2135_vm0, %v2542_v44, 0.0  ;;  %v2558_v43 = vsel %vm2135_vm0, %v2544_v9, 0.0 }
 0x272   : > { %4350 = vpow2.f32 %v2747_v48  ;;  %v2755_v0 = vmul.f32 1.442695, %v2727_v59  ;;  %v2555_v23 = vadd.f32 %v2554_v20, %v2553_v3  ;;  %v2757_v46 = vmul.f32 1.442695, %v2728_v61 }
 0x273   : > { %4352 = vpow2.f32 %v2749_v38  ;;  %v2759_v54 = vmul.f32 1.442695, %v2729_v27  ;;  %v2761_v50 = vmul.f32 1.442695, %v2730_v25  ;;  %v3274_v41 = vsub.f32 %v7507_v62, %v7506_v53 }
 0x274   : > { %v4335_v10 = vpop.eup %4334  ;;  %4354 = vpow2.f32 %v2751_v39  ;;  %v3275_v60 = vsub.f32 %v7509_v40, %v7508_v42  ;;  %v2557_v22 = vadd.f32 %v2556_v1, %v2555_v23  ;;  %v3276_v8 = vsub.f32 %v7511_v18, %v7510_v17 }
 0x275   : > { %v4337_v34 = vpop.eup %4336  ;;  %4356 = vpow2.f32 %v2753_v16  ;;  %v3277_v59 = vmul.f32 3.3333333, %v3269_v36  ;;  %v3278_v27 = vmul.f32 3.3333333, %v3270_v13  ;;  %v3279_v25 = vmul.f32 3.3333333, %v3271_v24 }
 0x276   : > { %v4339_v61 = vpop.eup %4338  ;;  %4358 = vpow2.f32 %v2755_v0  ;;  %v3280_v29 = vmul.f32 3.3333333, %v3272_v4  ;;  %v2559_v33 = vadd.f32 %v2558_v43, %v2557_v22  ;;  %v3281_v52 = vmul.f32 3.3333333, %v3273_v21 }
 0x277   : > { %v4341_v57 = vpop.eup %4340  ;;  %4360 = vpow2.f32 %v2757_v46  ;;  %v3282_v30 = vmul.f32 3.3333333, %v3274_v41  ;;  %v3283_v5 = vmul.f32 3.3333333, %v3275_v60  ;;  %v2763_v9 = vmul.f32 %v4335_v10, %v6510_v19 }
 0x278   : > { %v4343_v63 = vpop.eup %4342  ;;  %4362 = vpow2.f32 %v2759_v54  ;;  %2560 = vadd.xlane.f32.xlu1 %v2559_v33  ;;  %v3284_v2 = vmul.f32 3.3333333, %v3276_v8  ;;  %v3285_v35 = vmul.f32 %v3277_v59, %v3277_v59  ;;  %v2764_v13 = vmul.f32 %v4337_v34, %v6486_v11 }
 0x279   : > { %v4345_v44 = vpop.eup %4344  ;;  %4364 = vpow2.f32 %v2761_v50  ;;  %v3286_v24 = vmul.f32 %v3278_v27, %v3278_v27  ;;  %v3287_v4 = vmul.f32 %v3279_v25, %v3279_v25  ;;  %v3288_v14 = vmul.f32 %v3280_v29, %v3280_v29 }
 0x27a   : > { %v4347_v36 = vpop.eup %4346  ;;  %v2765_v21 = vmul.f32 %v4339_v61, %v6489_v55  ;;  %v2766_v49 = vmul.f32 %v4341_v57, %v6492_v7  ;;  %v3289_v48 = vmul.f32 %v3281_v52, %v3281_v52  ;;  %v3290_v32 = vmul.f32 %v3282_v30, %v3282_v30  ;;  %v7512_v52 = vld [vmem:[#allocation52_spill] sm:$0xff] }
 0x27b   : > { %v4349_v6 = vpop.eup %4348  ;;  %v2767_v39 = vmul.f32 %v4343_v63, %v6513_v31  ;;  %v2768_v3 = vmul.f32 %v4345_v44, %v6520_v56  ;;  %v3291_v20 = vmul.f32 %v3283_v5, %v3283_v5  ;;  %v3292_v16 = vmul.f32 %v3284_v2, %v3284_v2 }
 0x27c   : > { %v4351_v38 = vpop.eup %4350  ;;  %v2769_v43 = vmul.f32 %v4347_v36, %v6523_v47  ;;  %v2770_v0 = vmul.f32 %v4349_v6, %v6526_v26  ;;  %v3293_v46 = vmul.f32 -0.5, %v3285_v35  ;;  %v3294_v50 = vmul.f32 -0.5, %v3286_v24 }
 0x27d   : > { %v4353_v1 = vpop.eup %4352  ;;  %v2771_v23 = vmul.f32 %v4351_v38, %v6532_v28  ;;  %v6723_v53 = vmul.f32 -0.5, %v3287_v4  ;;  %v6725_v62 = vmul.f32 -0.5, %v3288_v14  ;;  %v6728_v60 = vmul.f32 -0.5, %v3289_v48 }
 0x27e   : > { %v4355_v54 = vpop.eup %4354  ;;  %v2772_v10 = vmul.f32 %v4353_v1, %v6535_v45  ;;  %v6730_v34 = vmul.f32 -0.5, %v3290_v32  ;;  %v6733_v8 = vmul.f32 -0.5, %v3291_v20  ;;  %v6735_v59 = vmul.f32 -0.5, %v3292_v16 }
 0x27f   : > { %v4357_v41 = vpop.eup %4356  ;;  %v2773_v42 = vmul.f32 %v4355_v54, %v6538_v51  ;;  %v2779_v40 = vadd.f32 %v2771_v23, %v2763_v9  ;;  %v6738_v57 = vadd.f32 0.28503427, %v3293_v46  ;;  %v6741_v44 = vadd.f32 0.28503427, %v3294_v50 }
 0x280   : > { %v4359_v22 = vpop.eup %4358  ;;  %v2774_v17 = vmul.f32 %v4357_v41, %v6543_v12  ;;  %v2786_v18 = vadd.f32 %v2772_v10, %v2764_v13 }
 0x281   : > { %v4361_v61 = vpop.eup %4360  ;;  %v2775_v27 = vmul.f32 %v4359_v22, %v6546_v15  ;;  %v2780_v25 = vrot.slane %v2779_v40, 4  ;;  %v2793_v29 = vadd.f32 %v2773_v42, %v2765_v21 }
 0x282   : > { %v4363_v33 = vpop.eup %4362  ;;  %v2776_v63 = vmul.f32 %v4361_v61, %v7512_v52  ;;  %v2787_v30 = vrot.slane %v2786_v18, 4  ;;  %v2800_v5 = vadd.f32 %v2774_v17, %v2766_v49 }
 0x283   : > { %v4365_v9 = vpop.eup %4364  ;;  %v2777_v2 = vmul.f32 %v4363_v33, %v7486_v37  ;;  %v2781_v35 = vadd.f32 %v2780_v25, %v2779_v40  ;;  %v2794_v36 = vrot.slane %v2793_v29, 4  ;;  %v2807_v13 = vadd.f32 %v2775_v27, %v2767_v39 }
 0x284   : > { %v2778_v24 = vmul.f32 %v4365_v9, %v7487_v58  ;;  %v2788_v4 = vadd.f32 %v2787_v30, %v2786_v18  ;;  %v2801_v14 = vrot.slane %v2800_v5, 4  ;;  %v2814_v6 = vadd.f32 %v2776_v63, %v2768_v3 }
 0x285   : > { %v2782_v21 = vrot.slane %v2781_v35, 2  ;;  %v2795_v48 = vadd.f32 %v2794_v36, %v2793_v29  ;;  %v2808_v32 = vrot.slane %v2807_v13, 4  ;;  %v2821_v38 = vadd.f32 %v2777_v2, %v2769_v43 }
 0x286   : > { %v2789_v20 = vrot.slane %v2788_v4, 2  ;;  %v2802_v16 = vadd.f32 %v2801_v14, %v2800_v5  ;;  %v2815_v49 = vrot.slane %v2814_v6, 4  ;;  %v2828_v1 = vadd.f32 %v2778_v24, %v2770_v0 }
 0x287   : > { %v2783_v23 = vadd.f32 %v2782_v21, %v2781_v35  ;;  %v2796_v46 = vrot.slane %v2795_v48, 2  ;;  %v2809_v54 = vadd.f32 %v2808_v32, %v2807_v13  ;;  %v2822_v10 = vrot.slane %v2821_v38, 4  ;;  %v7513_v13 = vld [vmem:[#allocation97_spill] sm:$0xff]  ;;  %v7514_v21 = vld [vmem:[#allocation79_spill] sm:$0xff] }
 0x288   : > { %v2790_v50 = vadd.f32 %v2789_v20, %v2788_v4  ;;  %v2803_v41 = vrot.slane %v2802_v16, 2  ;;  %v2816_v39 = vadd.f32 %v2815_v49, %v2814_v6  ;;  %v2829_v42 = vrot.slane %v2828_v1, 4  ;;  %v7515_v20 = vld [vmem:[#allocation121_spill] sm:$0xff] }
 0x289   : > { %v2784_v40 = vrot.slane %v2783_v23, 1  ;;  %v2797_v22 = vadd.f32 %v2796_v46, %v2795_v48  ;;  %v2810_v17 = vrot.slane %v2809_v54, 2  ;;  %v2823_v3 = vadd.f32 %v2822_v10, %v2821_v38  ;;  %v7516_v46 = vld [vmem:[#allocation122_spill] sm:$0xff] }
 0x28a   : > { %v2791_v18 = vrot.slane %v2790_v50, 1  ;;  %v2804_v61 = vadd.f32 %v2803_v41, %v2802_v16  ;;  %v2817_v27 = vrot.slane %v2816_v39, 2  ;;  %v2830_v43 = vadd.f32 %v2829_v42, %v2828_v1  ;;  %v7517_v41 = vld [vmem:[#allocation123_spill] sm:$0xff] }
 0x28b   : > { %v2785_v25 = vadd.f32 %v2784_v40, %v2783_v23  ;;  %v2798_v29 = vrot.slane %v2797_v22, 1  ;;  %v2811_v33 = vadd.f32 %v2810_v17, %v2809_v54  ;;  %v2824_v0 = vrot.slane %v2823_v3, 2 }
 0x28c   : > { %v2792_v63 = vadd.f32 %v2791_v18, %v2790_v50  ;;  %v2805_v30 = vrot.slane %v2804_v61, 1  ;;  %v2818_v5 = vadd.f32 %v2817_v27, %v2816_v39  ;;  %v2831_v9 = vrot.slane %v2830_v43, 2  ;;  %v7519_v18 = vld [vmem:[#allocation60_spill] sm:$0xff] }
 0x28d   : > { %v2799_v2 = vadd.f32 %v2798_v29, %v2797_v22  ;;  %v2812_v35 = vrot.slane %v2811_v33, 1  ;;  %v2825_v36 = vadd.f32 %v2824_v0, %v2823_v3  ;;  %v2899_v24 = vadd.f32 %v7513_v13, %v2785_v25  ;;  %v7518_v22 = vld [vmem:[#allocation124_spill] sm:$0xff]  ;;  %v7520_v25 = vld [vmem:[#allocation61_spill] sm:$0xff] }
 0x28e   : > { %v2806_v4 = vadd.f32 %v2805_v30, %v2804_v61  ;;  %v2819_v14 = vrot.slane %v2818_v5, 1  ;;  %v2832_v6 = vadd.f32 %v2831_v9, %v2830_v43  ;;  %v2900_v48 = vadd.f32 %v7514_v21, %v2792_v63 }
 0x28f   : > { %v2813_v32 = vadd.f32 %v2812_v35, %v2811_v33  ;;  %v2826_v38 = vrot.slane %v2825_v36, 1  ;;  %v2901_v16 = vadd.f32 %v7515_v20, %v2799_v2  ;;  %v2907_v49 = vadd.f32 1e-05, %v2899_v24 }
 0x290   : > { %v2820_v1 = vadd.f32 %v2819_v14, %v2818_v5  ;;  %v2833_v23 = vrot.slane %v2832_v6, 1  ;;  %v2902_v54 = vadd.f32 %v7516_v46, %v2806_v4  ;;  %v2908_v10 = vadd.f32 1e-05, %v2900_v48 }
 0x291   : > { %v2827_v50 = vadd.f32 %v2826_v38, %v2825_v36  ;;  %v2903_v39 = vadd.f32 %v7517_v41, %v2813_v32  ;;  %v2909_v42 = vadd.f32 1e-05, %v2901_v16  ;;  %4366 = vlog2.f32 %v2907_v49  ;;  %v6762_v16 = vld [vmem:[%s5547_s18 + $0x100] sm:$0xff] }
 0x292   : > { %v2834_v40 = vadd.f32 %v2833_v23, %v2832_v6  ;;  %v2904_v17 = vadd.f32 %v7518_v22, %v2820_v1  ;;  %v2910_v3 = vadd.f32 1e-05, %v2902_v54  ;;  %4368 = vlog2.f32 %v2908_v10  ;;  %v7521_v49 = vld [vmem:[#allocation10_spill] sm:$0xff]  ;;  %v7522_v22 = vld [vmem:[#allocation11_spill] sm:$0xff] }
 0x293   : > { %v2905_v61 = vadd.f32 %v7519_v18, %v2827_v50  ;;  %v2911_v27 = vadd.f32 1e-05, %v2903_v39  ;;  %4370 = vlog2.f32 %v2909_v42  ;;  %v3303_v43 = vadd.f32 0.28503427, %v6723_v53 }
 0x294   : > { %v2906_v29 = vadd.f32 %v7520_v25, %v2834_v40  ;;  %v2912_v33 = vadd.f32 1e-05, %v2904_v17  ;;  %4372 = vlog2.f32 %v2910_v3  ;;  %v3304_v0 = vadd.f32 0.28503427, %v6725_v62  ;;  %v6769_v40 = vld [vmem:[%s5547_s18 + $0x108] sm:$0xff] }
 0x295   : > { %v2913_v63 = vadd.f32 1e-05, %v2905_v61  ;;  %4374 = vlog2.f32 %v2911_v27  ;;  %v3305_v30 = vadd.f32 0.28503427, %v6728_v60  ;;  %v3309_v5 = vmul.f32 1.442695, %v6738_v57 }
 0x296   : > { %v2914_v9 = vadd.f32 1e-05, %v2906_v29  ;;  %4376 = vlog2.f32 %v2912_v33  ;;  %v3306_v2 = vadd.f32 0.28503427, %v6730_v34  ;;  %v3311_v35 = vmul.f32 1.442695, %v6741_v44 }
 0x297   : > { %4378 = vlog2.f32 %v2913_v63  ;;  %v3307_v53 = vadd.f32 0.28503427, %v6733_v8  ;;  %v3313_v36 = vmul.f32 1.442695, %v3303_v43  ;;  %v3308_v13 = vadd.f32 0.28503427, %v6735_v59 }
 0x298   : > { %4380 = vlog2.f32 %v2914_v9  ;;  %v3315_v62 = vmul.f32 1.442695, %v3304_v0  ;;  %v3317_v24 = vmul.f32 1.442695, %v3305_v30  ;;  %v3319_v60 = vmul.f32 1.442695, %v3306_v2 }
 0x299   : > { %4382 = vpow2.f32 %v3309_v5  ;;  %v3321_v57 = vmul.f32 1.442695, %v3307_v53  ;;  %v3323_v44 = vmul.f32 1.442695, %v3308_v13  ;;  %v3085_v1 = vsub.f32 %v6762_v16, %v7521_v49  ;;  %v6774_v27 = vld [vmem:[%s5547_s18 + $0x110] sm:$0xff]  ;;  %v6779_v29 = vld [vmem:[%s5547_s18 + $0x118] sm:$0xff] }
 0x29a   : > { %4384 = vpow2.f32 %v3311_v35  ;;  %v3086_v17 = vsub.f32 %v6769_v40, %v7522_v22  ;;  %v7523_v43 = vld [vmem:[#allocation12_spill] sm:$0xff]  ;;  %v7524_v33 = vld [vmem:[#allocation13_spill] sm:$0xff]  ;;  %v6785_v2 = vld [vmem:[%s5547_s18 + $0x120] sm:$0xff] }
 0x29b   : > { %v4367_v4 = vpop.eup %4366  ;;  %4386 = vpow2.f32 %v3313_v36  ;;  %v3087_v25 = vsub.f32 %v6774_v27, %v7523_v43  ;;  %v3088_v0 = vsub.f32 %v6779_v29, %v7524_v33  ;;  %v7525_v35 = vld [vmem:[#allocation14_spill] sm:$0xff] }
 0x29c   : > { %v4369_v14 = vpop.eup %4368  ;;  %v2916_v34 = vmul.f32 0.6931472, %v4367_v4  ;;  %4388 = vpow2.f32 %v3315_v62  ;;  %v3089_v53 = vsub.f32 %v6785_v2, %v7525_v35  ;;  %v7526_v62 = vld [vmem:[#allocation98_spill] sm:$0xff]  ;;  %v7527_v4 = vld [vmem:[#allocation15_spill] sm:$0xff] }
 0x29d   : > { %v4371_v6 = vpop.eup %4370  ;;  %v2918_v21 = vmul.f32 0.6931472, %v4369_v14  ;;  %4390 = vpow2.f32 %v3317_v24  ;;  %v6798_v14 = vld [vmem:[%s5547_s18 + $0x130] sm:$0xff] }
 0x29e   : > { %v4373_v8 = vpop.eup %4372  ;;  %v2920_v48 = vmul.f32 0.6931472, %v4371_v6  ;;  %v2939_v32 = vrot.slane %v2916_v34, 1  ;;  %4392 = vpow2.f32 %v3319_v60  ;;  %v6793_v60 = vld [vmem:[%s5547_s18 + $0x128] sm:$0xff]  ;;  %v7528_v34 = vld [vmem:[#allocation16_spill] sm:$0xff] }
 0x29f   : > { %v4375_v59 = vpop.eup %4374  ;;  %v2922_v38 = vmul.f32 0.6931472, %v4373_v8  ;;  %v2940_v20 = vrot.slane %v2918_v21, 1  ;;  %4394 = vpow2.f32 %v3321_v57  ;;  %v3090_v57 = vsub.f32 %v6793_v60, %v7527_v4 }
 0x2a0   : > { %v4377_v23 = vpop.eup %4376  ;;  %v2924_v46 = vmul.f32 0.6931472, %v4375_v59  ;;  %v2941_v54 = vrot.slane %v2920_v48, 1  ;;  %v2955_v10 = vsel %vm2135_vm0, %v2939_v32, 0.0  ;;  %4396 = vpow2.f32 %v3323_v44  ;;  %v7529_v48 = vld [vmem:[#allocation99_spill] sm:$0xff]  ;;  %v6807_v59 = vld [vmem:[%s5547_s18 + $0x138] sm:$0xff] }
 0x2a1   : > { %v4379_v50 = vpop.eup %4378  ;;  %v2926_v41 = vmul.f32 0.6931472, %v4377_v23  ;;  %v2942_v39 = vrot.slane %v2922_v38, 1  ;;  %v2956_v42 = vsel %vm2135_vm0, %v2940_v20, 0.0  ;;  %v7530_v38 = vld [vmem:[#allocation17_spill] sm:$0xff]  ;;  %v3106_v16 = vmul.f32 5.0, %v3090_v57 }
 0x2a2   : > { %v4381_v3 = vpop.eup %4380  ;;  %v2928_v18 = vmul.f32 0.6931472, %v4379_v50  ;;  %v2957_v61 = vadd.f32 %v2956_v42, %v2955_v10  ;;  %v2943_v5 = vrot.slane %v2924_v46, 1  ;;  %v2958_v9 = vsel %vm2135_vm0, %v2941_v54, 0.0  ;;  %v7531_v10 = vld [vmem:[#allocation100_spill] sm:$0xff] }
 0x2a3   : > { %v4383_v63 = vpop.eup %4382  ;;  %v2930_v30 = vmul.f32 0.6931472, %v4381_v3  ;;  %v2944_v21 = vrot.slane %v2926_v41, 1  ;;  %v2960_v8 = vsel %vm2135_vm0, %v2942_v39, 0.0 }
 0x2a4   : > { %v4385_v36 = vpop.eup %4384  ;;  %v2959_v13 = vadd.f32 %v2958_v9, %v2957_v61  ;;  %v6790_v24 = vmul.f32 %v4383_v63, %v7526_v62  ;;  %v2945_v46 = vrot.slane %v2928_v18, 1  ;;  %v2962_v39 = vsel %vm2135_vm0, %v2943_v5, 0.0  ;;  %v7532_v61 = vld [vmem:[#allocation101_spill] sm:$0xff] }
 0x2a5   : > { %v4387_v6 = vpop.eup %4386  ;;  %v6804_v32 = vmul.f32 %v4385_v36, %v7529_v48  ;;  %v2946_v41 = vrot.slane %v2930_v30, 1  ;;  %v7533_v48 = vld [vmem:[#allocation102_spill] sm:$0xff] }
 0x2a6   : > { %v4389_v23 = vpop.eup %4388  ;;  %v2961_v54 = vadd.f32 %v2960_v8, %v2959_v13  ;;  %v6812_v50 = vmul.f32 %v4387_v6, %v7531_v10  ;;  %v3414_v42 = vadd.f32 1e-05, %v6790_v24  ;;  %v2964_v6 = vsel %vm2135_vm0, %v2944_v21, 0.0  ;;  %v7534_v8 = vld [vmem:[#allocation81_spill] sm:$0xff] }
 0x2a7   : > { %v4391_v3 = vpop.eup %4390  ;;  %v6817_v63 = vmul.f32 %v4389_v23, %v7532_v61  ;;  %v3415_v9 = vadd.f32 1e-05, %v6804_v32  ;;  %v7535_v61 = vld [vmem:[#allocation82_spill] sm:$0xff] }
 0x2a8   : > { %v4393_v36 = vpop.eup %4392  ;;  %v2963_v62 = vadd.f32 %v2962_v39, %v2961_v54  ;;  %v6821_v20 = vmul.f32 %v4391_v3, %v7533_v48  ;;  %v3416_v18 = vadd.f32 1e-05, %v6812_v50  ;;  %4398 = vlog2.f32 %v3414_v42  ;;  %v7537_v39 = vld [vmem:[#allocation83_spill] sm:$0xff]  ;;  %v4520_v48 = vld [vmem:[%s5547_s18 + $0x140] sm:$0xff] }
 0x2a9   : > { %v4395_v13 = vpop.eup %4394  ;;  %v6826_v30 = vmul.f32 %v4393_v36, %v7534_v8  ;;  %v3417_v5 = vadd.f32 1e-05, %v6817_v63  ;;  %4400 = vlog2.f32 %v3415_v9  ;;  %v2966_v42 = vsel %vm2135_vm0, %v2945_v46, 0.0 }
 0x2aa   : > { %v4397_v23 = vpop.eup %4396  ;;  %v2965_v10 = vadd.f32 %v2964_v6, %v2963_v62  ;;  %v6830_v54 = vmul.f32 %v4395_v13, %v7535_v61  ;;  %v3418_v3 = vadd.f32 1e-05, %v6821_v20  ;;  %4402 = vlog2.f32 %v3416_v18  ;;  %v4521_v6 = vld [vmem:[%s5547_s18 + $0x148] sm:$0xff]  ;;  %v4523_v61 = vld [vmem:[%s5547_s18 + $0x158] sm:$0xff] }
 0x2ab   : > { %v6835_v21 = vmul.f32 %v4397_v23, %v7537_v39  ;;  %v3419_v36 = vadd.f32 1e-05, %v6826_v30  ;;  %4404 = vlog2.f32 %v3417_v5  ;;  %v3093_v13 = vsub.f32 %v4520_v48, %v7521_v49  ;;  %v4522_v23 = vld [vmem:[%s5547_s18 + $0x150] sm:$0xff]  ;;  %v4525_v39 = vld [vmem:[%s5547_s18 + $0x168] sm:$0xff] }
 0x2ac   : > { %7536 = vst [vmem:[#allocation71_spill] sm:$0xff] %v6830_v54  ;;  %v2967_v9 = vadd.f32 %v2966_v42, %v2965_v10  ;;  %v3420_v62 = vadd.f32 1e-05, %v6830_v54  ;;  %4406 = vlog2.f32 %v3418_v3  ;;  %v2968_v18 = vsel %vm2135_vm0, %v2946_v41, 0.0  ;;  %v4524_v42 = vld [vmem:[%s5547_s18 + $0x160] sm:$0xff] }
 0x2ad   : > { %7538 = vst [vmem:[#allocation62_spill] sm:$0xff] %v6835_v21  ;;  %v3421_v46 = vadd.f32 1e-05, %v6835_v21  ;;  %4408 = vlog2.f32 %v3419_v36  ;;  %v3094_v8 = vsub.f32 %v4521_v6, %v7522_v22  ;;  %v3095_v10 = vsub.f32 %v4522_v23, %v7523_v43  ;;  %v4526_v36 = vld [vmem:[%s5547_s18 + $0x170] sm:$0xff]  ;;  %v4527_v6 = vld [vmem:[%s5547_s18 + $0x178] sm:$0xff] }
 0x2ae   : > { %v2969_v5 = vadd.f32 %v2968_v18, %v2967_v9  ;;  %4410 = vlog2.f32 %v3420_v62  ;;  %v3096_v3 = vsub.f32 %v4523_v61, %v7524_v33  ;;  %v3097_v41 = vsub.f32 %v4524_v42, %v7525_v35 }
 0x2af   : > { %4412 = vlog2.f32 %v3421_v46  ;;  %v3098_v48 = vsub.f32 %v4525_v39, %v7527_v4  ;;  %v3099_v44 = vsub.f32 %v4526_v36, %v7528_v34  ;;  %v3100_v9 = vsub.f32 %v4527_v6, %v7530_v38 }
 0x2b0   : > { %2970 = vadd.xlane.f32.xlu0 %v2969_v5  ;;  %v3101_v62 = vmul.f32 5.0, %v3085_v1  ;;  %v3102_v18 = vmul.f32 5.0, %v3086_v17  ;;  %v3103_v46 = vmul.f32 5.0, %v3087_v25  ;;  %v3104_v23 = vmul.f32 5.0, %v3088_v0 }
 0x2b1   : > { %v3105_v5 = vmul.f32 5.0, %v3089_v53  ;;  %v7539_v49 = vsub.f32 %v6798_v14, %v7528_v34  ;;  %v7540_v22 = vsub.f32 %v6807_v59, %v7530_v38  ;;  %v3109_v27 = vmul.f32 5.0, %v3093_v13 }
 0x2b2   : > { %v4399_v40 = vpop.eup %4398  ;;  %v3110_v43 = vmul.f32 5.0, %v3094_v8  ;;  %v3111_v25 = vmul.f32 5.0, %v3095_v10  ;;  %v3112_v0 = vmul.f32 5.0, %v3096_v3  ;;  %v3113_v2 = vmul.f32 5.0, %v3097_v41 }
 0x2b3   : > { %v3107_v1 = vmul.f32 5.0, %v7539_v49  ;;  %v3108_v17 = vmul.f32 5.0, %v7540_v22  ;;  %v4401_v29 = vpop.eup %4400  ;;  %v3423_v33 = vmul.f32 0.6931472, %v4399_v40  ;;  %v3114_v35 = vmul.f32 5.0, %v3098_v48 }
 0x2b4   : > { %v4403_v53 = vpop.eup %4402  ;;  %v3425_v60 = vmul.f32 0.6931472, %v4401_v29  ;;  %v3115_v4 = vmul.f32 5.0, %v3099_v44  ;;  %v6881_v57 = vmul.f32 5.0, %v3100_v9  ;;  %v3117_v14 = vmul.f32 %v3101_v62, %v3101_v62 }
 0x2b5   : > { %v4405_v34 = vpop.eup %4404  ;;  %v3427_v61 = vmul.f32 0.6931472, %v4403_v53  ;;  %v3446_v42 = vrot.slane %v3423_v33, 2  ;;  %v3118_v39 = vmul.f32 %v3102_v18, %v3102_v18  ;;  %v3119_v59 = vmul.f32 %v3103_v46, %v3103_v46 }
 0x2b6   : > { %v4407_v38 = vpop.eup %4406  ;;  %v3429_v13 = vmul.f32 0.6931472, %v4405_v34  ;;  %v3447_v8 = vrot.slane %v3425_v60, 2  ;;  %v3120_v10 = vmul.f32 %v3104_v23, %v3104_v23  ;;  %v3121_v36 = vmul.f32 %v3105_v5, %v3105_v5 }
 0x2b7   : > { %v4409_v6 = vpop.eup %4408  ;;  %v3431_v3 = vmul.f32 0.6931472, %v4407_v38  ;;  %v3448_v41 = vrot.slane %v3427_v61, 2  ;;  %v3462_v48 = vsel %vm2135_vm0, %v3446_v42, 0.0  ;;  %v3122_v49 = vmul.f32 %v3106_v16, %v3106_v16 }
 0x2b8   : > { %v4411_v44 = vpop.eup %4410  ;;  %v3433_v9 = vmul.f32 0.6931472, %v4409_v6  ;;  %v3449_v40 = vrot.slane %v3429_v13, 2  ;;  %v3463_v62 = vsel %vm2135_vm0, %v3447_v8, 0.0  ;;  %v3123_v22 = vmul.f32 %v3107_v1, %v3107_v1 }
 0x2b9   : > { %v4413_v29 = vpop.eup %4412  ;;  %v3464_v18 = vadd.f32 %v3463_v62, %v3462_v48  ;;  %v3124_v46 = vmul.f32 %v3108_v17, %v3108_v17  ;;  %v3125_v33 = vmul.f32 %v3109_v27, %v3109_v27  ;;  %v3126_v53 = vmul.f32 %v3110_v43, %v3110_v43 }
 0x2ba   : > { %v3435_v60 = vmul.f32 0.6931472, %v4411_v44  ;;  %v3450_v23 = vrot.slane %v3431_v3, 2  ;;  %v3465_v5 = vsel %vm2135_vm0, %v3448_v41, 0.0  ;;  %v3127_v34 = vmul.f32 %v3111_v25, %v3111_v25 }
 0x2bb   : > { %v3437_v61 = vmul.f32 0.6931472, %v4413_v29  ;;  %v3451_v38 = vrot.slane %v3433_v9, 2  ;;  %v3466_v42 = vadd.f32 %v3465_v5, %v3464_v18  ;;  %v3128_v16 = vmul.f32 %v3112_v0, %v3112_v0 }
 0x2bc   : > { %v3467_v6 = vsel %vm2135_vm0, %v3449_v40, 0.0  ;;  %v3133_v13 = vmul.f32 -0.5, %v3117_v14  ;;  %v3134_v21 = vmul.f32 -0.5, %v3118_v39  ;;  %v3135_v8 = vmul.f32 -0.5, %v3119_v59 }
 0x2bd   : > { %v3468_v1 = vadd.f32 %v3467_v6, %v3466_v42  ;;  %v3129_v54 = vmul.f32 %v3113_v2, %v3113_v2  ;;  %v3130_v48 = vmul.f32 %v3114_v35, %v3114_v35  ;;  %v3136_v17 = vmul.f32 -0.5, %v3120_v10 }
 0x2be   : > { %v3452_v27 = vrot.slane %v3435_v60, 2  ;;  %v3469_v43 = vsel %vm2135_vm0, %v3450_v23, 0.0  ;;  %v3137_v3 = vmul.f32 -0.5, %v3121_v36  ;;  %v3138_v44 = vmul.f32 -0.5, %v3122_v49 }
 0x2bf   : > { %v3453_v41 = vrot.slane %v3437_v61, 2  ;;  %v3470_v25 = vadd.f32 %v3469_v43, %v3468_v1  ;;  %v3471_v9 = vsel %vm2135_vm0, %v3451_v38, 0.0  ;;  %v3139_v62 = vmul.f32 -0.5, %v3123_v22 }
 0x2c0   : > { %v3131_v0 = vmul.f32 %v3115_v4, %v3115_v4  ;;  %v3149_v29 = vadd.f32 0.69049937, %v3133_v13  ;;  %v3150_v40 = vadd.f32 0.69049937, %v3134_v21  ;;  %v3151_v14 = vadd.f32 0.69049937, %v3135_v8 }
 0x2c1   : > { %v3472_v39 = vadd.f32 %v3471_v9, %v3470_v25  ;;  %v3140_v59 = vmul.f32 -0.5, %v3124_v46  ;;  %v3141_v18 = vmul.f32 -0.5, %v3125_v33  ;;  %v3152_v2 = vadd.f32 0.69049937, %v3136_v17 }
 0x2c2   : > { %v3473_v35 = vsel %vm2135_vm0, %v3452_v27, 0.0  ;;  %v3142_v10 = vmul.f32 -0.5, %v3126_v53  ;;  %v3143_v60 = vmul.f32 -0.5, %v3127_v34  ;;  %v3153_v23 = vadd.f32 0.69049937, %v3137_v3 }
 0x2c3   : > { %v3474_v36 = vadd.f32 %v3473_v35, %v3472_v39  ;;  %v3475_v49 = vsel %vm2135_vm0, %v3453_v41, 0.0  ;;  %v3154_v5 = vadd.f32 0.69049937, %v3138_v44  ;;  %v3155_v61 = vadd.f32 0.69049937, %v3139_v62 }
 0x2c4   : > { %v3132_v4 = vmul.f32 %v6881_v57, %v6881_v57  ;;  %v3165_v22 = vmul.f32 1.442695, %v3149_v29  ;;  %v3167_v21 = vmul.f32 1.442695, %v3150_v40  ;;  %v3169_v38 = vmul.f32 1.442695, %v3151_v14 }
 0x2c5   : > { %v3476_v42 = vadd.f32 %v3475_v49, %v3474_v36  ;;  %v3144_v46 = vmul.f32 -0.5, %v3128_v16  ;;  %v3156_v33 = vadd.f32 0.69049937, %v3140_v59  ;;  %v3171_v6 = vmul.f32 1.442695, %v3152_v2 }
 0x2c6   : > { %v3145_v13 = vmul.f32 -0.5, %v3129_v54  ;;  %v3157_v8 = vadd.f32 0.69049937, %v3141_v18  ;;  %4414 = vpow2.f32 %v3165_v22  ;;  %v3173_v53 = vmul.f32 1.442695, %v3153_v23 }
 0x2c7   : > { %3477 = vadd.xlane.f32.xlu1 %v3476_v42  ;;  %v3146_v34 = vmul.f32 -0.5, %v3130_v48  ;;  %v3158_v1 = vadd.f32 0.69049937, %v3142_v10  ;;  %4416 = vpow2.f32 %v3167_v21  ;;  %v3175_v17 = vmul.f32 1.442695, %v3154_v5 }
 0x2c8   : > { %v3147_v27 = vmul.f32 -0.5, %v3131_v0  ;;  %v3159_v43 = vadd.f32 0.69049937, %v3143_v60  ;;  %4418 = vpow2.f32 %v3169_v38  ;;  %v3177_v57 = vmul.f32 1.442695, %v3155_v61 }
 0x2c9   : > { %v3148_v3 = vmul.f32 -0.5, %v3132_v4  ;;  %v3160_v44 = vadd.f32 0.69049937, %v3144_v46  ;;  %4420 = vpow2.f32 %v3171_v6  ;;  %v3179_v41 = vmul.f32 1.442695, %v3156_v33 }
 0x2ca   : > { %v3161_v16 = vadd.f32 0.69049937, %v3145_v13  ;;  %4422 = vpow2.f32 %v3173_v53  ;;  %v3181_v25 = vmul.f32 1.442695, %v3157_v8  ;;  %v3162_v54 = vadd.f32 0.69049937, %v3146_v34 }
 0x2cb   : > { %4424 = vpow2.f32 %v3175_v17  ;;  %v3183_v9 = vmul.f32 1.442695, %v3158_v1  ;;  %v3163_v62 = vadd.f32 0.69049937, %v3147_v27  ;;  %v3185_v48 = vmul.f32 1.442695, %v3159_v43 }
 0x2cc   : > { %4426 = vpow2.f32 %v3177_v57  ;;  %v3164_v29 = vadd.f32 0.69049937, %v3148_v3  ;;  %v3187_v40 = vmul.f32 1.442695, %v3160_v44  ;;  %v3189_v0 = vmul.f32 1.442695, %v3161_v16 }
 0x2cd   : > { %4428 = vpow2.f32 %v3179_v41  ;;  %v3191_v14 = vmul.f32 1.442695, %v3162_v54  ;;  %v3193_v59 = vmul.f32 1.442695, %v3163_v62 }
 0x2ce   : > { %4430 = vpow2.f32 %v3181_v25  ;;  %v3195_v2 = vmul.f32 1.442695, %v3164_v29 }
 0x2cf   : > { %4432 = vpow2.f32 %v3183_v9 }
 0x2d0   : > { %v4415_v39 = vpop.eup %4414  ;;  %4434 = vpow2.f32 %v3185_v48 }
 0x2d1   : > { %v4417_v18 = vpop.eup %4416  ;;  %4436 = vpow2.f32 %v3187_v40  ;;  %v3197_v5 = vmul.f32 %v4415_v39, %v6510_v19 }
 0x2d2   : > { %v4419_v35 = vpop.eup %4418  ;;  %4438 = vpow2.f32 %v3189_v0  ;;  %v3198_v4 = vmul.f32 %v4417_v18, %v6486_v11 }
 0x2d3   : > { %v4421_v10 = vpop.eup %4420  ;;  %4440 = vpow2.f32 %v3191_v14  ;;  %v3199_v21 = vmul.f32 %v4419_v35, %v6489_v55 }
 0x2d4   : > { %v4423_v60 = vpop.eup %4422  ;;  %4442 = vpow2.f32 %v3193_v59  ;;  %v3200_v46 = vmul.f32 %v4421_v10, %v6492_v7 }
 0x2d5   : > { %v4425_v23 = vpop.eup %4424  ;;  %4444 = vpow2.f32 %v3195_v2  ;;  %v3201_v13 = vmul.f32 %v4423_v60, %v6513_v31 }
 0x2d6   : > { %v4427_v36 = vpop.eup %4426  ;;  %v3202_v34 = vmul.f32 %v4425_v23, %v6520_v56 }
 0x2d7   : > { %v4429_v49 = vpop.eup %4428 }
 0x2d8   : > { %v4431_v61 = vpop.eup %4430  ;;  %v3204_v43 = vmul.f32 %v4429_v49, %v6526_v26 }
 0x2d9   : > { %v4433_v22 = vpop.eup %4432  ;;  %v3205_v38 = vmul.f32 %v4431_v61, %v6532_v28  ;;  %v3203_v28 = vmul.f32 %v4427_v36, %v6523_v47 }
 0x2da   : > { %v4435_v42 = vpop.eup %4434  ;;  %v3206_v33 = vmul.f32 %v4433_v22, %v6535_v45 }
 0x2db   : > { %v4437_v6 = vpop.eup %4436  ;;  %v3207_v8 = vmul.f32 %v4435_v42, %v6538_v51  ;;  %v3213_v53 = vadd.f32 %v3205_v38, %v3197_v5 }
 0x2dc   : > { %v4439_v19 = vpop.eup %4438  ;;  %v3208_v11 = vmul.f32 %v4437_v6, %v6543_v12  ;;  %v3220_v1 = vadd.f32 %v3206_v33, %v3198_v4 }
 0x2dd   : > { %v4441_v55 = vpop.eup %4440  ;;  %v3209_v17 = vmul.f32 %v4439_v19, %v6546_v15  ;;  %v3214_v7 = vrot.slane %v3213_v53, 4  ;;  %v3227_v27 = vadd.f32 %v3207_v8, %v3199_v21 }
 0x2de   : > { %v4443_v45 = vpop.eup %4442  ;;  %v3210_v31 = vmul.f32 %v4441_v55, %v7512_v52  ;;  %v3221_v51 = vrot.slane %v3220_v1, 4  ;;  %v3234_v57 = vadd.f32 %v3208_v11, %v3200_v46 }
 0x2df   : > { %v4445_v3 = vpop.eup %4444  ;;  %v3211_v56 = vmul.f32 %v4443_v45, %v7486_v37  ;;  %v3215_v44 = vadd.f32 %v3214_v7, %v3213_v53  ;;  %v3228_v12 = vrot.slane %v3227_v27, 4  ;;  %v3241_v41 = vadd.f32 %v3209_v17, %v3201_v13 }
 0x2e0   : > { %v3212_v16 = vmul.f32 %v4445_v3, %v7487_v58  ;;  %v3222_v47 = vadd.f32 %v3221_v51, %v3220_v1  ;;  %v3235_v25 = vrot.slane %v3234_v57, 4  ;;  %v3248_v15 = vadd.f32 %v3210_v31, %v3202_v34 }
 0x2e1   : > { %v3216_v54 = vrot.slane %v3215_v44, 2  ;;  %v3229_v9 = vadd.f32 %v3228_v12, %v3227_v27  ;;  %v3242_v62 = vrot.slane %v3241_v41, 4  ;;  %v3255_v48 = vadd.f32 %v3211_v56, %v3203_v28 }
 0x2e2   : > { %v3223_v26 = vrot.slane %v3222_v47, 2  ;;  %v3236_v29 = vadd.f32 %v3235_v25, %v3234_v57  ;;  %v3249_v52 = vrot.slane %v3248_v15, 4  ;;  %v3262_v40 = vadd.f32 %v3212_v16, %v3204_v43 }
 0x2e3   : > { %v3217_v0 = vadd.f32 %v3216_v54, %v3215_v44  ;;  %v3230_v14 = vrot.slane %v3229_v9, 2  ;;  %v3243_v39 = vadd.f32 %v3242_v62, %v3241_v41  ;;  %v3256_v37 = vrot.slane %v3255_v48, 4 }
 0x2e4   : > { %v3224_v59 = vadd.f32 %v3223_v26, %v3222_v47  ;;  %v3237_v18 = vrot.slane %v3236_v29, 2  ;;  %v3250_v2 = vadd.f32 %v3249_v52, %v3248_v15  ;;  %v3263_v35 = vrot.slane %v3262_v40, 4 }
 0x2e5   : > { %v3218_v58 = vrot.slane %v3217_v0, 1  ;;  %v3231_v10 = vadd.f32 %v3230_v14, %v3229_v9  ;;  %v3244_v60 = vrot.slane %v3243_v39, 2  ;;  %v3257_v23 = vadd.f32 %v3256_v37, %v3255_v48 }
 0x2e6   : > { %v3225_v36 = vrot.slane %v3224_v59, 1  ;;  %v3238_v49 = vadd.f32 %v3237_v18, %v3236_v29  ;;  %v3251_v5 = vrot.slane %v3250_v2, 2  ;;  %v3264_v61 = vadd.f32 %v3263_v35, %v3262_v40 }
 0x2e7   : > { %v3219_v4 = vadd.f32 %v3218_v58, %v3217_v0  ;;  %v3232_v22 = vrot.slane %v3231_v10, 1  ;;  %v3245_v21 = vadd.f32 %v3244_v60, %v3243_v39  ;;  %v3258_v38 = vrot.slane %v3257_v23, 2 }
 0x2e8   : > { %v3226_v42 = vadd.f32 %v3225_v36, %v3224_v59  ;;  %v3239_v46 = vrot.slane %v3238_v49, 1  ;;  %v3252_v33 = vadd.f32 %v3251_v5, %v3250_v2  ;;  %v3265_v6 = vrot.slane %v3264_v61, 2 }
 0x2e9   : > { %v3233_v13 = vadd.f32 %v3232_v22, %v3231_v10  ;;  %v3246_v8 = vrot.slane %v3245_v21, 1  ;;  %v3259_v53 = vadd.f32 %v3258_v38, %v3257_v23  ;;  %v3333_v19 = vadd.f32 %v6790_v24, %v3219_v4 }
 0x2ea   : > { %v3240_v34 = vadd.f32 %v3239_v46, %v3238_v49  ;;  %v3253_v11 = vrot.slane %v3252_v33, 1  ;;  %v3266_v1 = vadd.f32 %v3265_v6, %v3264_v61  ;;  %v3334_v55 = vadd.f32 %v6804_v32, %v3226_v42  ;;  %v7541_v32 = vld [vmem:[#allocation71_spill] sm:$0xff] }
 0x2eb   : > { %v3247_v28 = vadd.f32 %v3246_v8, %v3245_v21  ;;  %v3260_v17 = vrot.slane %v3259_v53, 1  ;;  %v3335_v7 = vadd.f32 %v6812_v50, %v3233_v13  ;;  %v3341_v27 = vadd.f32 1e-05, %v3333_v19  ;;  %v7542_v50 = vld [vmem:[#allocation62_spill] sm:$0xff] }
 0x2ec   : > { %v3254_v45 = vadd.f32 %v3253_v11, %v3252_v33  ;;  %v3267_v43 = vrot.slane %v3266_v1, 1  ;;  %v3336_v31 = vadd.f32 %v6817_v63, %v3240_v34  ;;  %v3342_v51 = vadd.f32 1e-05, %v3334_v55  ;;  %v2610_v11 = vpop.xlane.xlu0 %2609 }
 0x2ed   : > { %v3261_v57 = vadd.f32 %v3260_v17, %v3259_v53  ;;  %v3337_v3 = vadd.f32 %v6821_v20, %v3247_v28  ;;  %v3343_v56 = vadd.f32 1e-05, %v3335_v7  ;;  %4446 = vlog2.f32 %v3341_v27 }
 0x2ee   : > { %v3268_v24 = vadd.f32 %v3267_v43, %v3266_v1  ;;  %v3338_v44 = vadd.f32 %v6826_v30, %v3254_v45  ;;  %v3344_v12 = vadd.f32 1e-05, %v3336_v31  ;;  %4448 = vlog2.f32 %v3342_v51  ;;  %v3044_v1 = vpop.xlane.xlu1 %3043 }
 0x2ef   : > { %v3339_v41 = vadd.f32 %v7541_v32, %v3261_v57  ;;  %v3345_v16 = vadd.f32 1e-05, %v3337_v3  ;;  %4450 = vlog2.f32 %v3343_v56  ;;  %v2611_v17 = vrot.slane %v2610_v11, 4 }
 0x2f0   : > { %v3340_v47 = vadd.f32 %v7542_v50, %v3268_v24  ;;  %v3346_v25 = vadd.f32 1e-05, %v3338_v44  ;;  %4452 = vlog2.f32 %v3344_v12  ;;  %v2152_v55 = vpop.xlane.xlu0 %2151 }
 0x2f1   : > { %v3347_v63 = vadd.f32 1e-05, %v3339_v41  ;;  %4454 = vlog2.f32 %v3345_v16  ;;  %v2153_v7 = vrot.slane %v2152_v55, 4  ;;  %v2612_v45 = vadd.f32 %v2611_v17, %v2610_v11 }
 0x2f2   : > { %v3348_v15 = vadd.f32 1e-05, %v3340_v47  ;;  %4456 = vlog2.f32 %v3346_v25  ;;  %v3045_v25 = vrot.slane %v3044_v1, 4 }
 0x2f3   : > { %4458 = vlog2.f32 %v3347_v63  ;;  %v2154_v43 = vadd.f32 %v2153_v7, %v2152_v55  ;;  %v2613_v51 = vrot.slane %v2612_v45, 2 }
 0x2f4   : > { %4460 = vlog2.f32 %v3348_v15  ;;  %v3046_v63 = vadd.f32 %v3045_v25, %v3044_v1 }
 0x2f5   : > { %v2155_v57 = vrot.slane %v2154_v43, 2  ;;  %v2614_v44 = vadd.f32 %v2613_v51, %v2612_v45 }
 0x2f6   : > { %v3047_v15 = vrot.slane %v3046_v63, 2 }
 0x2f7   : > { %v4447_v20 = vpop.eup %4446  ;;  %v2156_v56 = vadd.f32 %v2155_v57, %v2154_v43  ;;  %v2615_v41 = vrot.slane %v2614_v44, 1 }
 0x2f8   : > { %v4449_v54 = vpop.eup %4448  ;;  %v3350_v9 = vmul.f32 0.6931472, %v4447_v20 }
 0x2f9   : > { %v4451_v30 = vpop.eup %4450  ;;  %v3352_v62 = vmul.f32 0.6931472, %v4449_v54  ;;  %v2157_v12 = vrot.slane %v2156_v56, 1  ;;  %v2616_v47 = vadd.f32 %v2615_v41, %v2614_v44 }
 0x2fa   : > { %v4453_v48 = vpop.eup %4452  ;;  %v3354_v26 = vmul.f32 0.6931472, %v4451_v30  ;;  %v3373_v29 = vrot.slane %v3350_v9, 2  ;;  %v3048_v30 = vadd.f32 %v3047_v15, %v3046_v63 }
 0x2fb   : > { %v4455_v52 = vpop.eup %4454  ;;  %v3356_v40 = vmul.f32 0.6931472, %v4453_v48  ;;  %v3374_v0 = vrot.slane %v3352_v62, 2  ;;  %v2158_v16 = vadd.f32 %v2157_v12, %v2156_v56 }
 0x2fc   : > { %v4457_v14 = vpop.eup %4456  ;;  %v3358_v39 = vmul.f32 0.6931472, %v4455_v52  ;;  %v3375_v37 = vrot.slane %v3354_v26, 2  ;;  %v3389_v59 = vsel %vm2135_vm0, %v3373_v29, 0.0  ;;  %v3049_v26 = vrot.slane %v3048_v30, 1 }
 0x2fd   : > { %v4459_v18 = vpop.eup %4458  ;;  %v3360_v2 = vmul.f32 0.6931472, %v4457_v14  ;;  %v3376_v35 = vrot.slane %v3356_v40, 2  ;;  %v3390_v58 = vsel %vm2135_vm0, %v3374_v0, 0.0  ;;  %3809 = vpush %v2158_v16 }
 0x2fe   : > { %v4461_v10 = vpop.eup %4460  ;;  %v3391_v60 = vadd.f32 %v3390_v58, %v3389_v59  ;;  %v3362_v23 = vmul.f32 0.6931472, %v4459_v18  ;;  %v3377_v36 = vrot.slane %v3358_v39, 2  ;;  %v3392_v49 = vsel %vm2135_vm0, %v3375_v37, 0.0 }
 0x2ff   : > { %v3364_v61 = vmul.f32 0.6931472, %v4461_v10  ;;  %v3378_v4 = vrot.slane %v3360_v2, 2  ;;  %v3394_v22 = vsel %vm2135_vm0, %v3376_v35, 0.0  ;;  %v3050_v40 = vadd.f32 %v3049_v26, %v3048_v30 }
 0x300   : > { %v3393_v5 = vadd.f32 %v3392_v49, %v3391_v60  ;;  %v3379_v38 = vrot.slane %v3362_v23, 2  ;;  %v3396_v42 = vsel %vm2135_vm0, %v3377_v36, 0.0 }
 0x301   : > { %v3380_v33 = vrot.slane %v3364_v61, 2  ;;  %v3398_v6 = vsel %vm2135_vm0, %v3378_v4, 0.0 }
 0x302   : > { %v3395_v21 = vadd.f32 %v3394_v22, %v3393_v5  ;;  %v3400_v8 = vsel %vm2135_vm0, %v3379_v38, 0.0 }
 0x303   : > { %v3402_v19 = vsel %vm2135_vm0, %v3380_v33, 0.0 }
 0x304   : > { %v3397_v46 = vadd.f32 %v3396_v42, %v3395_v21 }
 0x305   : > { %v2561_v28 = vpop.xlane.xlu1 %2560 }
 0x306   : > { %v3399_v13 = vadd.f32 %v3398_v6, %v3397_v46  ;;  %v2562_v27 = vrot.slane %v2561_v28, 4 }
 0x308   : > { %v3401_v53 = vadd.f32 %v3400_v8, %v3399_v13  ;;  %v2563_v31 = vadd.f32 %v2562_v27, %v2561_v28 }
 0x30a   : > { %v3403_v34 = vadd.f32 %v3402_v19, %v3401_v53  ;;  %v2564_v3 = vrot.slane %v2563_v31, 2 }
 0x30c   : > { %3404 = vadd.xlane.f32.xlu0 %v3403_v34  ;;  %v2565_v24 = vadd.f32 %v2564_v3, %v2563_v31 }
 0x30e   : > { %v2566_v32 = vrot.slane %v2565_v24, 1 }
 0x310   : > { %v2567_v50 = vadd.f32 %v2566_v32, %v2565_v24 }
 0x312   : > { %3811 = vpush %v2567_v50 }
 0x313   : > { %3813 = vpush %v2616_v47 }
 0x32e   : > { %s3810_s26 = spop %3809 }
 0x32f   : > { %s2160_s10 = ssub.f32 0.0, %s3810_s26 }
 0x331   : > { %v3523_v0 = vstv %s2160_s10 }
 0x332   : > { %3524 = vst [vmem:[%s354_s9] sm:$0x1] %v3523_v0 }
 0x33d   : > { %v2971_v20 = vpop.xlane.xlu0 %2970 }
 0x33e   : > { %v2972_v54 = vrot.slane %v2971_v20, 4 }
 0x340   : > { %v2973_v9 = vadd.f32 %v2972_v54, %v2971_v20 }
 0x342   : > { %v2974_v62 = vrot.slane %v2973_v9, 2 }
 0x343   : > { %s3812_s11 = spop %3811 }
 0x344   : > { %v2975_v48 = vadd.f32 %v2974_v62, %v2973_v9  ;;  %s3814_s12 = spop %3813  ;;  %s2569_s13 = ssub.f32 0.0, %s3812_s11 }
 0x345   : > { %s2618_s15 = ssub.f32 0.0, %s3814_s12 }
 0x346   : > { %v2976_v29 = vrot.slane %v2975_v48, 1 }
 0x348   : > { %v2977_v52 = vadd.f32 %v2976_v29, %v2975_v48 }
 0x34a   : > { %3815 = vpush %v2977_v52 }
 0x34b   : > { %3817 = vpush %v3050_v40 }
 0x354   : > { %v3478_v14 = vpop.xlane.xlu1 %3477 }
 0x355   : > { %v3479_v39 = vrot.slane %v3478_v14, 4 }
 0x357   : > { %v3480_v37 = vadd.f32 %v3479_v39, %v3478_v14 }
 0x359   : > { %v3481_v59 = vrot.slane %v3480_v37, 2 }
 0x35b   : > { %v3482_v58 = vadd.f32 %v3481_v59, %v3480_v37 }
 0x35d   : > { %v3483_v23 = vrot.slane %v3482_v58, 1 }
 0x35f   : > { %v3484_v5 = vadd.f32 %v3483_v23, %v3482_v58 }
 0x37b   : > { %s3816_s14 = spop %3815 }
 0x37c   : > { %s3818_s16 = spop %3817  ;;  %s2979_s17 = ssub.f32 %s2569_s13, %s3816_s14 }
 0x37d   : > { %s3052_s21 = ssub.f32 %s2618_s15, %s3818_s16 }
 0x399   : > { %v3405_v18 = vpop.xlane.xlu0 %3404 }
 0x39a   : > { %v3406_v2 = vrot.slane %v3405_v18, 4 }
 0x39c   : > { %v3407_v35 = vadd.f32 %v3406_v2, %v3405_v18 }
 0x39e   : > { %v3408_v10 = vrot.slane %v3407_v35, 2 }
 0x3a0   : > { %v3409_v60 = vadd.f32 %v3408_v10, %v3407_v35 }
 0x3a2   : > { %v3410_v36 = vrot.slane %v3409_v60, 1 }
 0x3a4   : > { %v3411_v49 = vadd.f32 %v3410_v36, %v3409_v60 }
 0x3a6   : > { %3819 = vpush %v3411_v49 }
 0x3a7   : > { %3821 = vpush %v3484_v5 }
 0x3d7   : > { %s3820_s22 = spop %3819 }
 0x3d8   : > { %s3413_s23 = ssub.f32 %s2979_s17, %s3820_s22  ;;  %s3822_s24 = spop %3821 }
 0x3d9   : > { %s3486_s30 = ssub.f32 %s3052_s21, %s3822_s24 }
 0x3da   : > { %v3519_v61 = vstv %s3413_s23 }
 0x3db   : > { %3520 = vst [vmem:[%s348_s20] sm:$0x1] %v3519_v61  ;;  %v3521_v4 = vstv %s3486_s30 }
 0x3dc   : > { %3522 = vst [vmem:[%s351_s29] sm:$0x1] %v3521_v4 }
 0x3dd PF: > { %s19_s27 = sadd.s32 1, %s4534_s27  }
 0x3de   : > { %p16_p4 = scmp.ge.s32.totalorder %s19_s27, 8  }
 0x3e0   :  { %18 = sbr.rel (!%p16_p4) target bundleno = 1 (0x1), region = 122 }

// kernel: squeeze.14
= control target key start
LH: loop header
LB: loop body
LE: loop exit
PB: predicated region body
PF: predicated region fallthrough
CT: control target
= control target key end

     0   :  { %vm7_vm0 = vcmask 23552   ;;  %s39_s0 = inlined_call_operand.vmem [shape: f32[6], index: 0, kind: input, shape index: {}]   ;;  %s40_s1 = inlined_call_operand.vmem [shape: f32[2,3], index: 1, kind: output, shape index: {}]  }
   0x1   :  { %v4_v0 = vld [vmem:[%s39_s0] sm:$0x1]  ;;  %s22_s0 = smov 125  }
   0x2   :  { %5 = vst [vmem:[#allocation1] sm:$0x1] %v4_v0 }
   0x9   :  { %v9_v1 = vld [vmem:[#allocation1] sm:$0x1]  }
   0xa   :  { %v6_v2 = vld [vmem:[#allocation1] sm:$0x1]   ;;  %10 = vrot.lane.b32.xlu0 %v9_v1, %s22_s0 }
   0xb   :  { %8 = vst.msk [vmem:[#allocation0] sm:$0x1] %vm7_vm0, %v6_v2  }
  0x7c   :  { %v11_v3 = vpop.permute.xlu0 %10  }
  0x7d   :  { %14 = vst.msk [vmem:[#allocation0 + $0x1] sm:$0x1] %vm7_vm0, %v11_v3  }
  0x84   :  { %v18_v4 = vld [vmem:[#allocation0] sm:$0x3] }
  0x85   :  { %20 = vst [vmem:[%s40_s1] sm:$0x3] %v18_v4 }

</bundles_post_ra>
